<compile_context>
chip_gen: v6e
topology: v6e:2x2x1
jax: 0.10.0
libtpu: 0.0.40
codegen_flags: <defaults>
</compile_context>

<pallas_src>
import math

import jax
import jax.numpy as jnp
from jax import lax
from jax.experimental import pallas as pl
from jax.experimental.pallas import tpu as pltpu

# ----------------------------------------------------------------------------
# Hyperparameters (small, consistent with the module's globals)
# ----------------------------------------------------------------------------
BATCH_SIZE = 2
MAX_SEQ_LEN = 8
EMBEDDING_DIM = 16
ENCODER_HIDDEN_SIZE = 32
DECODER_HIDDEN_SIZE = 32        # decoder_hidden = encoder_hidden => sizes must match
NUM_LAYERS = 1                  # encoder / decoder GRU layers (same, for hidden handoff)
VOCAB_SIZE = 32
PAD, UNK, SOS, EOS = 0, 1, 2, 3
ATTENTION_FN = "general"
TEACHER_FORCING = True  # TODO(synk): original uses np.random.random() < TEACHER_FORCING_RATIO (nondeterministic)

_VMEM = pl.BlockSpec(memory_space=pltpu.MemorySpace.VMEM)   # whole-array block in VMEM


# ----------------------------------------------------------------------------
# The single fused kernel
# ----------------------------------------------------------------------------
def _seq2seq_kernel(src_ids_ref, tgt_ids_ref, len_ref,
                    enc_embw_ref, enc_whh_ref, enc_bi_ref, enc_bhn_ref,
                    dec_embw_ref, dec_whh_ref, dec_bi_ref, dec_bhn_ref,
                    attn_wa_ref, wa_o_ref, wa_c_ref, fc_w_ref, fc_b_ref,
                    out_ref, hfin_ref):
    """Whole seq2seq forward.

    src_ids/tgt_ids : [B*T, 1] int32, b-major (row = b*T + t)
    len             : [B, 1] int32 (true source lengths)
    enc_embw/dec_embw : [V, 3H] bf16 — embedding table folded into GRU w_ih
    out  : [B, T, V] f32 log-softmax over vocab
    hfin : [B, H]    f32 final decoder hidden state
    """
    B, T, V = out_ref.shape
    H = dec_whh_ref.shape[0]
    He = attn_wa_ref.shape[1]
    f32, bf16 = jnp.float32, jnp.bfloat16

    # ---- in-kernel "embedding lookup": one-hot(token) @ (emb @ w_ih) --------
    vocab_iota = lax.broadcasted_iota(jnp.int32, (1, V), 1)
    src_oh = jnp.where(src_ids_ref[...] == vocab_iota, 1.0, 0.0).astype(bf16)  # [B*T,V]
    tgt_oh = jnp.where(tgt_ids_ref[...] == vocab_iota, 1.0, 0.0).astype(bf16)  # [B*T,V]

    enc_embw = enc_embw_ref[...]
    dec_embw = dec_embw_ref[...]
    enc_bi = enc_bi_ref[...]
    dec_bi = dec_bi_ref[...]

    # ---- input-side GRU matmuls hoisted out of the recurrences (all T at once)
    gi_src = (jnp.dot(src_oh, enc_embw, preferred_element_type=f32)
              + enc_bi).reshape(B, T, 3 * H)
    gi_tgt = (jnp.dot(tgt_oh, dec_embw, preferred_element_type=f32)
              + dec_bi).reshape(B, T, 3 * H)
    # decoder step-0 input is <SOS> for every row (teacher forcing)
    gi_sos = jnp.broadcast_to(dec_embw[SOS:SOS + 1, :].astype(f32) + dec_bi,
                              (B, 3 * H))

    enc_whh = enc_whh_ref[...]
    dec_whh = dec_whh_ref[...]
    enc_bhn = jnp.broadcast_to(enc_bhn_ref[...], (B, H))    # broadcasts hoisted once
    dec_bhn = jnp.broadcast_to(dec_bhn_ref[...], (B, H))
    lens = len_ref[...]                                     # [B,1] int32

    def gru_step(gi, h, whh, bhn):
        # only this h @ w_hh matmul is on the serial recurrence path
        gh = jnp.dot(h.astype(bf16), whh, preferred_element_type=f32)       # [B,3H]
        r = jax.nn.sigmoid(gi[:, :H] + gh[:, :H])
        z = jax.nn.sigmoid(gi[:, H:2 * H] + gh[:, H:2 * H])
        n = jnp.tanh(gi[:, 2 * H:] + r * (gh[:, 2 * H:] + bhn))
        return (1.0 - z) * n + z * h

    # ================= encoder recurrence =====================================
    h = jnp.zeros((B, H), f32)
    enc_steps = []
    for t in range(T):                                      # static, fully unrolled
        h_new = gru_step(gi_src[:, t, :], h, enc_whh, enc_bhn)
        valid = (lens > t).astype(f32)                      # [B,1] compare vs. immediate
        enc_steps.append(valid * h_new)                     # pad_packed: zeros past length
        h = h + valid * (h_new - h)                         # freeze hidden past length
    enc_bsh = jnp.stack(enc_steps, axis=1)                  # [B, S, He] (decoder layout)
    enc_hfin = h

    # ================= decoder recurrence: GRU cell only ======================
    h = enc_hfin
    h_prev_steps, h_new_steps = [], []
    for t in range(T):
        h_prev_steps.append(h)                              # attention uses PRE-step hidden
        gi = gi_sos if t == 0 else gi_tgt[:, t - 1, :]      # teacher forcing inputs
        h = gru_step(gi, h, dec_whh, dec_bhn)
        h_new_steps.append(h)
    hfin_ref[...] = h
    h_prev = jnp.stack(h_prev_steps, axis=1).reshape(B * T, H)   # [B*T, H] b-major
    h_out = jnp.stack(h_new_steps, axis=1).reshape(B * T, H)     # [B*T, H] b-major

    # ======= attention + output projections, batched over ALL steps ===========
    # reference forward_step: attention scored against incoming hidden h0.
    proj = jnp.dot(h_prev.astype(bf16), attn_wa_ref[...],
                   preferred_element_type=f32).reshape(B, T, He)
    scores = jnp.einsum('bth,bsh->bts', proj, enc_bsh,
                        preferred_element_type=f32)              # [B, T, S]
    scores = scores - jnp.max(scores, axis=-1, keepdims=True)
    e = jnp.exp(scores)
    attw = e / jnp.sum(e, axis=-1, keepdims=True)                # softmax over S
    # (unmasked over padded positions — matches reference, which softmaxes over
    #  the zero-padded pad_packed encoder outputs without a length mask)
    ctx = jnp.einsum('bts,bsh->bth', attw, enc_bsh,
                     preferred_element_type=f32).reshape(B * T, He)

    # tanh(Wa [gru_out ; ctx]) -> fc -> log_softmax (Wa split => no concat)
    tt = jnp.tanh(jnp.dot(h_out.astype(bf16), wa_o_ref[...], preferred_element_type=f32)
                  + jnp.dot(ctx.astype(bf16), wa_c_ref[...], preferred_element_type=f32))
    logits = jnp.dot(tt.astype(bf16), fc_w_ref[...],
                     preferred_element_type=f32) + fc_b_ref[...]             # [B*T, V]
    m = jnp.max(logits, axis=-1, keepdims=True)
    lse = m + jnp.log(jnp.sum(jnp.exp(logits - m), axis=-1, keepdims=True))
    out_ref[...] = (logits - lse).reshape(B, T, V)          # b-major flat == [B,T,V]


# ----------------------------------------------------------------------------
# Wrapper: one pallas_call, no host-side gathers / transposes / pads
# ----------------------------------------------------------------------------
def seq2seq_forward(params, inp, label, input_len):
    """NumDecoder.forward (teacher forcing) plus the encoder feeding it."""
    B, T = inp.shape
    src_ids = inp.astype(jnp.int32).reshape(B * T, 1)
    tgt_ids = label.astype(jnp.int32).reshape(B * T, 1)
    lens = input_len.astype(jnp.int32).reshape(B, 1)

    # TODO(synk): the argmax-feedback branch (use_teacher_forcing=False) of the
    # original loop is not expressed in the fused kernel.
    out, dec_h = pl.pallas_call(
        _seq2seq_kernel,
        out_shape=(jax.ShapeDtypeStruct((B, T, VOCAB_SIZE), jnp.float32),
                   jax.ShapeDtypeStruct((B, DECODER_HIDDEN_SIZE), jnp.float32)),
        in_specs=[_VMEM] * 16,
        out_specs=(_VMEM, _VMEM),
    )(src_ids, tgt_ids, lens,
      params["enc_embw"], params["enc_whh"], params["enc_bi"], params["enc_bhn"],
      params["dec_embw"], params["dec_whh"], params["dec_bi"], params["dec_bhn"],
      params["attn_wa"], params["wa_o"], params["wa_c"],
      params["fc_w"], params["fc_b"])

    decoder_output = out                        # [B, T, V]
    decoder_hidden = dec_h[None]                # [num_layers, B, H]
    return decoder_output, decoder_hidden


# ----------------------------------------------------------------------------
# Deterministic parameter init (kernel-ready fused layouts, bf16 weights)
# ----------------------------------------------------------------------------
def init_params(key):
    ks = jax.random.split(key, 14)
    u = lambda k, shape, bound: jax.random.uniform(k, shape, jnp.float32, -bound, bound)
    kh_e = 1.0 / math.sqrt(ENCODER_HIDDEN_SIZE)
    kh_d = 1.0 / math.sqrt(DECODER_HIDDEN_SIZE)

    def gru(k_wi, k_wh, k_bi, k_bh, in_dim, H, bound):
        w_ih = u(k_wi, (in_dim, 3 * H), bound)                 # columns [r | z | n]
        w_hh = u(k_wh, (H, 3 * H), bound)
        b_ih = u(k_bi, (1, 3 * H), bound)
        b_hh = u(k_bh, (1, 3 * H), bound)
        b_i = b_ih.at[:, :2 * H].add(b_hh[:, :2 * H])          # pre-combine r,z biases
        b_hn = b_hh[:, 2 * H:]                                 # n-gate hidden bias
        return w_ih, w_hh, b_i, b_hn

    emb_enc = jax.random.normal(ks[0], (VOCAB_SIZE, EMBEDDING_DIM), jnp.float32).at[PAD].set(0.0)
    emb_dec = jax.random.normal(ks[1], (VOCAB_SIZE, EMBEDDING_DIM), jnp.float32).at[PAD].set(0.0)

    e_wih, e_whh, e_bi, e_bhn = gru(ks[2], ks[3], ks[4], ks[5],
                                    EMBEDDING_DIM, ENCODER_HIDDEN_SIZE, kh_e)
    d_wih, d_whh, d_bi, d_bhn = gru(ks[6], ks[7], ks[8], ks[9],
                                    EMBEDDING_DIM, DECODER_HIDDEN_SIZE, kh_d)

    # decoder.wa : Linear(ENC_H + DEC_H, DEC_H, bias=False); concat order (gru_out, ctx)
    dec_wa = u(ks[11], (DECODER_HIDDEN_SIZE + ENCODER_HIDDEN_SIZE, DECODER_HIDDEN_SIZE),
               1.0 / math.sqrt(DECODER_HIDDEN_SIZE + ENCODER_HIDDEN_SIZE))

    bf16 = jnp.bfloat16
    return dict(
        # embedding tables folded into GRU input matmul: row v = emb[v] @ w_ih  [V, 3H]
        enc_embw=(emb_enc @ e_wih).astype(bf16),
        dec_embw=(emb_dec @ d_wih).astype(bf16),
        enc_whh=e_whh.astype(bf16), enc_bi=e_bi, enc_bhn=e_bhn,
        dec_whh=d_whh.astype(bf16), dec_bi=d_bi, dec_bhn=d_bhn,
        # Attention('general').wa : Linear(DEC_H, ENC_H, bias=False)
        attn_wa=u(ks[10], (DECODER_HIDDEN_SIZE, ENCODER_HIDDEN_SIZE), kh_d).astype(bf16),
        wa_o=dec_wa[:DECODER_HIDDEN_SIZE].astype(bf16),        # multiplies gru output
        wa_c=dec_wa[DECODER_HIDDEN_SIZE:].astype(bf16),        # multiplies attention ctx
        # decoder.fc : Linear(DEC_H, vocab_size)
        fc_w=u(ks[12], (DECODER_HIDDEN_SIZE, VOCAB_SIZE), kh_d).astype(bf16),
        fc_b=u(ks[13], (1, VOCAB_SIZE), kh_d),
    )


# ----------------------------------------------------------------------------
# Main
# ----------------------------------------------------------------------------
if __name__ == "__main__":
    key = jax.random.PRNGKey(0)
    pkey, tok_key, lab_key = jax.random.split(key, 3)

    params = init_params(pkey)

    # pack_padded_sequence expects sorted (descending) lengths
    input_len = jnp.array([MAX_SEQ_LEN, MAX_SEQ_LEN - 2], dtype=jnp.int32)
    inp = jax.random.randint(tok_key, (BATCH_SIZE, MAX_SEQ_LEN), 4, VOCAB_SIZE, dtype=jnp.int32)
    pos = jnp.arange(MAX_SEQ_LEN)[None, :]
    inp = jnp.where(pos < input_len[:, None], inp, PAD)           # PAD beyond valid length
    label = jax.random.randint(lab_key, (BATCH_SIZE, MAX_SEQ_LEN), 4, VOCAB_SIZE, dtype=jnp.int32)

    fwd = jax.jit(seq2seq_forward)
    decoder_out, decoder_h = fwd(params, inp, label, input_len)
    jax.block_until_ready((decoder_out, decoder_h))

    assert decoder_out.shape == (BATCH_SIZE, MAX_SEQ_LEN, VOCAB_SIZE)
    assert decoder_h.shape == (NUM_LAYERS, BATCH_SIZE, DECODER_HIDDEN_SIZE)
    assert bool(jnp.isfinite(decoder_out).all())
    # log-softmax rows must (approximately) sum to 1 in prob space
    assert jnp.allclose(jnp.exp(decoder_out).sum(-1), 1.0, atol=1e-4)
    print("KERNEL_OK")
</pallas_src>

<mosaic_0001>
module attributes {stable_mosaic.version = 11 : i64} {
  func.func @_seq2seq_kernel(%arg0: memref<16x1xi32, #tpu.memory_space<vmem>>, %arg1: memref<16x1xi32, #tpu.memory_space<vmem>>, %arg2: memref<2x1xi32, #tpu.memory_space<vmem>>, %arg3: memref<32x96xbf16, #tpu.memory_space<vmem>>, %arg4: memref<32x96xbf16, #tpu.memory_space<vmem>>, %arg5: memref<1x96xf32, #tpu.memory_space<vmem>>, %arg6: memref<1x32xf32, #tpu.memory_space<vmem>>, %arg7: memref<32x96xbf16, #tpu.memory_space<vmem>>, %arg8: memref<32x96xbf16, #tpu.memory_space<vmem>>, %arg9: memref<1x96xf32, #tpu.memory_space<vmem>>, %arg10: memref<1x32xf32, #tpu.memory_space<vmem>>, %arg11: memref<32x32xbf16, #tpu.memory_space<vmem>>, %arg12: memref<32x32xbf16, #tpu.memory_space<vmem>>, %arg13: memref<32x32xbf16, #tpu.memory_space<vmem>>, %arg14: memref<32x32xbf16, #tpu.memory_space<vmem>>, %arg15: memref<1x32xf32, #tpu.memory_space<vmem>>, %arg16: memref<2x8x32xf32, #tpu.memory_space<vmem>>, %arg17: memref<2x32xf32, #tpu.memory_space<vmem>>) attributes {dimension_semantics = [], scalar_prefetch = 0 : i64, scratch_operands = 0 : i64, tpu.core_type = #tpu.core_type<tc>} {
    %0 = tpu.iota {dimensions = array<i32: 1>} : vector<1x32xi32>
    %c0 = arith.constant 0 : index
    %c0_0 = arith.constant 0 : index
    %1 = vector.load %arg0[%c0, %c0_0] : memref<16x1xi32, #tpu.memory_space<vmem>>, vector<16x1xi32>
    %2 = vector.broadcast %1 : vector<16x1xi32> to vector<16x32xi32>
    %3 = vector.broadcast %0 : vector<1x32xi32> to vector<16x32xi32>
    %4 = arith.cmpi eq, %2, %3 : vector<16x32xi32>
    %cst = arith.constant 1.000000e+00 : f32
    %cst_1 = arith.constant 0.000000e+00 : f32
    %5 = vector.broadcast %cst : f32 to vector<16x32xf32>
    %6 = vector.broadcast %cst_1 : f32 to vector<16x32xf32>
    %7 = arith.select %4, %5, %6 : vector<16x32xi1>, vector<16x32xf32>
    %8 = arith.truncf %7 : vector<16x32xf32> to vector<16x32xbf16>
    %c0_2 = arith.constant 0 : index
    %c0_3 = arith.constant 0 : index
    %9 = vector.load %arg1[%c0_2, %c0_3] : memref<16x1xi32, #tpu.memory_space<vmem>>, vector<16x1xi32>
    %10 = vector.broadcast %9 : vector<16x1xi32> to vector<16x32xi32>
    %11 = vector.broadcast %0 : vector<1x32xi32> to vector<16x32xi32>
    %12 = arith.cmpi eq, %10, %11 : vector<16x32xi32>
    %cst_4 = arith.constant 1.000000e+00 : f32
    %cst_5 = arith.constant 0.000000e+00 : f32
    %13 = vector.broadcast %cst_4 : f32 to vector<16x32xf32>
    %14 = vector.broadcast %cst_5 : f32 to vector<16x32xf32>
    %15 = arith.select %12, %13, %14 : vector<16x32xi1>, vector<16x32xf32>
    %16 = arith.truncf %15 : vector<16x32xf32> to vector<16x32xbf16>
    %c0_6 = arith.constant 0 : index
    %c0_7 = arith.constant 0 : index
    %17 = vector.load %arg3[%c0_6, %c0_7] : memref<32x96xbf16, #tpu.memory_space<vmem>>, vector<32x96xbf16>
    %c0_8 = arith.constant 0 : index
    %c0_9 = arith.constant 0 : index
    %18 = vector.load %arg7[%c0_8, %c0_9] : memref<32x96xbf16, #tpu.memory_space<vmem>>, vector<32x96xbf16>
    %c0_10 = arith.constant 0 : index
    %c0_11 = arith.constant 0 : index
    %19 = vector.load %arg5[%c0_10, %c0_11] : memref<1x96xf32, #tpu.memory_space<vmem>>, vector<1x96xf32>
    %c0_12 = arith.constant 0 : index
    %c0_13 = arith.constant 0 : index
    %20 = vector.load %arg9[%c0_12, %c0_13] : memref<1x96xf32, #tpu.memory_space<vmem>>, vector<1x96xf32>
    %cst_14 = arith.constant dense<0.000000e+00> : vector<16x96xf32>
    %21 = tpu.matmul %8, %17, %cst_14 {dimension_numbers = #tpu.dot_dimension_numbers<[1], [0], [0], [1], [0, 0, 1, 1], [], []>} : vector<16x32xbf16>, vector<32x96xbf16>, vector<16x96xf32> -> vector<16x96xf32>
    %22 = vector.broadcast %19 : vector<1x96xf32> to vector<16x96xf32>
    %23 = arith.addf %21, %22 : vector<16x96xf32>
    %24 = vector.shape_cast %23 : vector<16x96xf32> to vector<2x8x96xf32>
    %cst_15 = arith.constant dense<0.000000e+00> : vector<16x96xf32>
    %25 = tpu.matmul %16, %18, %cst_15 {dimension_numbers = #tpu.dot_dimension_numbers<[1], [0], [0], [1], [0, 0, 1, 1], [], []>} : vector<16x32xbf16>, vector<32x96xbf16>, vector<16x96xf32> -> vector<16x96xf32>
    %26 = vector.broadcast %20 : vector<1x96xf32> to vector<16x96xf32>
    %27 = arith.addf %25, %26 : vector<16x96xf32>
    %28 = vector.shape_cast %27 : vector<16x96xf32> to vector<2x8x96xf32>
    %29 = vector.extract_strided_slice %18 {offsets = [2, 0], sizes = [1, 96], strides = [1, 1]} : vector<32x96xbf16> to vector<1x96xbf16>
    %30 = arith.extf %29 : vector<1x96xbf16> to vector<1x96xf32>
    %31 = arith.addf %30, %20 : vector<1x96xf32>
    %32 = vector.shape_cast %31 : vector<1x96xf32> to vector<1x96xf32>
    %33 = vector.broadcast %32 : vector<1x96xf32> to vector<2x96xf32>
    %c0_16 = arith.constant 0 : index
    %c0_17 = arith.constant 0 : index
    %34 = vector.load %arg4[%c0_16, %c0_17] : memref<32x96xbf16, #tpu.memory_space<vmem>>, vector<32x96xbf16>
    %c0_18 = arith.constant 0 : index
    %c0_19 = arith.constant 0 : index
    %35 = vector.load %arg8[%c0_18, %c0_19] : memref<32x96xbf16, #tpu.memory_space<vmem>>, vector<32x96xbf16>
    %c0_20 = arith.constant 0 : index
    %c0_21 = arith.constant 0 : index
    %36 = vector.load %arg6[%c0_20, %c0_21] : memref<1x32xf32, #tpu.memory_space<vmem>>, vector<1x32xf32>
    %37 = vector.shape_cast %36 : vector<1x32xf32> to vector<1x32xf32>
    %38 = vector.broadcast %37 : vector<1x32xf32> to vector<2x32xf32>
    %c0_22 = arith.constant 0 : index
    %c0_23 = arith.constant 0 : index
    %39 = vector.load %arg10[%c0_22, %c0_23] : memref<1x32xf32, #tpu.memory_space<vmem>>, vector<1x32xf32>
    %40 = vector.shape_cast %39 : vector<1x32xf32> to vector<1x32xf32>
    %41 = vector.broadcast %40 : vector<1x32xf32> to vector<2x32xf32>
    %c0_24 = arith.constant 0 : index
    %c0_25 = arith.constant 0 : index
    %42 = vector.load %arg2[%c0_24, %c0_25] : memref<2x1xi32, #tpu.memory_space<vmem>>, vector<2x1xi32>
    %cst_26 = arith.constant 0.000000e+00 : f32
    %43 = vector.broadcast %cst_26 : f32 to vector<2x32xf32>
    %44 = vector.extract_strided_slice %24 {offsets = [0, 0, 0], sizes = [2, 1, 96], strides = [1, 1, 1]} : vector<2x8x96xf32> to vector<2x1x96xf32>
    %45 = vector.shape_cast %44 : vector<2x1x96xf32> to vector<2x96xf32>
    %46 = arith.truncf %43 : vector<2x32xf32> to vector<2x32xbf16>
    %cst_27 = arith.constant dense<0.000000e+00> : vector<2x96xf32>
    %47 = tpu.matmul %46, %34, %cst_27 {dimension_numbers = #tpu.dot_dimension_numbers<[1], [0], [0], [1], [0, 0, 1, 1], [], []>} : vector<2x32xbf16>, vector<32x96xbf16>, vector<2x96xf32> -> vector<2x96xf32>
    %48 = vector.extract_strided_slice %45 {offsets = [0, 0], sizes = [2, 32], strides = [1, 1]} : vector<2x96xf32> to vector<2x32xf32>
    %49 = vector.extract_strided_slice %47 {offsets = [0, 0], sizes = [2, 32], strides = [1, 1]} : vector<2x96xf32> to vector<2x32xf32>
    %50 = arith.addf %48, %49 : vector<2x32xf32>
    %51 = arith.negf %50 : vector<2x32xf32>
    %52 = math.exp %51 : vector<2x32xf32>
    %cst_28 = arith.constant 1.000000e+00 : f32
    %53 = vector.broadcast %cst_28 : f32 to vector<2x32xf32>
    %54 = arith.addf %53, %52 : vector<2x32xf32>
    %55 = arith.divf %53, %54 : vector<2x32xf32>
    %56 = vector.extract_strided_slice %45 {offsets = [0, 32], sizes = [2, 32], strides = [1, 1]} : vector<2x96xf32> to vector<2x32xf32>
    %57 = vector.extract_strided_slice %47 {offsets = [0, 32], sizes = [2, 32], strides = [1, 1]} : vector<2x96xf32> to vector<2x32xf32>
    %58 = arith.addf %56, %57 : vector<2x32xf32>
    %59 = arith.negf %58 : vector<2x32xf32>
    %60 = math.exp %59 : vector<2x32xf32>
    %cst_29 = arith.constant 1.000000e+00 : f32
    %61 = vector.broadcast %cst_29 : f32 to vector<2x32xf32>
    %62 = arith.addf %61, %60 : vector<2x32xf32>
    %63 = arith.divf %61, %62 : vector<2x32xf32>
    %64 = vector.extract_strided_slice %45 {offsets = [0, 64], sizes = [2, 32], strides = [1, 1]} : vector<2x96xf32> to vector<2x32xf32>
    %65 = vector.extract_strided_slice %47 {offsets = [0, 64], sizes = [2, 32], strides = [1, 1]} : vector<2x96xf32> to vector<2x32xf32>
    %66 = arith.addf %65, %38 : vector<2x32xf32>
    %67 = arith.mulf %55, %66 : vector<2x32xf32>
    %68 = arith.addf %64, %67 : vector<2x32xf32>
    %69 = math.tanh %68 : vector<2x32xf32>
    %cst_30 = arith.constant 1.000000e+00 : f32
    %70 = vector.broadcast %cst_30 : f32 to vector<2x32xf32>
    %71 = arith.subf %70, %63 : vector<2x32xf32>
    %72 = arith.mulf %71, %69 : vector<2x32xf32>
    %73 = arith.mulf %63, %43 : vector<2x32xf32>
    %74 = arith.addf %72, %73 : vector<2x32xf32>
    %c0_i32 = arith.constant 0 : i32
    %75 = vector.broadcast %c0_i32 : i32 to vector<2x1xi32>
    %76 = arith.cmpi sgt, %42, %75 : vector<2x1xi32>
    %77 = arith.extui %76 : vector<2x1xi1> to vector<2x1xi32>
    %78 = arith.sitofp %77 : vector<2x1xi32> to vector<2x1xf32>
    %79 = vector.broadcast %78 : vector<2x1xf32> to vector<2x32xf32>
    %80 = arith.mulf %79, %74 : vector<2x32xf32>
    %81 = arith.subf %74, %43 : vector<2x32xf32>
    %82 = vector.broadcast %78 : vector<2x1xf32> to vector<2x32xf32>
    %83 = arith.mulf %82, %81 : vector<2x32xf32>
    %84 = arith.addf %43, %83 : vector<2x32xf32>
    %85 = vector.extract_strided_slice %24 {offsets = [0, 1, 0], sizes = [2, 1, 96], strides = [1, 1, 1]} : vector<2x8x96xf32> to vector<2x1x96xf32>
    %86 = vector.shape_cast %85 : vector<2x1x96xf32> to vector<2x96xf32>
    %87 = arith.truncf %84 : vector<2x32xf32> to vector<2x32xbf16>
    %cst_31 = arith.constant dense<0.000000e+00> : vector<2x96xf32>
    %88 = tpu.matmul %87, %34, %cst_31 {dimension_numbers = #tpu.dot_dimension_numbers<[1], [0], [0], [1], [0, 0, 1, 1], [], []>} : vector<2x32xbf16>, vector<32x96xbf16>, vector<2x96xf32> -> vector<2x96xf32>
    %89 = vector.extract_strided_slice %86 {offsets = [0, 0], sizes = [2, 32], strides = [1, 1]} : vector<2x96xf32> to vector<2x32xf32>
    %90 = vector.extract_strided_slice %88 {offsets = [0, 0], sizes = [2, 32], strides = [1, 1]} : vector<2x96xf32> to vector<2x32xf32>
    %91 = arith.addf %89, %90 : vector<2x32xf32>
    %92 = arith.negf %91 : vector<2x32xf32>
    %93 = math.exp %92 : vector<2x32xf32>
    %cst_32 = arith.constant 1.000000e+00 : f32
    %94 = vector.broadcast %cst_32 : f32 to vector<2x32xf32>
    %95 = arith.addf %94, %93 : vector<2x32xf32>
    %96 = arith.divf %94, %95 : vector<2x32xf32>
    %97 = vector.extract_strided_slice %86 {offsets = [0, 32], sizes = [2, 32], strides = [1, 1]} : vector<2x96xf32> to vector<2x32xf32>
    %98 = vector.extract_strided_slice %88 {offsets = [0, 32], sizes = [2, 32], strides = [1, 1]} : vector<2x96xf32> to vector<2x32xf32>
    %99 = arith.addf %97, %98 : vector<2x32xf32>
    %100 = arith.negf %99 : vector<2x32xf32>
    %101 = math.exp %100 : vector<2x32xf32>
    %cst_33 = arith.constant 1.000000e+00 : f32
    %102 = vector.broadcast %cst_33 : f32 to vector<2x32xf32>
    %103 = arith.addf %102, %101 : vector<2x32xf32>
    %104 = arith.divf %102, %103 : vector<2x32xf32>
    %105 = vector.extract_strided_slice %86 {offsets = [0, 64], sizes = [2, 32], strides = [1, 1]} : vector<2x96xf32> to vector<2x32xf32>
    %106 = vector.extract_strided_slice %88 {offsets = [0, 64], sizes = [2, 32], strides = [1, 1]} : vector<2x96xf32> to vector<2x32xf32>
    %107 = arith.addf %106, %38 : vector<2x32xf32>
    %108 = arith.mulf %96, %107 : vector<2x32xf32>
    %109 = arith.addf %105, %108 : vector<2x32xf32>
    %110 = math.tanh %109 : vector<2x32xf32>
    %cst_34 = arith.constant 1.000000e+00 : f32
    %111 = vector.broadcast %cst_34 : f32 to vector<2x32xf32>
    %112 = arith.subf %111, %104 : vector<2x32xf32>
    %113 = arith.mulf %112, %110 : vector<2x32xf32>
    %114 = arith.mulf %104, %84 : vector<2x32xf32>
    %115 = arith.addf %113, %114 : vector<2x32xf32>
    %c1_i32 = arith.constant 1 : i32
    %116 = vector.broadcast %c1_i32 : i32 to vector<2x1xi32>
    %117 = arith.cmpi sgt, %42, %116 : vector<2x1xi32>
    %118 = arith.extui %117 : vector<2x1xi1> to vector<2x1xi32>
    %119 = arith.sitofp %118 : vector<2x1xi32> to vector<2x1xf32>
    %120 = vector.broadcast %119 : vector<2x1xf32> to vector<2x32xf32>
    %121 = arith.mulf %120, %115 : vector<2x32xf32>
    %122 = arith.subf %115, %84 : vector<2x32xf32>
    %123 = vector.broadcast %119 : vector<2x1xf32> to vector<2x32xf32>
    %124 = arith.mulf %123, %122 : vector<2x32xf32>
    %125 = arith.addf %84, %124 : vector<2x32xf32>
    %126 = vector.extract_strided_slice %24 {offsets = [0, 2, 0], sizes = [2, 1, 96], strides = [1, 1, 1]} : vector<2x8x96xf32> to vector<2x1x96xf32>
    %127 = vector.shape_cast %126 : vector<2x1x96xf32> to vector<2x96xf32>
    %128 = arith.truncf %125 : vector<2x32xf32> to vector<2x32xbf16>
    %cst_35 = arith.constant dense<0.000000e+00> : vector<2x96xf32>
    %129 = tpu.matmul %128, %34, %cst_35 {dimension_numbers = #tpu.dot_dimension_numbers<[1], [0], [0], [1], [0, 0, 1, 1], [], []>} : vector<2x32xbf16>, vector<32x96xbf16>, vector<2x96xf32> -> vector<2x96xf32>
    %130 = vector.extract_strided_slice %127 {offsets = [0, 0], sizes = [2, 32], strides = [1, 1]} : vector<2x96xf32> to vector<2x32xf32>
    %131 = vector.extract_strided_slice %129 {offsets = [0, 0], sizes = [2, 32], strides = [1, 1]} : vector<2x96xf32> to vector<2x32xf32>
    %132 = arith.addf %130, %131 : vector<2x32xf32>
    %133 = arith.negf %132 : vector<2x32xf32>
    %134 = math.exp %133 : vector<2x32xf32>
    %cst_36 = arith.constant 1.000000e+00 : f32
    %135 = vector.broadcast %cst_36 : f32 to vector<2x32xf32>
    %136 = arith.addf %135, %134 : vector<2x32xf32>
    %137 = arith.divf %135, %136 : vector<2x32xf32>
    %138 = vector.extract_strided_slice %127 {offsets = [0, 32], sizes = [2, 32], strides = [1, 1]} : vector<2x96xf32> to vector<2x32xf32>
    %139 = vector.extract_strided_slice %129 {offsets = [0, 32], sizes = [2, 32], strides = [1, 1]} : vector<2x96xf32> to vector<2x32xf32>
    %140 = arith.addf %138, %139 : vector<2x32xf32>
    %141 = arith.negf %140 : vector<2x32xf32>
    %142 = math.exp %141 : vector<2x32xf32>
    %cst_37 = arith.constant 1.000000e+00 : f32
    %143 = vector.broadcast %cst_37 : f32 to vector<2x32xf32>
    %144 = arith.addf %143, %142 : vector<2x32xf32>
    %145 = arith.divf %143, %144 : vector<2x32xf32>
    %146 = vector.extract_strided_slice %127 {offsets = [0, 64], sizes = [2, 32], strides = [1, 1]} : vector<2x96xf32> to vector<2x32xf32>
    %147 = vector.extract_strided_slice %129 {offsets = [0, 64], sizes = [2, 32], strides = [1, 1]} : vector<2x96xf32> to vector<2x32xf32>
    %148 = arith.addf %147, %38 : vector<2x32xf32>
    %149 = arith.mulf %137, %148 : vector<2x32xf32>
    %150 = arith.addf %146, %149 : vector<2x32xf32>
    %151 = math.tanh %150 : vector<2x32xf32>
    %cst_38 = arith.constant 1.000000e+00 : f32
    %152 = vector.broadcast %cst_38 : f32 to vector<2x32xf32>
    %153 = arith.subf %152, %145 : vector<2x32xf32>
    %154 = arith.mulf %153, %151 : vector<2x32xf32>
    %155 = arith.mulf %145, %125 : vector<2x32xf32>
    %156 = arith.addf %154, %155 : vector<2x32xf32>
    %c2_i32 = arith.constant 2 : i32
    %157 = vector.broadcast %c2_i32 : i32 to vector<2x1xi32>
    %158 = arith.cmpi sgt, %42, %157 : vector<2x1xi32>
    %159 = arith.extui %158 : vector<2x1xi1> to vector<2x1xi32>
    %160 = arith.sitofp %159 : vector<2x1xi32> to vector<2x1xf32>
    %161 = vector.broadcast %160 : vector<2x1xf32> to vector<2x32xf32>
    %162 = arith.mulf %161, %156 : vector<2x32xf32>
    %163 = arith.subf %156, %125 : vector<2x32xf32>
    %164 = vector.broadcast %160 : vector<2x1xf32> to vector<2x32xf32>
    %165 = arith.mulf %164, %163 : vector<2x32xf32>
    %166 = arith.addf %125, %165 : vector<2x32xf32>
    %167 = vector.extract_strided_slice %24 {offsets = [0, 3, 0], sizes = [2, 1, 96], strides = [1, 1, 1]} : vector<2x8x96xf32> to vector<2x1x96xf32>
    %168 = vector.shape_cast %167 : vector<2x1x96xf32> to vector<2x96xf32>
    %169 = arith.truncf %166 : vector<2x32xf32> to vector<2x32xbf16>
    %cst_39 = arith.constant dense<0.000000e+00> : vector<2x96xf32>
    %170 = tpu.matmul %169, %34, %cst_39 {dimension_numbers = #tpu.dot_dimension_numbers<[1], [0], [0], [1], [0, 0, 1, 1], [], []>} : vector<2x32xbf16>, vector<32x96xbf16>, vector<2x96xf32> -> vector<2x96xf32>
    %171 = vector.extract_strided_slice %168 {offsets = [0, 0], sizes = [2, 32], strides = [1, 1]} : vector<2x96xf32> to vector<2x32xf32>
    %172 = vector.extract_strided_slice %170 {offsets = [0, 0], sizes = [2, 32], strides = [1, 1]} : vector<2x96xf32> to vector<2x32xf32>
    %173 = arith.addf %171, %172 : vector<2x32xf32>
    %174 = arith.negf %173 : vector<2x32xf32>
    %175 = math.exp %174 : vector<2x32xf32>
    %cst_40 = arith.constant 1.000000e+00 : f32
    %176 = vector.broadcast %cst_40 : f32 to vector<2x32xf32>
    %177 = arith.addf %176, %175 : vector<2x32xf32>
    %178 = arith.divf %176, %177 : vector<2x32xf32>
    %179 = vector.extract_strided_slice %168 {offsets = [0, 32], sizes = [2, 32], strides = [1, 1]} : vector<2x96xf32> to vector<2x32xf32>
    %180 = vector.extract_strided_slice %170 {offsets = [0, 32], sizes = [2, 32], strides = [1, 1]} : vector<2x96xf32> to vector<2x32xf32>
    %181 = arith.addf %179, %180 : vector<2x32xf32>
    %182 = arith.negf %181 : vector<2x32xf32>
    %183 = math.exp %182 : vector<2x32xf32>
    %cst_41 = arith.constant 1.000000e+00 : f32
    %184 = vector.broadcast %cst_41 : f32 to vector<2x32xf32>
    %185 = arith.addf %184, %183 : vector<2x32xf32>
    %186 = arith.divf %184, %185 : vector<2x32xf32>
    %187 = vector.extract_strided_slice %168 {offsets = [0, 64], sizes = [2, 32], strides = [1, 1]} : vector<2x96xf32> to vector<2x32xf32>
    %188 = vector.extract_strided_slice %170 {offsets = [0, 64], sizes = [2, 32], strides = [1, 1]} : vector<2x96xf32> to vector<2x32xf32>
    %189 = arith.addf %188, %38 : vector<2x32xf32>
    %190 = arith.mulf %178, %189 : vector<2x32xf32>
    %191 = arith.addf %187, %190 : vector<2x32xf32>
    %192 = math.tanh %191 : vector<2x32xf32>
    %cst_42 = arith.constant 1.000000e+00 : f32
    %193 = vector.broadcast %cst_42 : f32 to vector<2x32xf32>
    %194 = arith.subf %193, %186 : vector<2x32xf32>
    %195 = arith.mulf %194, %192 : vector<2x32xf32>
    %196 = arith.mulf %186, %166 : vector<2x32xf32>
    %197 = arith.addf %195, %196 : vector<2x32xf32>
    %c3_i32 = arith.constant 3 : i32
    %198 = vector.broadcast %c3_i32 : i32 to vector<2x1xi32>
    %199 = arith.cmpi sgt, %42, %198 : vector<2x1xi32>
    %200 = arith.extui %199 : vector<2x1xi1> to vector<2x1xi32>
    %201 = arith.sitofp %200 : vector<2x1xi32> to vector<2x1xf32>
    %202 = vector.broadcast %201 : vector<2x1xf32> to vector<2x32xf32>
    %203 = arith.mulf %202, %197 : vector<2x32xf32>
    %204 = arith.subf %197, %166 : vector<2x32xf32>
    %205 = vector.broadcast %201 : vector<2x1xf32> to vector<2x32xf32>
    %206 = arith.mulf %205, %204 : vector<2x32xf32>
    %207 = arith.addf %166, %206 : vector<2x32xf32>
    %208 = vector.extract_strided_slice %24 {offsets = [0, 4, 0], sizes = [2, 1, 96], strides = [1, 1, 1]} : vector<2x8x96xf32> to vector<2x1x96xf32>
    %209 = vector.shape_cast %208 : vector<2x1x96xf32> to vector<2x96xf32>
    %210 = arith.truncf %207 : vector<2x32xf32> to vector<2x32xbf16>
    %cst_43 = arith.constant dense<0.000000e+00> : vector<2x96xf32>
    %211 = tpu.matmul %210, %34, %cst_43 {dimension_numbers = #tpu.dot_dimension_numbers<[1], [0], [0], [1], [0, 0, 1, 1], [], []>} : vector<2x32xbf16>, vector<32x96xbf16>, vector<2x96xf32> -> vector<2x96xf32>
    %212 = vector.extract_strided_slice %209 {offsets = [0, 0], sizes = [2, 32], strides = [1, 1]} : vector<2x96xf32> to vector<2x32xf32>
    %213 = vector.extract_strided_slice %211 {offsets = [0, 0], sizes = [2, 32], strides = [1, 1]} : vector<2x96xf32> to vector<2x32xf32>
    %214 = arith.addf %212, %213 : vector<2x32xf32>
    %215 = arith.negf %214 : vector<2x32xf32>
    %216 = math.exp %215 : vector<2x32xf32>
    %cst_44 = arith.constant 1.000000e+00 : f32
    %217 = vector.broadcast %cst_44 : f32 to vector<2x32xf32>
    %218 = arith.addf %217, %216 : vector<2x32xf32>
    %219 = arith.divf %217, %218 : vector<2x32xf32>
    %220 = vector.extract_strided_slice %209 {offsets = [0, 32], sizes = [2, 32], strides = [1, 1]} : vector<2x96xf32> to vector<2x32xf32>
    %221 = vector.extract_strided_slice %211 {offsets = [0, 32], sizes = [2, 32], strides = [1, 1]} : vector<2x96xf32> to vector<2x32xf32>
    %222 = arith.addf %220, %221 : vector<2x32xf32>
    %223 = arith.negf %222 : vector<2x32xf32>
    %224 = math.exp %223 : vector<2x32xf32>
    %cst_45 = arith.constant 1.000000e+00 : f32
    %225 = vector.broadcast %cst_45 : f32 to vector<2x32xf32>
    %226 = arith.addf %225, %224 : vector<2x32xf32>
    %227 = arith.divf %225, %226 : vector<2x32xf32>
    %228 = vector.extract_strided_slice %209 {offsets = [0, 64], sizes = [2, 32], strides = [1, 1]} : vector<2x96xf32> to vector<2x32xf32>
    %229 = vector.extract_strided_slice %211 {offsets = [0, 64], sizes = [2, 32], strides = [1, 1]} : vector<2x96xf32> to vector<2x32xf32>
    %230 = arith.addf %229, %38 : vector<2x32xf32>
    %231 = arith.mulf %219, %230 : vector<2x32xf32>
    %232 = arith.addf %228, %231 : vector<2x32xf32>
    %233 = math.tanh %232 : vector<2x32xf32>
    %cst_46 = arith.constant 1.000000e+00 : f32
    %234 = vector.broadcast %cst_46 : f32 to vector<2x32xf32>
    %235 = arith.subf %234, %227 : vector<2x32xf32>
    %236 = arith.mulf %235, %233 : vector<2x32xf32>
    %237 = arith.mulf %227, %207 : vector<2x32xf32>
    %238 = arith.addf %236, %237 : vector<2x32xf32>
    %c4_i32 = arith.constant 4 : i32
    %239 = vector.broadcast %c4_i32 : i32 to vector<2x1xi32>
    %240 = arith.cmpi sgt, %42, %239 : vector<2x1xi32>
    %241 = arith.extui %240 : vector<2x1xi1> to vector<2x1xi32>
    %242 = arith.sitofp %241 : vector<2x1xi32> to vector<2x1xf32>
    %243 = vector.broadcast %242 : vector<2x1xf32> to vector<2x32xf32>
    %244 = arith.mulf %243, %238 : vector<2x32xf32>
    %245 = arith.subf %238, %207 : vector<2x32xf32>
    %246 = vector.broadcast %242 : vector<2x1xf32> to vector<2x32xf32>
    %247 = arith.mulf %246, %245 : vector<2x32xf32>
    %248 = arith.addf %207, %247 : vector<2x32xf32>
    %249 = vector.extract_strided_slice %24 {offsets = [0, 5, 0], sizes = [2, 1, 96], strides = [1, 1, 1]} : vector<2x8x96xf32> to vector<2x1x96xf32>
    %250 = vector.shape_cast %249 : vector<2x1x96xf32> to vector<2x96xf32>
    %251 = arith.truncf %248 : vector<2x32xf32> to vector<2x32xbf16>
    %cst_47 = arith.constant dense<0.000000e+00> : vector<2x96xf32>
    %252 = tpu.matmul %251, %34, %cst_47 {dimension_numbers = #tpu.dot_dimension_numbers<[1], [0], [0], [1], [0, 0, 1, 1], [], []>} : vector<2x32xbf16>, vector<32x96xbf16>, vector<2x96xf32> -> vector<2x96xf32>
    %253 = vector.extract_strided_slice %250 {offsets = [0, 0], sizes = [2, 32], strides = [1, 1]} : vector<2x96xf32> to vector<2x32xf32>
    %254 = vector.extract_strided_slice %252 {offsets = [0, 0], sizes = [2, 32], strides = [1, 1]} : vector<2x96xf32> to vector<2x32xf32>
    %255 = arith.addf %253, %254 : vector<2x32xf32>
    %256 = arith.negf %255 : vector<2x32xf32>
    %257 = math.exp %256 : vector<2x32xf32>
    %cst_48 = arith.constant 1.000000e+00 : f32
    %258 = vector.broadcast %cst_48 : f32 to vector<2x32xf32>
    %259 = arith.addf %258, %257 : vector<2x32xf32>
    %260 = arith.divf %258, %259 : vector<2x32xf32>
    %261 = vector.extract_strided_slice %250 {offsets = [0, 32], sizes = [2, 32], strides = [1, 1]} : vector<2x96xf32> to vector<2x32xf32>
    %262 = vector.extract_strided_slice %252 {offsets = [0, 32], sizes = [2, 32], strides = [1, 1]} : vector<2x96xf32> to vector<2x32xf32>
    %263 = arith.addf %261, %262 : vector<2x32xf32>
    %264 = arith.negf %263 : vector<2x32xf32>
    %265 = math.exp %264 : vector<2x32xf32>
    %cst_49 = arith.constant 1.000000e+00 : f32
    %266 = vector.broadcast %cst_49 : f32 to vector<2x32xf32>
    %267 = arith.addf %266, %265 : vector<2x32xf32>
    %268 = arith.divf %266, %267 : vector<2x32xf32>
    %269 = vector.extract_strided_slice %250 {offsets = [0, 64], sizes = [2, 32], strides = [1, 1]} : vector<2x96xf32> to vector<2x32xf32>
    %270 = vector.extract_strided_slice %252 {offsets = [0, 64], sizes = [2, 32], strides = [1, 1]} : vector<2x96xf32> to vector<2x32xf32>
    %271 = arith.addf %270, %38 : vector<2x32xf32>
    %272 = arith.mulf %260, %271 : vector<2x32xf32>
    %273 = arith.addf %269, %272 : vector<2x32xf32>
    %274 = math.tanh %273 : vector<2x32xf32>
    %cst_50 = arith.constant 1.000000e+00 : f32
    %275 = vector.broadcast %cst_50 : f32 to vector<2x32xf32>
    %276 = arith.subf %275, %268 : vector<2x32xf32>
    %277 = arith.mulf %276, %274 : vector<2x32xf32>
    %278 = arith.mulf %268, %248 : vector<2x32xf32>
    %279 = arith.addf %277, %278 : vector<2x32xf32>
    %c5_i32 = arith.constant 5 : i32
    %280 = vector.broadcast %c5_i32 : i32 to vector<2x1xi32>
    %281 = arith.cmpi sgt, %42, %280 : vector<2x1xi32>
    %282 = arith.extui %281 : vector<2x1xi1> to vector<2x1xi32>
    %283 = arith.sitofp %282 : vector<2x1xi32> to vector<2x1xf32>
    %284 = vector.broadcast %283 : vector<2x1xf32> to vector<2x32xf32>
    %285 = arith.mulf %284, %279 : vector<2x32xf32>
    %286 = arith.subf %279, %248 : vector<2x32xf32>
    %287 = vector.broadcast %283 : vector<2x1xf32> to vector<2x32xf32>
    %288 = arith.mulf %287, %286 : vector<2x32xf32>
    %289 = arith.addf %248, %288 : vector<2x32xf32>
    %290 = vector.extract_strided_slice %24 {offsets = [0, 6, 0], sizes = [2, 1, 96], strides = [1, 1, 1]} : vector<2x8x96xf32> to vector<2x1x96xf32>
    %291 = vector.shape_cast %290 : vector<2x1x96xf32> to vector<2x96xf32>
    %292 = arith.truncf %289 : vector<2x32xf32> to vector<2x32xbf16>
    %cst_51 = arith.constant dense<0.000000e+00> : vector<2x96xf32>
    %293 = tpu.matmul %292, %34, %cst_51 {dimension_numbers = #tpu.dot_dimension_numbers<[1], [0], [0], [1], [0, 0, 1, 1], [], []>} : vector<2x32xbf16>, vector<32x96xbf16>, vector<2x96xf32> -> vector<2x96xf32>
    %294 = vector.extract_strided_slice %291 {offsets = [0, 0], sizes = [2, 32], strides = [1, 1]} : vector<2x96xf32> to vector<2x32xf32>
    %295 = vector.extract_strided_slice %293 {offsets = [0, 0], sizes = [2, 32], strides = [1, 1]} : vector<2x96xf32> to vector<2x32xf32>
    %296 = arith.addf %294, %295 : vector<2x32xf32>
    %297 = arith.negf %296 : vector<2x32xf32>
    %298 = math.exp %297 : vector<2x32xf32>
    %cst_52 = arith.constant 1.000000e+00 : f32
    %299 = vector.broadcast %cst_52 : f32 to vector<2x32xf32>
    %300 = arith.addf %299, %298 : vector<2x32xf32>
    %301 = arith.divf %299, %300 : vector<2x32xf32>
    %302 = vector.extract_strided_slice %291 {offsets = [0, 32], sizes = [2, 32], strides = [1, 1]} : vector<2x96xf32> to vector<2x32xf32>
    %303 = vector.extract_strided_slice %293 {offsets = [0, 32], sizes = [2, 32], strides = [1, 1]} : vector<2x96xf32> to vector<2x32xf32>
    %304 = arith.addf %302, %303 : vector<2x32xf32>
    %305 = arith.negf %304 : vector<2x32xf32>
    %306 = math.exp %305 : vector<2x32xf32>
    %cst_53 = arith.constant 1.000000e+00 : f32
    %307 = vector.broadcast %cst_53 : f32 to vector<2x32xf32>
    %308 = arith.addf %307, %306 : vector<2x32xf32>
    %309 = arith.divf %307, %308 : vector<2x32xf32>
    %310 = vector.extract_strided_slice %291 {offsets = [0, 64], sizes = [2, 32], strides = [1, 1]} : vector<2x96xf32> to vector<2x32xf32>
    %311 = vector.extract_strided_slice %293 {offsets = [0, 64], sizes = [2, 32], strides = [1, 1]} : vector<2x96xf32> to vector<2x32xf32>
    %312 = arith.addf %311, %38 : vector<2x32xf32>
    %313 = arith.mulf %301, %312 : vector<2x32xf32>
    %314 = arith.addf %310, %313 : vector<2x32xf32>
    %315 = math.tanh %314 : vector<2x32xf32>
    %cst_54 = arith.constant 1.000000e+00 : f32
    %316 = vector.broadcast %cst_54 : f32 to vector<2x32xf32>
    %317 = arith.subf %316, %309 : vector<2x32xf32>
    %318 = arith.mulf %317, %315 : vector<2x32xf32>
    %319 = arith.mulf %309, %289 : vector<2x32xf32>
    %320 = arith.addf %318, %319 : vector<2x32xf32>
    %c6_i32 = arith.constant 6 : i32
    %321 = vector.broadcast %c6_i32 : i32 to vector<2x1xi32>
    %322 = arith.cmpi sgt, %42, %321 : vector<2x1xi32>
    %323 = arith.extui %322 : vector<2x1xi1> to vector<2x1xi32>
    %324 = arith.sitofp %323 : vector<2x1xi32> to vector<2x1xf32>
    %325 = vector.broadcast %324 : vector<2x1xf32> to vector<2x32xf32>
    %326 = arith.mulf %325, %320 : vector<2x32xf32>
    %327 = arith.subf %320, %289 : vector<2x32xf32>
    %328 = vector.broadcast %324 : vector<2x1xf32> to vector<2x32xf32>
    %329 = arith.mulf %328, %327 : vector<2x32xf32>
    %330 = arith.addf %289, %329 : vector<2x32xf32>
    %331 = vector.extract_strided_slice %24 {offsets = [0, 7, 0], sizes = [2, 1, 96], strides = [1, 1, 1]} : vector<2x8x96xf32> to vector<2x1x96xf32>
    %332 = vector.shape_cast %331 : vector<2x1x96xf32> to vector<2x96xf32>
    %333 = arith.truncf %330 : vector<2x32xf32> to vector<2x32xbf16>
    %cst_55 = arith.constant dense<0.000000e+00> : vector<2x96xf32>
    %334 = tpu.matmul %333, %34, %cst_55 {dimension_numbers = #tpu.dot_dimension_numbers<[1], [0], [0], [1], [0, 0, 1, 1], [], []>} : vector<2x32xbf16>, vector<32x96xbf16>, vector<2x96xf32> -> vector<2x96xf32>
    %335 = vector.extract_strided_slice %332 {offsets = [0, 0], sizes = [2, 32], strides = [1, 1]} : vector<2x96xf32> to vector<2x32xf32>
    %336 = vector.extract_strided_slice %334 {offsets = [0, 0], sizes = [2, 32], strides = [1, 1]} : vector<2x96xf32> to vector<2x32xf32>
    %337 = arith.addf %335, %336 : vector<2x32xf32>
    %338 = arith.negf %337 : vector<2x32xf32>
    %339 = math.exp %338 : vector<2x32xf32>
    %cst_56 = arith.constant 1.000000e+00 : f32
    %340 = vector.broadcast %cst_56 : f32 to vector<2x32xf32>
    %341 = arith.addf %340, %339 : vector<2x32xf32>
    %342 = arith.divf %340, %341 : vector<2x32xf32>
    %343 = vector.extract_strided_slice %332 {offsets = [0, 32], sizes = [2, 32], strides = [1, 1]} : vector<2x96xf32> to vector<2x32xf32>
    %344 = vector.extract_strided_slice %334 {offsets = [0, 32], sizes = [2, 32], strides = [1, 1]} : vector<2x96xf32> to vector<2x32xf32>
    %345 = arith.addf %343, %344 : vector<2x32xf32>
    %346 = arith.negf %345 : vector<2x32xf32>
    %347 = math.exp %346 : vector<2x32xf32>
    %cst_57 = arith.constant 1.000000e+00 : f32
    %348 = vector.broadcast %cst_57 : f32 to vector<2x32xf32>
    %349 = arith.addf %348, %347 : vector<2x32xf32>
    %350 = arith.divf %348, %349 : vector<2x32xf32>
    %351 = vector.extract_strided_slice %332 {offsets = [0, 64], sizes = [2, 32], strides = [1, 1]} : vector<2x96xf32> to vector<2x32xf32>
    %352 = vector.extract_strided_slice %334 {offsets = [0, 64], sizes = [2, 32], strides = [1, 1]} : vector<2x96xf32> to vector<2x32xf32>
    %353 = arith.addf %352, %38 : vector<2x32xf32>
    %354 = arith.mulf %342, %353 : vector<2x32xf32>
    %355 = arith.addf %351, %354 : vector<2x32xf32>
    %356 = math.tanh %355 : vector<2x32xf32>
    %cst_58 = arith.constant 1.000000e+00 : f32
    %357 = vector.broadcast %cst_58 : f32 to vector<2x32xf32>
    %358 = arith.subf %357, %350 : vector<2x32xf32>
    %359 = arith.mulf %358, %356 : vector<2x32xf32>
    %360 = arith.mulf %350, %330 : vector<2x32xf32>
    %361 = arith.addf %359, %360 : vector<2x32xf32>
    %c7_i32 = arith.constant 7 : i32
    %362 = vector.broadcast %c7_i32 : i32 to vector<2x1xi32>
    %363 = arith.cmpi sgt, %42, %362 : vector<2x1xi32>
    %364 = arith.extui %363 : vector<2x1xi1> to vector<2x1xi32>
    %365 = arith.sitofp %364 : vector<2x1xi32> to vector<2x1xf32>
    %366 = vector.broadcast %365 : vector<2x1xf32> to vector<2x32xf32>
    %367 = arith.mulf %366, %361 : vector<2x32xf32>
    %368 = arith.subf %361, %330 : vector<2x32xf32>
    %369 = vector.broadcast %365 : vector<2x1xf32> to vector<2x32xf32>
    %370 = arith.mulf %369, %368 : vector<2x32xf32>
    %371 = arith.addf %330, %370 : vector<2x32xf32>
    %372 = vector.shape_cast %80 : vector<2x32xf32> to vector<2x1x32xf32>
    %373 = vector.shape_cast %121 : vector<2x32xf32> to vector<2x1x32xf32>
    %374 = vector.shape_cast %162 : vector<2x32xf32> to vector<2x1x32xf32>
    %375 = vector.shape_cast %203 : vector<2x32xf32> to vector<2x1x32xf32>
    %376 = vector.shape_cast %244 : vector<2x32xf32> to vector<2x1x32xf32>
    %377 = vector.shape_cast %285 : vector<2x32xf32> to vector<2x1x32xf32>
    %378 = vector.shape_cast %326 : vector<2x32xf32> to vector<2x1x32xf32>
    %379 = vector.shape_cast %367 : vector<2x32xf32> to vector<2x1x32xf32>
    %380 = tpu.concatenate %372, %373, %374, %375, %376, %377, %378, %379 in 1 : vector<2x1x32xf32>, vector<2x1x32xf32>, vector<2x1x32xf32>, vector<2x1x32xf32>, vector<2x1x32xf32>, vector<2x1x32xf32>, vector<2x1x32xf32>, vector<2x1x32xf32> -> vector<2x8x32xf32>
    %381 = arith.truncf %371 : vector<2x32xf32> to vector<2x32xbf16>
    %cst_59 = arith.constant dense<0.000000e+00> : vector<2x96xf32>
    %382 = tpu.matmul %381, %35, %cst_59 {dimension_numbers = #tpu.dot_dimension_numbers<[1], [0], [0], [1], [0, 0, 1, 1], [], []>} : vector<2x32xbf16>, vector<32x96xbf16>, vector<2x96xf32> -> vector<2x96xf32>
    %383 = vector.extract_strided_slice %33 {offsets = [0, 0], sizes = [2, 32], strides = [1, 1]} : vector<2x96xf32> to vector<2x32xf32>
    %384 = vector.extract_strided_slice %382 {offsets = [0, 0], sizes = [2, 32], strides = [1, 1]} : vector<2x96xf32> to vector<2x32xf32>
    %385 = arith.addf %383, %384 : vector<2x32xf32>
    %386 = arith.negf %385 : vector<2x32xf32>
    %387 = math.exp %386 : vector<2x32xf32>
    %cst_60 = arith.constant 1.000000e+00 : f32
    %388 = vector.broadcast %cst_60 : f32 to vector<2x32xf32>
    %389 = arith.addf %388, %387 : vector<2x32xf32>
    %390 = arith.divf %388, %389 : vector<2x32xf32>
    %391 = vector.extract_strided_slice %33 {offsets = [0, 32], sizes = [2, 32], strides = [1, 1]} : vector<2x96xf32> to vector<2x32xf32>
    %392 = vector.extract_strided_slice %382 {offsets = [0, 32], sizes = [2, 32], strides = [1, 1]} : vector<2x96xf32> to vector<2x32xf32>
    %393 = arith.addf %391, %392 : vector<2x32xf32>
    %394 = arith.negf %393 : vector<2x32xf32>
    %395 = math.exp %394 : vector<2x32xf32>
    %cst_61 = arith.constant 1.000000e+00 : f32
    %396 = vector.broadcast %cst_61 : f32 to vector<2x32xf32>
    %397 = arith.addf %396, %395 : vector<2x32xf32>
    %398 = arith.divf %396, %397 : vector<2x32xf32>
    %399 = vector.extract_strided_slice %33 {offsets = [0, 64], sizes = [2, 32], strides = [1, 1]} : vector<2x96xf32> to vector<2x32xf32>
    %400 = vector.extract_strided_slice %382 {offsets = [0, 64], sizes = [2, 32], strides = [1, 1]} : vector<2x96xf32> to vector<2x32xf32>
    %401 = arith.addf %400, %41 : vector<2x32xf32>
    %402 = arith.mulf %390, %401 : vector<2x32xf32>
    %403 = arith.addf %399, %402 : vector<2x32xf32>
    %404 = math.tanh %403 : vector<2x32xf32>
    %cst_62 = arith.constant 1.000000e+00 : f32
    %405 = vector.broadcast %cst_62 : f32 to vector<2x32xf32>
    %406 = arith.subf %405, %398 : vector<2x32xf32>
    %407 = arith.mulf %406, %404 : vector<2x32xf32>
    %408 = arith.mulf %398, %371 : vector<2x32xf32>
    %409 = arith.addf %407, %408 : vector<2x32xf32>
    %410 = vector.extract_strided_slice %28 {offsets = [0, 0, 0], sizes = [2, 1, 96], strides = [1, 1, 1]} : vector<2x8x96xf32> to vector<2x1x96xf32>
    %411 = vector.shape_cast %410 : vector<2x1x96xf32> to vector<2x96xf32>
    %412 = arith.truncf %409 : vector<2x32xf32> to vector<2x32xbf16>
    %cst_63 = arith.constant dense<0.000000e+00> : vector<2x96xf32>
    %413 = tpu.matmul %412, %35, %cst_63 {dimension_numbers = #tpu.dot_dimension_numbers<[1], [0], [0], [1], [0, 0, 1, 1], [], []>} : vector<2x32xbf16>, vector<32x96xbf16>, vector<2x96xf32> -> vector<2x96xf32>
    %414 = vector.extract_strided_slice %411 {offsets = [0, 0], sizes = [2, 32], strides = [1, 1]} : vector<2x96xf32> to vector<2x32xf32>
    %415 = vector.extract_strided_slice %413 {offsets = [0, 0], sizes = [2, 32], strides = [1, 1]} : vector<2x96xf32> to vector<2x32xf32>
    %416 = arith.addf %414, %415 : vector<2x32xf32>
    %417 = arith.negf %416 : vector<2x32xf32>
    %418 = math.exp %417 : vector<2x32xf32>
    %cst_64 = arith.constant 1.000000e+00 : f32
    %419 = vector.broadcast %cst_64 : f32 to vector<2x32xf32>
    %420 = arith.addf %419, %418 : vector<2x32xf32>
    %421 = arith.divf %419, %420 : vector<2x32xf32>
    %422 = vector.extract_strided_slice %411 {offsets = [0, 32], sizes = [2, 32], strides = [1, 1]} : vector<2x96xf32> to vector<2x32xf32>
    %423 = vector.extract_strided_slice %413 {offsets = [0, 32], sizes = [2, 32], strides = [1, 1]} : vector<2x96xf32> to vector<2x32xf32>
    %424 = arith.addf %422, %423 : vector<2x32xf32>
    %425 = arith.negf %424 : vector<2x32xf32>
    %426 = math.exp %425 : vector<2x32xf32>
    %cst_65 = arith.constant 1.000000e+00 : f32
    %427 = vector.broadcast %cst_65 : f32 to vector<2x32xf32>
    %428 = arith.addf %427, %426 : vector<2x32xf32>
    %429 = arith.divf %427, %428 : vector<2x32xf32>
    %430 = vector.extract_strided_slice %411 {offsets = [0, 64], sizes = [2, 32], strides = [1, 1]} : vector<2x96xf32> to vector<2x32xf32>
    %431 = vector.extract_strided_slice %413 {offsets = [0, 64], sizes = [2, 32], strides = [1, 1]} : vector<2x96xf32> to vector<2x32xf32>
    %432 = arith.addf %431, %41 : vector<2x32xf32>
    %433 = arith.mulf %421, %432 : vector<2x32xf32>
    %434 = arith.addf %430, %433 : vector<2x32xf32>
    %435 = math.tanh %434 : vector<2x32xf32>
    %cst_66 = arith.constant 1.000000e+00 : f32
    %436 = vector.broadcast %cst_66 : f32 to vector<2x32xf32>
    %437 = arith.subf %436, %429 : vector<2x32xf32>
    %438 = arith.mulf %437, %435 : vector<2x32xf32>
    %439 = arith.mulf %429, %409 : vector<2x32xf32>
    %440 = arith.addf %438, %439 : vector<2x32xf32>
    %441 = vector.extract_strided_slice %28 {offsets = [0, 1, 0], sizes = [2, 1, 96], strides = [1, 1, 1]} : vector<2x8x96xf32> to vector<2x1x96xf32>
    %442 = vector.shape_cast %441 : vector<2x1x96xf32> to vector<2x96xf32>
    %443 = arith.truncf %440 : vector<2x32xf32> to vector<2x32xbf16>
    %cst_67 = arith.constant dense<0.000000e+00> : vector<2x96xf32>
    %444 = tpu.matmul %443, %35, %cst_67 {dimension_numbers = #tpu.dot_dimension_numbers<[1], [0], [0], [1], [0, 0, 1, 1], [], []>} : vector<2x32xbf16>, vector<32x96xbf16>, vector<2x96xf32> -> vector<2x96xf32>
    %445 = vector.extract_strided_slice %442 {offsets = [0, 0], sizes = [2, 32], strides = [1, 1]} : vector<2x96xf32> to vector<2x32xf32>
    %446 = vector.extract_strided_slice %444 {offsets = [0, 0], sizes = [2, 32], strides = [1, 1]} : vector<2x96xf32> to vector<2x32xf32>
    %447 = arith.addf %445, %446 : vector<2x32xf32>
    %448 = arith.negf %447 : vector<2x32xf32>
    %449 = math.exp %448 : vector<2x32xf32>
    %cst_68 = arith.constant 1.000000e+00 : f32
    %450 = vector.broadcast %cst_68 : f32 to vector<2x32xf32>
    %451 = arith.addf %450, %449 : vector<2x32xf32>
    %452 = arith.divf %450, %451 : vector<2x32xf32>
    %453 = vector.extract_strided_slice %442 {offsets = [0, 32], sizes = [2, 32], strides = [1, 1]} : vector<2x96xf32> to vector<2x32xf32>
    %454 = vector.extract_strided_slice %444 {offsets = [0, 32], sizes = [2, 32], strides = [1, 1]} : vector<2x96xf32> to vector<2x32xf32>
    %455 = arith.addf %453, %454 : vector<2x32xf32>
    %456 = arith.negf %455 : vector<2x32xf32>
    %457 = math.exp %456 : vector<2x32xf32>
    %cst_69 = arith.constant 1.000000e+00 : f32
    %458 = vector.broadcast %cst_69 : f32 to vector<2x32xf32>
    %459 = arith.addf %458, %457 : vector<2x32xf32>
    %460 = arith.divf %458, %459 : vector<2x32xf32>
    %461 = vector.extract_strided_slice %442 {offsets = [0, 64], sizes = [2, 32], strides = [1, 1]} : vector<2x96xf32> to vector<2x32xf32>
    %462 = vector.extract_strided_slice %444 {offsets = [0, 64], sizes = [2, 32], strides = [1, 1]} : vector<2x96xf32> to vector<2x32xf32>
    %463 = arith.addf %462, %41 : vector<2x32xf32>
    %464 = arith.mulf %452, %463 : vector<2x32xf32>
    %465 = arith.addf %461, %464 : vector<2x32xf32>
    %466 = math.tanh %465 : vector<2x32xf32>
    %cst_70 = arith.constant 1.000000e+00 : f32
    %467 = vector.broadcast %cst_70 : f32 to vector<2x32xf32>
    %468 = arith.subf %467, %460 : vector<2x32xf32>
    %469 = arith.mulf %468, %466 : vector<2x32xf32>
    %470 = arith.mulf %460, %440 : vector<2x32xf32>
    %471 = arith.addf %469, %470 : vector<2x32xf32>
    %472 = vector.extract_strided_slice %28 {offsets = [0, 2, 0], sizes = [2, 1, 96], strides = [1, 1, 1]} : vector<2x8x96xf32> to vector<2x1x96xf32>
    %473 = vector.shape_cast %472 : vector<2x1x96xf32> to vector<2x96xf32>
    %474 = arith.truncf %471 : vector<2x32xf32> to vector<2x32xbf16>
    %cst_71 = arith.constant dense<0.000000e+00> : vector<2x96xf32>
    %475 = tpu.matmul %474, %35, %cst_71 {dimension_numbers = #tpu.dot_dimension_numbers<[1], [0], [0], [1], [0, 0, 1, 1], [], []>} : vector<2x32xbf16>, vector<32x96xbf16>, vector<2x96xf32> -> vector<2x96xf32>
    %476 = vector.extract_strided_slice %473 {offsets = [0, 0], sizes = [2, 32], strides = [1, 1]} : vector<2x96xf32> to vector<2x32xf32>
    %477 = vector.extract_strided_slice %475 {offsets = [0, 0], sizes = [2, 32], strides = [1, 1]} : vector<2x96xf32> to vector<2x32xf32>
    %478 = arith.addf %476, %477 : vector<2x32xf32>
    %479 = arith.negf %478 : vector<2x32xf32>
    %480 = math.exp %479 : vector<2x32xf32>
    %cst_72 = arith.constant 1.000000e+00 : f32
    %481 = vector.broadcast %cst_72 : f32 to vector<2x32xf32>
    %482 = arith.addf %481, %480 : vector<2x32xf32>
    %483 = arith.divf %481, %482 : vector<2x32xf32>
    %484 = vector.extract_strided_slice %473 {offsets = [0, 32], sizes = [2, 32], strides = [1, 1]} : vector<2x96xf32> to vector<2x32xf32>
    %485 = vector.extract_strided_slice %475 {offsets = [0, 32], sizes = [2, 32], strides = [1, 1]} : vector<2x96xf32> to vector<2x32xf32>
    %486 = arith.addf %484, %485 : vector<2x32xf32>
    %487 = arith.negf %486 : vector<2x32xf32>
    %488 = math.exp %487 : vector<2x32xf32>
    %cst_73 = arith.constant 1.000000e+00 : f32
    %489 = vector.broadcast %cst_73 : f32 to vector<2x32xf32>
    %490 = arith.addf %489, %488 : vector<2x32xf32>
    %491 = arith.divf %489, %490 : vector<2x32xf32>
    %492 = vector.extract_strided_slice %473 {offsets = [0, 64], sizes = [2, 32], strides = [1, 1]} : vector<2x96xf32> to vector<2x32xf32>
    %493 = vector.extract_strided_slice %475 {offsets = [0, 64], sizes = [2, 32], strides = [1, 1]} : vector<2x96xf32> to vector<2x32xf32>
    %494 = arith.addf %493, %41 : vector<2x32xf32>
    %495 = arith.mulf %483, %494 : vector<2x32xf32>
    %496 = arith.addf %492, %495 : vector<2x32xf32>
    %497 = math.tanh %496 : vector<2x32xf32>
    %cst_74 = arith.constant 1.000000e+00 : f32
    %498 = vector.broadcast %cst_74 : f32 to vector<2x32xf32>
    %499 = arith.subf %498, %491 : vector<2x32xf32>
    %500 = arith.mulf %499, %497 : vector<2x32xf32>
    %501 = arith.mulf %491, %471 : vector<2x32xf32>
    %502 = arith.addf %500, %501 : vector<2x32xf32>
    %503 = vector.extract_strided_slice %28 {offsets = [0, 3, 0], sizes = [2, 1, 96], strides = [1, 1, 1]} : vector<2x8x96xf32> to vector<2x1x96xf32>
    %504 = vector.shape_cast %503 : vector<2x1x96xf32> to vector<2x96xf32>
    %505 = arith.truncf %502 : vector<2x32xf32> to vector<2x32xbf16>
    %cst_75 = arith.constant dense<0.000000e+00> : vector<2x96xf32>
    %506 = tpu.matmul %505, %35, %cst_75 {dimension_numbers = #tpu.dot_dimension_numbers<[1], [0], [0], [1], [0, 0, 1, 1], [], []>} : vector<2x32xbf16>, vector<32x96xbf16>, vector<2x96xf32> -> vector<2x96xf32>
    %507 = vector.extract_strided_slice %504 {offsets = [0, 0], sizes = [2, 32], strides = [1, 1]} : vector<2x96xf32> to vector<2x32xf32>
    %508 = vector.extract_strided_slice %506 {offsets = [0, 0], sizes = [2, 32], strides = [1, 1]} : vector<2x96xf32> to vector<2x32xf32>
    %509 = arith.addf %507, %508 : vector<2x32xf32>
    %510 = arith.negf %509 : vector<2x32xf32>
    %511 = math.exp %510 : vector<2x32xf32>
    %cst_76 = arith.constant 1.000000e+00 : f32
    %512 = vector.broadcast %cst_76 : f32 to vector<2x32xf32>
    %513 = arith.addf %512, %511 : vector<2x32xf32>
    %514 = arith.divf %512, %513 : vector<2x32xf32>
    %515 = vector.extract_strided_slice %504 {offsets = [0, 32], sizes = [2, 32], strides = [1, 1]} : vector<2x96xf32> to vector<2x32xf32>
    %516 = vector.extract_strided_slice %506 {offsets = [0, 32], sizes = [2, 32], strides = [1, 1]} : vector<2x96xf32> to vector<2x32xf32>
    %517 = arith.addf %515, %516 : vector<2x32xf32>
    %518 = arith.negf %517 : vector<2x32xf32>
    %519 = math.exp %518 : vector<2x32xf32>
    %cst_77 = arith.constant 1.000000e+00 : f32
    %520 = vector.broadcast %cst_77 : f32 to vector<2x32xf32>
    %521 = arith.addf %520, %519 : vector<2x32xf32>
    %522 = arith.divf %520, %521 : vector<2x32xf32>
    %523 = vector.extract_strided_slice %504 {offsets = [0, 64], sizes = [2, 32], strides = [1, 1]} : vector<2x96xf32> to vector<2x32xf32>
    %524 = vector.extract_strided_slice %506 {offsets = [0, 64], sizes = [2, 32], strides = [1, 1]} : vector<2x96xf32> to vector<2x32xf32>
    %525 = arith.addf %524, %41 : vector<2x32xf32>
    %526 = arith.mulf %514, %525 : vector<2x32xf32>
    %527 = arith.addf %523, %526 : vector<2x32xf32>
    %528 = math.tanh %527 : vector<2x32xf32>
    %cst_78 = arith.constant 1.000000e+00 : f32
    %529 = vector.broadcast %cst_78 : f32 to vector<2x32xf32>
    %530 = arith.subf %529, %522 : vector<2x32xf32>
    %531 = arith.mulf %530, %528 : vector<2x32xf32>
    %532 = arith.mulf %522, %502 : vector<2x32xf32>
    %533 = arith.addf %531, %532 : vector<2x32xf32>
    %534 = vector.extract_strided_slice %28 {offsets = [0, 4, 0], sizes = [2, 1, 96], strides = [1, 1, 1]} : vector<2x8x96xf32> to vector<2x1x96xf32>
    %535 = vector.shape_cast %534 : vector<2x1x96xf32> to vector<2x96xf32>
    %536 = arith.truncf %533 : vector<2x32xf32> to vector<2x32xbf16>
    %cst_79 = arith.constant dense<0.000000e+00> : vector<2x96xf32>
    %537 = tpu.matmul %536, %35, %cst_79 {dimension_numbers = #tpu.dot_dimension_numbers<[1], [0], [0], [1], [0, 0, 1, 1], [], []>} : vector<2x32xbf16>, vector<32x96xbf16>, vector<2x96xf32> -> vector<2x96xf32>
    %538 = vector.extract_strided_slice %535 {offsets = [0, 0], sizes = [2, 32], strides = [1, 1]} : vector<2x96xf32> to vector<2x32xf32>
    %539 = vector.extract_strided_slice %537 {offsets = [0, 0], sizes = [2, 32], strides = [1, 1]} : vector<2x96xf32> to vector<2x32xf32>
    %540 = arith.addf %538, %539 : vector<2x32xf32>
    %541 = arith.negf %540 : vector<2x32xf32>
    %542 = math.exp %541 : vector<2x32xf32>
    %cst_80 = arith.constant 1.000000e+00 : f32
    %543 = vector.broadcast %cst_80 : f32 to vector<2x32xf32>
    %544 = arith.addf %543, %542 : vector<2x32xf32>
    %545 = arith.divf %543, %544 : vector<2x32xf32>
    %546 = vector.extract_strided_slice %535 {offsets = [0, 32], sizes = [2, 32], strides = [1, 1]} : vector<2x96xf32> to vector<2x32xf32>
    %547 = vector.extract_strided_slice %537 {offsets = [0, 32], sizes = [2, 32], strides = [1, 1]} : vector<2x96xf32> to vector<2x32xf32>
    %548 = arith.addf %546, %547 : vector<2x32xf32>
    %549 = arith.negf %548 : vector<2x32xf32>
    %550 = math.exp %549 : vector<2x32xf32>
    %cst_81 = arith.constant 1.000000e+00 : f32
    %551 = vector.broadcast %cst_81 : f32 to vector<2x32xf32>
    %552 = arith.addf %551, %550 : vector<2x32xf32>
    %553 = arith.divf %551, %552 : vector<2x32xf32>
    %554 = vector.extract_strided_slice %535 {offsets = [0, 64], sizes = [2, 32], strides = [1, 1]} : vector<2x96xf32> to vector<2x32xf32>
    %555 = vector.extract_strided_slice %537 {offsets = [0, 64], sizes = [2, 32], strides = [1, 1]} : vector<2x96xf32> to vector<2x32xf32>
    %556 = arith.addf %555, %41 : vector<2x32xf32>
    %557 = arith.mulf %545, %556 : vector<2x32xf32>
    %558 = arith.addf %554, %557 : vector<2x32xf32>
    %559 = math.tanh %558 : vector<2x32xf32>
    %cst_82 = arith.constant 1.000000e+00 : f32
    %560 = vector.broadcast %cst_82 : f32 to vector<2x32xf32>
    %561 = arith.subf %560, %553 : vector<2x32xf32>
    %562 = arith.mulf %561, %559 : vector<2x32xf32>
    %563 = arith.mulf %553, %533 : vector<2x32xf32>
    %564 = arith.addf %562, %563 : vector<2x32xf32>
    %565 = vector.extract_strided_slice %28 {offsets = [0, 5, 0], sizes = [2, 1, 96], strides = [1, 1, 1]} : vector<2x8x96xf32> to vector<2x1x96xf32>
    %566 = vector.shape_cast %565 : vector<2x1x96xf32> to vector<2x96xf32>
    %567 = arith.truncf %564 : vector<2x32xf32> to vector<2x32xbf16>
    %cst_83 = arith.constant dense<0.000000e+00> : vector<2x96xf32>
    %568 = tpu.matmul %567, %35, %cst_83 {dimension_numbers = #tpu.dot_dimension_numbers<[1], [0], [0], [1], [0, 0, 1, 1], [], []>} : vector<2x32xbf16>, vector<32x96xbf16>, vector<2x96xf32> -> vector<2x96xf32>
    %569 = vector.extract_strided_slice %566 {offsets = [0, 0], sizes = [2, 32], strides = [1, 1]} : vector<2x96xf32> to vector<2x32xf32>
    %570 = vector.extract_strided_slice %568 {offsets = [0, 0], sizes = [2, 32], strides = [1, 1]} : vector<2x96xf32> to vector<2x32xf32>
    %571 = arith.addf %569, %570 : vector<2x32xf32>
    %572 = arith.negf %571 : vector<2x32xf32>
    %573 = math.exp %572 : vector<2x32xf32>
    %cst_84 = arith.constant 1.000000e+00 : f32
    %574 = vector.broadcast %cst_84 : f32 to vector<2x32xf32>
    %575 = arith.addf %574, %573 : vector<2x32xf32>
    %576 = arith.divf %574, %575 : vector<2x32xf32>
    %577 = vector.extract_strided_slice %566 {offsets = [0, 32], sizes = [2, 32], strides = [1, 1]} : vector<2x96xf32> to vector<2x32xf32>
    %578 = vector.extract_strided_slice %568 {offsets = [0, 32], sizes = [2, 32], strides = [1, 1]} : vector<2x96xf32> to vector<2x32xf32>
    %579 = arith.addf %577, %578 : vector<2x32xf32>
    %580 = arith.negf %579 : vector<2x32xf32>
    %581 = math.exp %580 : vector<2x32xf32>
    %cst_85 = arith.constant 1.000000e+00 : f32
    %582 = vector.broadcast %cst_85 : f32 to vector<2x32xf32>
    %583 = arith.addf %582, %581 : vector<2x32xf32>
    %584 = arith.divf %582, %583 : vector<2x32xf32>
    %585 = vector.extract_strided_slice %566 {offsets = [0, 64], sizes = [2, 32], strides = [1, 1]} : vector<2x96xf32> to vector<2x32xf32>
    %586 = vector.extract_strided_slice %568 {offsets = [0, 64], sizes = [2, 32], strides = [1, 1]} : vector<2x96xf32> to vector<2x32xf32>
    %587 = arith.addf %586, %41 : vector<2x32xf32>
    %588 = arith.mulf %576, %587 : vector<2x32xf32>
    %589 = arith.addf %585, %588 : vector<2x32xf32>
    %590 = math.tanh %589 : vector<2x32xf32>
    %cst_86 = arith.constant 1.000000e+00 : f32
    %591 = vector.broadcast %cst_86 : f32 to vector<2x32xf32>
    %592 = arith.subf %591, %584 : vector<2x32xf32>
    %593 = arith.mulf %592, %590 : vector<2x32xf32>
    %594 = arith.mulf %584, %564 : vector<2x32xf32>
    %595 = arith.addf %593, %594 : vector<2x32xf32>
    %596 = vector.extract_strided_slice %28 {offsets = [0, 6, 0], sizes = [2, 1, 96], strides = [1, 1, 1]} : vector<2x8x96xf32> to vector<2x1x96xf32>
    %597 = vector.shape_cast %596 : vector<2x1x96xf32> to vector<2x96xf32>
    %598 = arith.truncf %595 : vector<2x32xf32> to vector<2x32xbf16>
    %cst_87 = arith.constant dense<0.000000e+00> : vector<2x96xf32>
    %599 = tpu.matmul %598, %35, %cst_87 {dimension_numbers = #tpu.dot_dimension_numbers<[1], [0], [0], [1], [0, 0, 1, 1], [], []>} : vector<2x32xbf16>, vector<32x96xbf16>, vector<2x96xf32> -> vector<2x96xf32>
    %600 = vector.extract_strided_slice %597 {offsets = [0, 0], sizes = [2, 32], strides = [1, 1]} : vector<2x96xf32> to vector<2x32xf32>
    %601 = vector.extract_strided_slice %599 {offsets = [0, 0], sizes = [2, 32], strides = [1, 1]} : vector<2x96xf32> to vector<2x32xf32>
    %602 = arith.addf %600, %601 : vector<2x32xf32>
    %603 = arith.negf %602 : vector<2x32xf32>
    %604 = math.exp %603 : vector<2x32xf32>
    %cst_88 = arith.constant 1.000000e+00 : f32
    %605 = vector.broadcast %cst_88 : f32 to vector<2x32xf32>
    %606 = arith.addf %605, %604 : vector<2x32xf32>
    %607 = arith.divf %605, %606 : vector<2x32xf32>
    %608 = vector.extract_strided_slice %597 {offsets = [0, 32], sizes = [2, 32], strides = [1, 1]} : vector<2x96xf32> to vector<2x32xf32>
    %609 = vector.extract_strided_slice %599 {offsets = [0, 32], sizes = [2, 32], strides = [1, 1]} : vector<2x96xf32> to vector<2x32xf32>
    %610 = arith.addf %608, %609 : vector<2x32xf32>
    %611 = arith.negf %610 : vector<2x32xf32>
    %612 = math.exp %611 : vector<2x32xf32>
    %cst_89 = arith.constant 1.000000e+00 : f32
    %613 = vector.broadcast %cst_89 : f32 to vector<2x32xf32>
    %614 = arith.addf %613, %612 : vector<2x32xf32>
    %615 = arith.divf %613, %614 : vector<2x32xf32>
    %616 = vector.extract_strided_slice %597 {offsets = [0, 64], sizes = [2, 32], strides = [1, 1]} : vector<2x96xf32> to vector<2x32xf32>
    %617 = vector.extract_strided_slice %599 {offsets = [0, 64], sizes = [2, 32], strides = [1, 1]} : vector<2x96xf32> to vector<2x32xf32>
    %618 = arith.addf %617, %41 : vector<2x32xf32>
    %619 = arith.mulf %607, %618 : vector<2x32xf32>
    %620 = arith.addf %616, %619 : vector<2x32xf32>
    %621 = math.tanh %620 : vector<2x32xf32>
    %cst_90 = arith.constant 1.000000e+00 : f32
    %622 = vector.broadcast %cst_90 : f32 to vector<2x32xf32>
    %623 = arith.subf %622, %615 : vector<2x32xf32>
    %624 = arith.mulf %623, %621 : vector<2x32xf32>
    %625 = arith.mulf %615, %595 : vector<2x32xf32>
    %626 = arith.addf %624, %625 : vector<2x32xf32>
    %c0_91 = arith.constant 0 : index
    %c0_92 = arith.constant 0 : index
    %627 = vector.load %arg17[%c0_91, %c0_92] : memref<2x32xf32, #tpu.memory_space<vmem>>, vector<2x32xf32>
    tpu.vector_store %arg17[%c0_91, %c0_92], %626 {strides = array<i32>} : memref<2x32xf32, #tpu.memory_space<vmem>>, vector<2x32xf32>,
    %628 = vector.shape_cast %371 : vector<2x32xf32> to vector<2x1x32xf32>
    %629 = vector.shape_cast %409 : vector<2x32xf32> to vector<2x1x32xf32>
    %630 = vector.shape_cast %440 : vector<2x32xf32> to vector<2x1x32xf32>
    %631 = vector.shape_cast %471 : vector<2x32xf32> to vector<2x1x32xf32>
    %632 = vector.shape_cast %502 : vector<2x32xf32> to vector<2x1x32xf32>
    %633 = vector.shape_cast %533 : vector<2x32xf32> to vector<2x1x32xf32>
    %634 = vector.shape_cast %564 : vector<2x32xf32> to vector<2x1x32xf32>
    %635 = vector.shape_cast %595 : vector<2x32xf32> to vector<2x1x32xf32>
    %636 = tpu.concatenate %628, %629, %630, %631, %632, %633, %634, %635 in 1 : vector<2x1x32xf32>, vector<2x1x32xf32>, vector<2x1x32xf32>, vector<2x1x32xf32>, vector<2x1x32xf32>, vector<2x1x32xf32>, vector<2x1x32xf32>, vector<2x1x32xf32> -> vector<2x8x32xf32>
    %637 = vector.shape_cast %636 : vector<2x8x32xf32> to vector<16x32xf32>
    %638 = vector.shape_cast %409 : vector<2x32xf32> to vector<2x1x32xf32>
    %639 = vector.shape_cast %440 : vector<2x32xf32> to vector<2x1x32xf32>
    %640 = vector.shape_cast %471 : vector<2x32xf32> to vector<2x1x32xf32>
    %641 = vector.shape_cast %502 : vector<2x32xf32> to vector<2x1x32xf32>
    %642 = vector.shape_cast %533 : vector<2x32xf32> to vector<2x1x32xf32>
    %643 = vector.shape_cast %564 : vector<2x32xf32> to vector<2x1x32xf32>
    %644 = vector.shape_cast %595 : vector<2x32xf32> to vector<2x1x32xf32>
    %645 = vector.shape_cast %626 : vector<2x32xf32> to vector<2x1x32xf32>
    %646 = tpu.concatenate %638, %639, %640, %641, %642, %643, %644, %645 in 1 : vector<2x1x32xf32>, vector<2x1x32xf32>, vector<2x1x32xf32>, vector<2x1x32xf32>, vector<2x1x32xf32>, vector<2x1x32xf32>, vector<2x1x32xf32>, vector<2x1x32xf32> -> vector<2x8x32xf32>
    %647 = vector.shape_cast %646 : vector<2x8x32xf32> to vector<16x32xf32>
    %648 = arith.truncf %637 : vector<16x32xf32> to vector<16x32xbf16>
    %c0_93 = arith.constant 0 : index
    %c0_94 = arith.constant 0 : index
    %649 = vector.load %arg11[%c0_93, %c0_94] : memref<32x32xbf16, #tpu.memory_space<vmem>>, vector<32x32xbf16>
    %cst_95 = arith.constant dense<0.000000e+00> : vector<16x32xf32>
    %650 = tpu.matmul %648, %649, %cst_95 {dimension_numbers = #tpu.dot_dimension_numbers<[1], [0], [0], [1], [0, 0, 1, 1], [], []>} : vector<16x32xbf16>, vector<32x32xbf16>, vector<16x32xf32> -> vector<16x32xf32>
    %651 = vector.shape_cast %650 : vector<16x32xf32> to vector<2x8x32xf32>
    "tpu.trace_start"() <{level = 10 : i32, message = "bth,bsh->bts"}> : () -> ()
    %cst_96 = arith.constant dense<0.000000e+00> : vector<2x8x8xf32>
    %652 = tpu.matmul %651, %380, %cst_96 {dimension_numbers = #tpu.dot_dimension_numbers<[2], [2], [1], [1], [0, 0, 0, 1, 1, 1], [0], [0]>} : vector<2x8x32xf32>, vector<2x8x32xf32>, vector<2x8x8xf32> -> vector<2x8x8xf32>
    "tpu.trace_stop"() : () -> ()
    %cst_97 = arith.constant dense<0xFF800000> : vector<2x8xf32>
    %653 = vector.multi_reduction <maximumf>, %652, %cst_97 [2] : vector<2x8x8xf32> to vector<2x8xf32>
    %654 = vector.shape_cast %653 : vector<2x8xf32> to vector<2x8x1xf32>
    %655 = vector.broadcast %654 : vector<2x8x1xf32> to vector<2x8x8xf32>
    %656 = arith.subf %652, %655 : vector<2x8x8xf32>
    %657 = math.exp %656 : vector<2x8x8xf32>
    %cst_98 = arith.constant dense<0.000000e+00> : vector<2x8xf32>
    %658 = vector.multi_reduction <add>, %657, %cst_98 [2] : vector<2x8x8xf32> to vector<2x8xf32>
    %659 = vector.shape_cast %658 : vector<2x8xf32> to vector<2x8x1xf32>
    %660 = vector.broadcast %659 : vector<2x8x1xf32> to vector<2x8x8xf32>
    %661 = arith.divf %657, %660 : vector<2x8x8xf32>
    "tpu.trace_start"() <{level = 10 : i32, message = "bts,bsh->bth"}> : () -> ()
    %cst_99 = arith.constant dense<0.000000e+00> : vector<2x8x32xf32>
    %662 = tpu.matmul %661, %380, %cst_99 {dimension_numbers = #tpu.dot_dimension_numbers<[2], [1], [1], [2], [0, 0, 0, 1, 1, 2], [0], [0]>} : vector<2x8x8xf32>, vector<2x8x32xf32>, vector<2x8x32xf32> -> vector<2x8x32xf32>
    "tpu.trace_stop"() : () -> ()
    %663 = vector.shape_cast %662 : vector<2x8x32xf32> to vector<16x32xf32>
    %664 = arith.truncf %647 : vector<16x32xf32> to vector<16x32xbf16>
    %c0_100 = arith.constant 0 : index
    %c0_101 = arith.constant 0 : index
    %665 = vector.load %arg12[%c0_100, %c0_101] : memref<32x32xbf16, #tpu.memory_space<vmem>>, vector<32x32xbf16>
    %cst_102 = arith.constant dense<0.000000e+00> : vector<16x32xf32>
    %666 = tpu.matmul %664, %665, %cst_102 {dimension_numbers = #tpu.dot_dimension_numbers<[1], [0], [0], [1], [0, 0, 1, 1], [], []>} : vector<16x32xbf16>, vector<32x32xbf16>, vector<16x32xf32> -> vector<16x32xf32>
    %667 = arith.truncf %663 : vector<16x32xf32> to vector<16x32xbf16>
    %c0_103 = arith.constant 0 : index
    %c0_104 = arith.constant 0 : index
    %668 = vector.load %arg13[%c0_103, %c0_104] : memref<32x32xbf16, #tpu.memory_space<vmem>>, vector<32x32xbf16>
    %cst_105 = arith.constant dense<0.000000e+00> : vector<16x32xf32>
    %669 = tpu.matmul %667, %668, %cst_105 {dimension_numbers = #tpu.dot_dimension_numbers<[1], [0], [0], [1], [0, 0, 1, 1], [], []>} : vector<16x32xbf16>, vector<32x32xbf16>, vector<16x32xf32> -> vector<16x32xf32>
    %670 = arith.addf %666, %669 : vector<16x32xf32>
    %671 = math.tanh %670 : vector<16x32xf32>
    %672 = arith.truncf %671 : vector<16x32xf32> to vector<16x32xbf16>
    %c0_106 = arith.constant 0 : index
    %c0_107 = arith.constant 0 : index
    %673 = vector.load %arg14[%c0_106, %c0_107] : memref<32x32xbf16, #tpu.memory_space<vmem>>, vector<32x32xbf16>
    %cst_108 = arith.constant dense<0.000000e+00> : vector<16x32xf32>
    %674 = tpu.matmul %672, %673, %cst_108 {dimension_numbers = #tpu.dot_dimension_numbers<[1], [0], [0], [1], [0, 0, 1, 1], [], []>} : vector<16x32xbf16>, vector<32x32xbf16>, vector<16x32xf32> -> vector<16x32xf32>
    %c0_109 = arith.constant 0 : index
    %c0_110 = arith.constant 0 : index
    %675 = vector.load %arg15[%c0_109, %c0_110] : memref<1x32xf32, #tpu.memory_space<vmem>>, vector<1x32xf32>
    %676 = vector.broadcast %675 : vector<1x32xf32> to vector<16x32xf32>
    %677 = arith.addf %674, %676 : vector<16x32xf32>
    %cst_111 = arith.constant dense<0xFF800000> : vector<16xf32>
    %678 = vector.multi_reduction <maximumf>, %677, %cst_111 [1] : vector<16x32xf32> to vector<16xf32>
    %679 = vector.shape_cast %678 : vector<16xf32> to vector<16x1xf32>
    %680 = vector.broadcast %679 : vector<16x1xf32> to vector<16x32xf32>
    %681 = arith.subf %677, %680 : vector<16x32xf32>
    %682 = math.exp %681 : vector<16x32xf32>
    %cst_112 = arith.constant dense<0.000000e+00> : vector<16xf32>
    %683 = vector.multi_reduction <add>, %682, %cst_112 [1] : vector<16x32xf32> to vector<16xf32>
    %684 = vector.shape_cast %683 : vector<16xf32> to vector<16x1xf32>
    %685 = math.log %684 : vector<16x1xf32>
    %686 = arith.addf %679, %685 : vector<16x1xf32>
    %687 = vector.broadcast %686 : vector<16x1xf32> to vector<16x32xf32>
    %688 = arith.subf %677, %687 : vector<16x32xf32>
    %689 = vector.shape_cast %688 : vector<16x32xf32> to vector<2x8x32xf32>
    %c0_113 = arith.constant 0 : index
    %c0_114 = arith.constant 0 : index
    %c0_115 = arith.constant 0 : index
    %690 = vector.load %arg16[%c0_113, %c0_114, %c0_115] : memref<2x8x32xf32, #tpu.memory_space<vmem>>, vector<2x8x32xf32>
    tpu.vector_store %arg16[%c0_113, %c0_114, %c0_115], %689 {strides = array<i32>} : memref<2x8x32xf32, #tpu.memory_space<vmem>>, vector<2x8x32xf32>,
    return
  }
}

</mosaic_0001>

<bundles_post_ra>
// kernel: seq2seq_forward.1
= control target key start
LH: loop header
LB: loop body
LE: loop exit
PB: predicated region body
PF: predicated region fallthrough
CT: control target
= control target key end

     0   :  { %s5325_s0 = inlined_call_operand.vmem [shape: s32[16,1], index: 0, kind: input, shape index: {}]   ;;  %s5326_s1 = inlined_call_operand.vmem [shape: s32[16,1], index: 1, kind: input, shape index: {}]   ;;  %s5327_s2 = inlined_call_operand.vmem [shape: s32[2,1], index: 2, kind: input, shape index: {}]   ;;  %s5328_s3 = inlined_call_operand.vmem [shape: bf16[32,96], index: 3, kind: input, shape index: {}]   ;;  %s5329_s4 = inlined_call_operand.vmem [shape: bf16[32,96], index: 4, kind: input, shape index: {}]   ;;  %s5330_s5 = inlined_call_operand.vmem [shape: f32[1,96], index: 5, kind: input, shape index: {}]   ;;  %s5331_s6 = inlined_call_operand.hbm [shape: f32[1,32], index: 6, kind: input, shape index: {}]   ;;  %s5332_s7 = inlined_call_operand.hbm [shape: bf16[32,96], index: 7, kind: input, shape index: {}]   ;;  %s5333_s8 = inlined_call_operand.vmem [shape: bf16[32,96], index: 8, kind: input, shape index: {}]   ;;  %s5334_s9 = inlined_call_operand.hbm [shape: f32[1,96], index: 9, kind: input, shape index: {}]   ;;  %s5335_s10 = inlined_call_operand.hbm [shape: f32[1,32], index: 10, kind: input, shape index: {}]   ;;  %s5336_s11 = inlined_call_operand.hbm [shape: bf16[32,32], index: 11, kind: input, shape index: {}]   ;;  %s5337_s12 = inlined_call_operand.hbm [shape: bf16[32,32], index: 12, kind: input, shape index: {}]   ;;  %s5338_s13 = inlined_call_operand.hbm [shape: bf16[32,32], index: 13, kind: input, shape index: {}]   ;;  %s5339_s14 = inlined_call_operand.hbm [shape: bf16[32,32], index: 14, kind: input, shape index: {}]   ;;  %s5340_s15 = inlined_call_operand.vmem [shape: f32[1,32], index: 15, kind: input, shape index: {}]   ;;  %s5341_s16 = inlined_call_operand.hbm [shape: f32[2,8,32], index: 16, kind: output, shape index: {0}]   ;;  %s5342_s17 = inlined_call_operand.hbm [shape: f32[2,32], index: 17, kind: output, shape index: {1}]  }
   0x1   :  { %5345 = sst [smem:[#allocation26_spill]] %s5325_s0 }
   0x2   :  { %5346 = sst [smem:[#allocation27_spill]] %s5326_s1 }
   0x3   :  { %23 = vsyncpa [#allocation3], 0 }
   0x4   :  { %24 = vsyncpa [#allocation6], 0 }
   0x5   :  { %25 = vsyncpa [#allocation9], 0 }
   0x6   :  { %26 = vsyncpa [#allocation12], 0 }
   0x7   :  { %27 = vsyncpa [#allocation15], 0 }
   0x8   :  { %28 = vsyncpa [#allocation4], 0 }
   0x9   :  { %29 = vsyncpa [#allocation18], 0  ;;  %s4301_s24 = smov [#allocation5]  }
   0xa   :  { %s57_s25 = sshll.u32 %s4301_s24, 4  ;;  %s58_s25 = int_to_ptr.vmem [resolvable:$true] %s57_s25 }
   0xb   :  { %s4095_s26 = scalar_lea.vmem %s58_s25, 256  ;;  %p4100_p1 = scmp.lt.s32.totalorder %s58_s25, %s58_s25 }
   0xc   :  { %p4096_p0 = scmp.ne.s32.totalorder %s58_s25, %s4095_s26  ;;  %p4101_p2 = scmp.lt.s32.totalorder %s4095_s26, %s4095_s26 }
   0xe   :  { %p4102_p3 = por %p4101_p2, %p4100_p1 }
  0x10   :  { %p4103_p4 = pnand %p4102_p3, %p4096_p0 }
  0x12   :  { %4106 = shalt.err (!%p4103_p4)
}
  0x13   :  { %s4302_s27 = smov 64   ;;  %s4303_s28 = smov 4  }
  0x14   :  { %63 = dma.hbm_to_vmem [thread:$0]  %s5332_s7, 256, %s58_s25, [#allocation6], %s4302_s27, %s4302_s27, %s4303_s28  }
  0x15   :  { %s4304_s30 = smov [#allocation8]   ;;  %s4305_s19 = smov [#allocation11]  }
  0x16   :  { %s82_s18 = sshll.u32 %s4304_s30, 4  ;;  %s103_s1 = sshll.u32 %s4305_s19, 4  ;;  %s83_s18 = int_to_ptr.vmem [resolvable:$true] %s82_s18  ;;  %s104_s1 = int_to_ptr.vmem [resolvable:$true] %s103_s1 }
  0x17   :  { %s4115_s20 = scalar_lea.vmem %s83_s18, 16  ;;  %s4119_s21 = scalar_lea.vmem %s83_s18, 32 }
  0x18   :  { %p4116_p5 = scmp.ne.s32.totalorder %s83_s18, %s4115_s20  ;;  %p4120_p6 = scmp.lt.s32.totalorder %s83_s18, %s83_s18 }
  0x19   :  { %p4121_p7 = scmp.lt.s32.totalorder %s4119_s21, %s4115_s20 }
  0x1b   :  { %p4122_p8 = por %p4121_p7, %p4120_p6 }
  0x1d   :  { %p4123_p9 = pnand %p4122_p8, %p4116_p5 }
  0x1f   :  { %4126 = shalt.err (!%p4123_p9)
}
  0x20   :  { %85 = dma.hbm_to_vmem [thread:$0]  %s5335_s10, 16, %s83_s18, [#allocation9]  }
  0x21   :  { %s4135_s24 = scalar_lea.vmem %s104_s1, 256  ;;  %p4140_p11 = scmp.lt.s32.totalorder %s104_s1, %s104_s1 }
  0x22   :  { %p4136_p10 = scmp.ne.s32.totalorder %s104_s1, %s4135_s24  ;;  %p4141_p12 = scmp.lt.s32.totalorder %s4135_s24, %s4135_s24 }
  0x24   :  { %p4142_p13 = por %p4141_p12, %p4140_p11 }
  0x26   :  { %p4143_p0 = pnand %p4142_p13, %p4136_p10 }
  0x28   :  { %4146 = shalt.err (!%p4143_p0)
}
  0x29   :  { %109 = dma.hbm_to_vmem [thread:$0]  %s5337_s12, 256, %s104_s1, [#allocation12], %s4302_s27, %s4302_s27, %s4303_s28  }
  0x2a   :  { %s4306_s26 = smov [#allocation2]   ;;  %s4307_s0 = smov [#allocation7]  }
  0x2b   :  { %s48_s29 = sshll.u32 %s4306_s26, 4  ;;  %s72_s10 = sshll.u32 %s4307_s0, 4  ;;  %s49_s29 = int_to_ptr.vmem [resolvable:$true] %s48_s29  ;;  %s73_s10 = int_to_ptr.vmem [resolvable:$true] %s72_s10 }
  0x2c   :  { %s4155_s30 = scalar_lea.vmem %s49_s29, 16  ;;  %s4159_s18 = scalar_lea.vmem %s49_s29, 32 }
  0x2d   :  { %p4156_p1 = scmp.ne.s32.totalorder %s49_s29, %s4155_s30  ;;  %p4160_p2 = scmp.lt.s32.totalorder %s49_s29, %s49_s29 }
  0x2e   :  { %p4161_p3 = scmp.lt.s32.totalorder %s4159_s18, %s4155_s30 }
  0x30   :  { %p4162_p4 = por %p4161_p3, %p4160_p2 }
  0x32   :  { %p4163_p5 = pnand %p4162_p4, %p4156_p1 }
  0x34   :  { %4166 = shalt.err (!%p4163_p5)
}
  0x35   :  { %51 = dma.hbm_to_vmem [thread:$0]  %s5331_s6, 16, %s49_s29, [#allocation3]  }
  0x36   :  { %s4175_s21 = scalar_lea.vmem %s73_s10, 16  ;;  %s4179_s12 = scalar_lea.vmem %s73_s10, 32 }
  0x37   :  { %p4176_p6 = scmp.ne.s32.totalorder %s73_s10, %s4175_s21  ;;  %p4180_p7 = scmp.lt.s32.totalorder %s73_s10, %s73_s10 }
  0x38   :  { %p4181_p8 = scmp.lt.s32.totalorder %s4179_s12, %s4175_s21 }
  0x3a   :  { %p4182_p9 = por %p4181_p8, %p4180_p7 }
  0x3c   :  { %p4183_p10 = pnand %p4182_p9, %p4176_p6 }
  0x3e   :  { %4186 = shalt.err (!%p4183_p10)
}
  0x3f   :  { %75 = dma.hbm_to_vmem [thread:$0]  %s5334_s9, 16, %s73_s10, [#allocation6]  }
  0x40   :  { %s4308_s23 = smov [#allocation10]   ;;  %s4309_s7 = smov [#allocation13]  }
  0x41   :  { %s91_s24 = sshll.u32 %s4308_s23, 4  ;;  %s115_s25 = sshll.u32 %s4309_s7, 4  ;;  %s92_s24 = int_to_ptr.vmem [resolvable:$true] %s91_s24  ;;  %s116_s25 = int_to_ptr.vmem [resolvable:$true] %s115_s25 }
  0x42   :  { %s4195_s26 = scalar_lea.vmem %s92_s24, 256  ;;  %p4200_p12 = scmp.lt.s32.totalorder %s92_s24, %s92_s24 }
  0x43   :  { %p4196_p11 = scmp.ne.s32.totalorder %s92_s24, %s4195_s26  ;;  %p4201_p13 = scmp.lt.s32.totalorder %s4195_s26, %s4195_s26 }
  0x45   :  { %p4202_p0 = por %p4201_p13, %p4200_p12 }
  0x47   :  { %p4203_p1 = pnand %p4202_p0, %p4196_p11 }
  0x49   :  { %4206 = shalt.err (!%p4203_p1)
}
  0x4a   :  { %97 = dma.hbm_to_vmem [thread:$0]  %s5336_s11, 256, %s92_s24, [#allocation9], %s4302_s27, %s4302_s27, %s4303_s28  }
  0x4b   :  { %s4215_s9 = scalar_lea.vmem %s116_s25, 256  ;;  %p4220_p3 = scmp.lt.s32.totalorder %s116_s25, %s116_s25 }
  0x4c   :  { %p4216_p2 = scmp.ne.s32.totalorder %s116_s25, %s4215_s9  ;;  %p4221_p4 = scmp.lt.s32.totalorder %s4215_s9, %s4215_s9 }
  0x4e   :  { %p4222_p5 = por %p4221_p4, %p4220_p3 }
  0x50   :  { %p4223_p6 = pnand %p4222_p5, %p4216_p2 }
  0x52   :  { %4226 = shalt.err (!%p4223_p6)
}
  0x53   :  { %121 = dma.hbm_to_vmem [thread:$0]  %s5338_s13, 256, %s116_s25, [#allocation12], %s4302_s27, %s4302_s27, %s4303_s28  }
  0x54   :  { %s4310_s30 = smov [#allocation14]  }
  0x55   :  { %s127_s18 = sshll.u32 %s4310_s30, 4  ;;  %s128_s18 = int_to_ptr.vmem [resolvable:$true] %s127_s18 }
  0x56   :  { %s4235_s19 = scalar_lea.vmem %s128_s18, 256  ;;  %p4240_p8 = scmp.lt.s32.totalorder %s128_s18, %s128_s18 }
  0x57   :  { %p4236_p7 = scmp.ne.s32.totalorder %s128_s18, %s4235_s19  ;;  %p4241_p9 = scmp.lt.s32.totalorder %s4235_s19, %s4235_s19 }
  0x59   :  { %p4242_p10 = por %p4241_p9, %p4240_p8 }
  0x5b   :  { %p4243_p11 = pnand %p4242_p10, %p4236_p7 }
  0x5d   :  { %4246 = shalt.err (!%p4243_p11)
}
  0x5e   :  { %133 = dma.hbm_to_vmem [thread:$0]  %s5339_s14, 256, %s128_s18, [#allocation15], %s4302_s27, %s4302_s27, %s4303_s28  }
  0x5f   :  { %4287 = dma.done.wait [#allocation3], 16  }
  0x60   :  { %4288 = vsyncadd [#allocation3], 4294967280 }
  0x61   :  { %4289 = dma.done.wait [#allocation6], 272  }
  0x62   :  { %4290 = vsyncadd [#allocation6], 4294967024 }
  0x63   :  { %4291 = dma.done.wait [#allocation9], 272  }
  0x64   :  { %4292 = vsyncadd [#allocation9], 4294967024 }
  0x65   :  { %4293 = dma.done.wait [#allocation12], 512  }
  0x66   :  { %4294 = vsyncadd [#allocation12], 4294966784 }
  0x67   :  { %4295 = dma.done.wait [#allocation15], 256  }
  0x68   :  { %4296 = vsyncadd [#allocation15], 4294967040  ;;  %v4311_v0 = vmov 0   ;;  %v4312_v1 = vmov 0.0   ;;  %s5347_s28 = sld [smem:[#allocation26_spill]]  ;;  %v3862_v3 = vld [vmem:[%s5328_s3 + $0x8] sm:$0xff]   ;;  %v161_v7 = vlaneseq }
  0x69   :  { %3825 = vset.pattern.permute.xlu0 %v4311_v0  ;;  %3609 = vmatprep.subr.bf16.mxu0 %v4312_v1  ;;  %v3863_v5 = vld [vmem:[%s5328_s3] sm:$0xff]   ;;  %vm4313_vm0 = vmmov 0   ;;  %vm217_vm3 = vcmask 261120   ;;  %v4481_v13 = vld [vmem:[%s5329_s4 + $0x8] sm:$0xff]   ;;  %s5348_s0 = sld [smem:[#allocation27_spill]]  ;;  %vm473_vm5 = vcmask 1041409  }
  0x6a   :  { %3826 = vset.pattern.permute.xlu1 %v4311_v0  ;;  %3617 = vmatprep.subr.bf16.mxu1 %v4312_v1  ;;  %v3456_v6 = vld [vmem:[#allocation2] ss:$0 sm:$0xff]  ;;  %v4472_v8 = vand.u32 127, %v161_v7  ;;  %v3866_v49 = vld [vmem:[#allocation5 + $0x8] sm:$0xff]   ;;  %v193_v51 = vld [vmem:[#allocation5] sm:$0xff]   ;;  %s4315_s11 = smov 32  }
  0x6b   :  { %3610 = vmatpush3.bf16.msra.mxu0 %v3862_v3  ;;  %3613 = vmatprep.mubr.msk.bf16.mxu0 %vm4313_vm0, %v4312_v1  ;;  %v4488_v15 = vld [vmem:[%s5329_s4] sm:$0xff]   ;;  %vm1718_vm15 = vcmask 1040384  }
  0x6c   :  { %3611 = vmatprep.subr.bf16.mxu0 %v4312_v1  ;;  %3621 = vmatprep.mubr.msk.bf16.mxu1 %vm4313_vm0, %v4312_v1  ;;  %v3448_v27 = vld [vmem:[%s5330_s5] ss:$0 sm:$0xff]  ;;  %s4314_s5 = smov 96  }
  0x6d   :  { %420 = vrot.lane.b32.xlu1 %v3456_v6, %s4302_s27  ;;  %3618 = vmatpush3.bf16.msra.mxu1 %v3866_v49  ;;  %v4527_v54 = vld [vmem:[%s5327_s2] sm:$0x3] }
  0x6e   :  { %v163_v2 = vld [vmem:[%s5347_s28] sm:$0xff]  ;;  %v164_v4 = vld [vmem:[%s5347_s28 + $0x8] sm:$0xff]  ;;  %3619 = vmatprep.subr.bf16.mxu1 %v4312_v1  ;;  %vm462_vm4 = vcmp.gt.s32.totalorder %v4527_v54, 0  ;;  %vm589_vm8 = vcmp.gt.s32.totalorder %v4527_v54, 1  ;;  %vm728_vm9 = vcmp.gt.s32.totalorder %v4527_v54, 2  ;;  %vm869_vm10 = vcmp.gt.s32.totalorder %v4527_v54, 3 }
  0x6f   :  { %166 = vperm.xlu0 %3825, %v163_v2   ;;  %3612 = vmatpush3.bf16.msra.mxu0 %v3863_v5  ;;  %v177_v53 = vld [vmem:[%s5348_s0 + $0x8] sm:$0xff]  ;;  %v176_v55 = vld [vmem:[%s5348_s0] sm:$0xff]  ;;  %v3462_v56 = vsel %vm462_vm4, 1.0, %v4312_v1  ;;  %vm1010_vm11 = vcmp.gt.s32.totalorder %v4527_v54, 4  ;;  %vm1151_vm12 = vcmp.gt.s32.totalorder %v4527_v54, 5  ;;  %vm1292_vm13 = vcmp.gt.s32.totalorder %v4527_v54, 6 }
  0x70   :  { %3625 = vmatprep.subr.bf16.mxu0 %v4312_v1  ;;  %vm1727_vm4 = vcmask 1043456  }
  0x71   :  { %3620 = vmatpush3.bf16.msra.mxu1 %v193_v51 }
  0x72   :  { %3633 = vmatprep.subr.bf16.mxu1 %v4312_v1 }
  0x73   :  { %169 = vperm.xlu0 %3825, %v164_v4  }
  0xdf   :  { %v4501_v20 = vpop.permute.xlu1 %420 }
  0xea   :  { %v167_v9 = vpop.permute.xlu0 %166 }
  0xeb   :  { %vm171_vm1 = vcmp.eq.s32.totalorder %v167_v9, %v4472_v8 }
  0xec   :  { %v173_v11 = vsel %vm171_vm1, 1.0, %v4312_v1  ;;  %vm1721_vm1 = vcmask 1041408  }
  0xee   :  { %v170_v10 = vpop.permute.xlu0 %169 }
  0xef   :  { %vm172_vm2 = vcmp.eq.s32.totalorder %v170_v10, %v4472_v8 }
  0xf0   :  { %v174_v12 = vsel %vm172_vm2, 1.0, %v4312_v1  ;;  %vm1724_vm2 = vcmask 1042432  }
  0xf1   :  { %v175_v14 = vpack.c.bf16 %v174_v12, %v173_v11 }
  0xf3   :  { %3614 = vmatmul.mubr.msk.bf16.vlgmr.msra.gmra.mxu0 %vm217_vm3, %v175_v14 }
  0xf4   :  { %3626 = vmatpush3.bf16.msra.mxu0 %v4481_v13  ;;  %3629 = vmatprep.mubr.msk.bf16.mxu0 %vm4313_vm0, %v4312_v1 }
  0xf5   :  { %3627 = vmatprep.subr.bf16.mxu0 %v4312_v1 }
  0xf8   :  { %3628 = vmatpush3.bf16.msra.mxu0 %v4488_v15 }
  0xf9   :  { %3641 = vmatprep.subr.bf16.mxu0 %v4312_v1 }
  0xfb   :  { %3630 = vmatmul.mubr.bf16.vlgmr.msra.gmra.mxu0 %v4311_v0 }
  0xfc   :  { %3642 = vmatpush3.bf16.msra.mxu0 %v4481_v13  ;;  %3645 = vmatprep.mubr.msk.bf16.mxu0 %vm4313_vm0, %v4312_v1 }
  0xfd   :  { %3643 = vmatprep.subr.bf16.mxu0 %v4312_v1 }
 0x100   :  { %3644 = vmatpush3.bf16.msra.mxu0 %v4488_v15 }
 0x101   :  { %3657 = vmatprep.subr.bf16.mxu0 %v4312_v1 }
 0x1b3   :  { %v255_v16 = vpop.f32.mrf.mxu0 }
 0x1b4   :  { %v4509_v28 = vadd.f32 %v3448_v27, %v255_v16 }
 0x1b5   :  { %v3615_v17 = vpop.f32.mrf.mxu0 }
 0x1b7   :  { %v258_v18 = vpop.f32.mrf.mxu0 }
 0x1b8   :  { %v4511_v30 = vadd.f32 %v3448_v27, %v258_v18 }
 0x1b9   :  { %v3616_v19 = vpop.f32.mrf.mxu0 }
 0x1bb   :  { %v396_v21 = vpop.f32.mrf.mxu0 }
 0x1bc   :  { %v423_v22 = vadd.f32 %v4501_v20, %v396_v21  ;;  %v403_v29 = vrot.slane %v396_v21, 1  ;;  %v406_v31 = vadd.f32 %v396_v21, %v4509_v28 }
 0x1bd   :  { %v3631_v23 = vpop.f32.mrf.mxu0 }
 0x1be   :  { %426 = vrot.lane.b32.xlu0 %v423_v22, %s4302_s27  ;;  %v425_v24 = vrot.slane %v423_v22, 1  ;;  %v407_v32 = vadd.f32 %v403_v29, %v4511_v30  ;;  %v3460_v33 = vmul.f32 -1.442695, %v406_v31 }
 0x1bf   :  { %v399_v25 = vpop.f32.mrf.mxu0 }
 0x1c0   :  { %428 = vrot.lane.b32.xlu1 %v425_v24, %s4302_s27  ;;  %v3461_v34 = vmul.f32 -1.442695, %v407_v32  ;;  %3879 = vpow2.f32 %v3460_v33 }
 0x1c1   :  { %v3632_v26 = vpop.f32.mrf.mxu0 }
 0x1c2   :  { %3881 = vpow2.f32 %v3461_v34 }
 0x1cd   :  { %v3880_v35 = vpop.eup %3879 }
 0x1ce   :  { %v414_v37 = vadd.f32 1.0, %v3880_v35 }
 0x1cf   :  { %v3882_v36 = vpop.eup %3881 }
 0x1d0   :  { %v415_v38 = vadd.f32 1.0, %v3882_v36  ;;  %3883 = vrcp.f32 %v414_v37 }
 0x1d2   :  { %3885 = vrcp.f32 %v415_v38 }
 0x1dd   :  { %v3884_v39 = vpop.eup %3883 }
 0x1de   :  { %v446_v58 = vsub.f32 1.0, %v3884_v39  ;;  %v458_v0 = vmul.f32 0.0, %v3884_v39 }
 0x1df   :  { %v3886_v42 = vpop.eup %3885 }
 0x1e0   :  { %v447_v59 = vsub.f32 1.0, %v3886_v42  ;;  %v459_v62 = vmul.f32 0.0, %v3886_v42 }
 0x230   :  { %v427_v40 = vpop.permute.xlu0 %426 }
 0x231   :  { %v432_v41 = vmul.f32 %v3884_v39, %v427_v40 }
 0x232   :  { %v429_v43 = vpop.permute.xlu1 %428 }
 0x233   :  { %436 = vrot.lane.b32.xlu0 %v432_v41, %s4302_s27  ;;  %v433_v44 = vmul.f32 %v3886_v42, %v429_v43 }
 0x235   :  { %438 = vrot.lane.b32.xlu1 %v433_v44, %s4302_s27 }
 0x2a5   :  { %v437_v45 = vpop.permute.xlu0 %436 }
 0x2a6   :  { %v442_v46 = vadd.f32 %v437_v45, %v4509_v28 }
 0x2a7   :  { %v439_v47 = vpop.permute.xlu1 %438 }
 0x2a8   :  { %3887 = vtanh.f32 %v442_v46  ;;  %v443_v48 = vadd.f32 %v439_v47, %v4511_v30 }
 0x2aa   :  { %3889 = vtanh.f32 %v443_v48 }
 0x2b5   :  { %v3888_v50 = vpop.eup %3887 }
 0x2b6   :  { %450 = vrot.lane.b32.xlu0 %v3888_v50, %s4314_s5 }
 0x2b7   :  { %v3890_v52 = vpop.eup %3889 }
 0x2b8   :  { %452 = vrot.lane.b32.xlu1 %v3890_v52, %s4314_s5 }
 0x2ba   :  { %182 = vperm.xlu0 %3825, %v177_v53   ;;  %v3466_v53 = vsel %vm589_vm8, 1.0, %v4312_v1  ;;  %vm3021_vm8 = vcmask 64512  }
 0x2bc   :  { %179 = vperm.xlu1 %3826, %v176_v55  }
 0x2c0   :  { %467 = vperm.xlu1 %3826, %v3462_v56  }
 0x328   :  { %v451_v57 = vpop.permute.xlu0 %450 }
 0x329   :  { %v456_v61 = vmul.f32 %v451_v57, %v446_v58 }
 0x32a   :  { %v453_v60 = vpop.permute.xlu1 %452 }
 0x32b   :  { %v457_v63 = vmul.f32 %v453_v60, %v447_v59  ;;  %v460_v3 = vadd.f32 %v458_v0, %v456_v61 }
 0x32d   :  { %v461_v2 = vadd.f32 %v459_v62, %v457_v63 }
 0x32f   :  { %v472_v4 = vrot.slane %v461_v2, 7 }
 0x331   :  { %v474_v5 = vsel %vm473_vm5, %v472_v4, %v460_v3 }
 0x332   :  { %475 = vrot.lane.b32.xlu0 %v474_v5, %s4314_s5 }
 0x335   :  { %v183_v6 = vpop.permute.xlu0 %182 }
 0x336   :  { %vm185_vm6 = vcmp.eq.s32.totalorder %v183_v6, %v4472_v8 }
 0x337   :  { %v180_v9 = vpop.permute.xlu1 %179  ;;  %v187_v10 = vsel %vm185_vm6, 1.0, %v4312_v1  ;;  %vm1736_vm6 = vcmask 1046528  }
 0x338   :  { %vm184_vm7 = vcmp.eq.s32.totalorder %v180_v9, %v4472_v8 }
 0x339   :  { %v186_v11 = vsel %vm184_vm7, 1.0, %v4312_v1  ;;  %vm1733_vm7 = vcmask 1045504  }
 0x33a   :  { %v188_v12 = vpack.c.bf16 %v187_v10, %v186_v11 }
 0x33b   :  { %v468_v14 = vpop.permute.xlu1 %467 }
 0x33c   :  { %3622 = vmatmul.mubr.msk.bf16.vlgmr.msra.gmra.mxu1 %vm217_vm3, %v188_v12 }
 0x33d   :  { %3634 = vmatpush3.bf16.msra.mxu1 %v4481_v13  ;;  %3637 = vmatprep.mubr.msk.bf16.mxu1 %vm4313_vm0, %v4312_v1 }
 0x33e   :  { %3635 = vmatprep.subr.bf16.mxu1 %v4312_v1 }
 0x341   :  { %3636 = vmatpush3.bf16.msra.mxu1 %v4488_v15 }
 0x342   :  { %3649 = vmatprep.subr.bf16.mxu1 %v4312_v1 }
 0x3a4   :  { %v476_v8 = vpop.permute.xlu0 %475 }
 0x3a5   :  { %v4549_v16 = vmul.f32 %v476_v8, %v468_v14 }
 0x3a7   :  { %v480_v17 = vpack.c.bf16 %v4549_v16, %v4549_v16  ;;  %v578_v46 = vrot.slane %v4549_v16, 7 }
 0x3a9   :  { %3638 = vmatmul.mubr.msk.bf16.vlgmr.msra.gmra.mxu1 %vm217_vm3, %v480_v17 }
 0x3aa   :  { %3650 = vmatpush3.bf16.msra.mxu1 %v4481_v13  ;;  %3653 = vmatprep.mubr.msk.bf16.mxu1 %vm4313_vm0, %v4312_v1 }
 0x3ab   :  { %3651 = vmatprep.subr.bf16.mxu1 %v4312_v1 }
 0x3ae   :  { %3652 = vmatpush3.bf16.msra.mxu1 %v4488_v15 }
 0x3af   :  { %3665 = vmatprep.subr.bf16.mxu1 %v4312_v1 }
 0x3fc   :  { %v4560_v18 = vpop.f32.mrf.mxu1 }
 0x3fe   :  { %v3623_v19 = vpop.f32.mrf.mxu1 }
 0x400   :  { %v4562_v21 = vpop.f32.mrf.mxu1 }
 0x402   :  { %v3624_v22 = vpop.f32.mrf.mxu1 }
 0x469   :  { %v518_v23 = vpop.f32.mrf.mxu1 }
 0x46a   :  { %v542_v24 = vadd.f32 %v518_v23, %v4501_v20  ;;  %v525_v31 = vrot.slane %v518_v23, 7  ;;  %v529_v32 = vadd.f32 %v518_v23, %v4511_v30 }
 0x46b   :  { %v3639_v25 = vpop.f32.mrf.mxu1 }
 0x46c   :  { %547 = vrot.lane.b32.xlu0 %v542_v24, %s4302_s27  ;;  %v544_v26 = vrot.slane %v542_v24, 7  ;;  %v528_v33 = vadd.f32 %v525_v31, %v4509_v28  ;;  %v3465_v34 = vmul.f32 -1.442695, %v529_v32 }
 0x46d   :  { %v521_v27 = vpop.f32.mrf.mxu1 }
 0x46e   :  { %545 = vrot.lane.b32.xlu1 %v544_v26, %s4302_s27  ;;  %v3464_v35 = vmul.f32 -1.442695, %v528_v33  ;;  %3891 = vpow2.f32 %v3465_v34 }
 0x46f   :  { %v3640_v29 = vpop.f32.mrf.mxu1 }
 0x470   :  { %3893 = vpow2.f32 %v3464_v35 }
 0x47b   :  { %v3892_v36 = vpop.eup %3891 }
 0x47c   :  { %v537_v38 = vadd.f32 1.0, %v3892_v36 }
 0x47d   :  { %v3894_v37 = vpop.eup %3893 }
 0x47e   :  { %v536_v39 = vadd.f32 1.0, %v3894_v37  ;;  %3895 = vrcp.f32 %v537_v38 }
 0x480   :  { %3897 = vrcp.f32 %v536_v39 }
 0x48b   :  { %v3896_v40 = vpop.eup %3895 }
 0x48c   :  { %v566_v62 = vsub.f32 1.0, %v3896_v40 }
 0x48d   :  { %v3898_v43 = vpop.eup %3897 }
 0x48e   :  { %v565_v56 = vsub.f32 1.0, %v3898_v43 }
 0x4de   :  { %v548_v41 = vpop.permute.xlu0 %547 }
 0x4df   :  { %v552_v42 = vmul.f32 %v3896_v40, %v548_v41 }
 0x4e0   :  { %v546_v44 = vpop.permute.xlu1 %545 }
 0x4e1   :  { %557 = vrot.lane.b32.xlu0 %v552_v42, %s4302_s27  ;;  %v551_v45 = vmul.f32 %v3898_v43, %v546_v44 }
 0x4e3   :  { %555 = vrot.lane.b32.xlu1 %v551_v45, %s4302_s27 }
 0x4e5   :  { %579 = vrot.lane.b32.xlu0 %v578_v46, %s4315_s11 }
 0x4e9   :  { %581 = vrot.lane.b32.xlu0 %v4549_v16, %s4315_s11 }
 0x553   :  { %v558_v47 = vpop.permute.xlu0 %557 }
 0x554   :  { %v562_v50 = vadd.f32 %v558_v47, %v4511_v30 }
 0x555   :  { %v556_v48 = vpop.permute.xlu1 %555 }
 0x556   :  { %v561_v49 = vadd.f32 %v556_v48, %v4509_v28 }
 0x557   :  { %v580_v55 = vpop.permute.xlu0 %579 }
 0x558   :  { %3899 = vtanh.f32 %v561_v49  ;;  %v585_v58 = vmul.f32 %v3898_v43, %v580_v55 }
 0x559   :  { %3901 = vtanh.f32 %v562_v50 }
 0x55b   :  { %v582_v60 = vpop.permute.xlu0 %581 }
 0x55c   :  { %v586_v0 = vmul.f32 %v3896_v40, %v582_v60 }
 0x565   :  { %v3900_v51 = vpop.eup %3899 }
 0x566   :  { %569 = vrot.lane.b32.xlu1 %v3900_v51, %s4314_s5  ;;  %v3902_v52 = vpop.eup %3901 }
 0x56a   :  { %571 = vrot.lane.b32.xlu1 %v3902_v52, %s4314_s5 }
 0x56e   :  { %594 = vperm.xlu1 %3826, %v3466_v53  }
 0x5d8   :  { %v570_v57 = vpop.permute.xlu1 %569 }
 0x5d9   :  { %v575_v59 = vmul.f32 %v570_v57, %v565_v56  ;;  %v3470_v56 = vsel %vm728_vm9, 1.0, %v4312_v1  ;;  %vm2665_vm9 = vcmask 261126  }
 0x5db   :  { %v587_v61 = vadd.f32 %v585_v58, %v575_v59 }
 0x5dc   :  { %v572_v63 = vpop.permute.xlu1 %571 }
 0x5dd   :  { %v605_v2 = vsub.f32 %v587_v61, %v580_v55  ;;  %v576_v3 = vmul.f32 %v572_v63, %v566_v62  ;;  %v599_v4 = vrot.slane %v587_v61, 1 }
 0x5df   :  { %v588_v5 = vadd.f32 %v586_v0, %v576_v3  ;;  %v609_v9 = vrot.slane %v605_v2, 1 }
 0x5e1   :  { %v606_v6 = vsub.f32 %v588_v5, %v582_v60  ;;  %v4582_v10 = vsel %vm473_vm5, %v588_v5, %v599_v4 }
 0x5e3   :  { %v610_v11 = vsel %vm473_vm5, %v606_v6, %v609_v9 }
 0x5e4   :  { %611 = vrot.lane.b32.xlu0 %v610_v11, %s4314_s5 }
 0x5e9   :  { %v4586_v12 = vpop.permute.xlu1 %594 }
 0x656   :  { %v612_v14 = vpop.permute.xlu0 %611 }
 0x657   :  { %v614_v8 = vmul.f32 %v612_v14, %v4586_v12 }
 0x659   :  { %v4590_v17 = vadd.f32 %v614_v8, %v4549_v16 }
 0x65b   :  { %v616_v19 = vpack.c.bf16 %v4590_v17, %v4590_v17  ;;  %v717_v53 = vrot.slane %v4590_v17, 7  ;;  %v716_v55 = vrot.slane %v4590_v17, 6 }
 0x65d   :  { %3646 = vmatmul.mubr.msk.bf16.vlgmr.msra.gmra.mxu0 %vm217_vm3, %v616_v19 }
 0x65e   :  { %3658 = vmatpush3.bf16.msra.mxu0 %v4481_v13  ;;  %3661 = vmatprep.mubr.msk.bf16.mxu0 %vm4313_vm0, %v4312_v1 }
 0x65f   :  { %3659 = vmatprep.subr.bf16.mxu0 %v4312_v1 }
 0x662   :  { %3660 = vmatpush3.bf16.msra.mxu0 %v4488_v15 }
 0x663   :  { %3673 = vmatprep.subr.bf16.mxu0 %v4312_v1 }
 0x71d   :  { %v654_v22 = vpop.f32.mrf.mxu0 }
 0x71e   :  { %v679_v23 = vadd.f32 %v654_v22, %v4501_v20  ;;  %v661_v31 = vrot.slane %v654_v22, 6  ;;  %v662_v32 = vrot.slane %v654_v22, 7 }
 0x71f   :  { %v3647_v24 = vpop.f32.mrf.mxu0 }
 0x720   :  { %v682_v25 = vrot.slane %v679_v23, 7  ;;  %v681_v26 = vrot.slane %v679_v23, 6  ;;  %v665_v33 = vadd.f32 %v661_v31, %v4509_v28  ;;  %v666_v34 = vadd.f32 %v662_v32, %v4511_v30 }
 0x721   :  { %v657_v27 = vpop.f32.mrf.mxu0 }
 0x722   :  { %685 = vrot.lane.b32.xlu0 %v682_v25, %s4302_s27  ;;  %683 = vrot.lane.b32.xlu1 %v681_v26, %s4302_s27  ;;  %v3468_v35 = vmul.f32 -1.442695, %v665_v33  ;;  %v3469_v36 = vmul.f32 -1.442695, %v666_v34 }
 0x723   :  { %v3648_v29 = vpop.f32.mrf.mxu0 }
 0x724   :  { %3903 = vpow2.f32 %v3468_v35 }
 0x725   :  { %3905 = vpow2.f32 %v3469_v36 }
 0x731   :  { %v3904_v37 = vpop.eup %3903 }
 0x732   :  { %v3906_v38 = vpop.eup %3905  ;;  %v673_v39 = vadd.f32 1.0, %v3904_v37 }
 0x733   :  { %v674_v40 = vadd.f32 1.0, %v3906_v38 }
 0x734   :  { %3907 = vrcp.f32 %v673_v39 }
 0x735   :  { %3909 = vrcp.f32 %v674_v40 }
 0x741   :  { %v3908_v41 = vpop.eup %3907 }
 0x742   :  { %v3910_v42 = vpop.eup %3909  ;;  %v703_v60 = vsub.f32 1.0, %v3908_v41 }
 0x743   :  { %v704_v59 = vsub.f32 1.0, %v3910_v42 }
 0x794   :  { %v686_v43 = vpop.permute.xlu0 %685  ;;  %v684_v44 = vpop.permute.xlu1 %683 }
 0x795   :  { %v690_v45 = vmul.f32 %v3910_v42, %v686_v43  ;;  %v689_v46 = vmul.f32 %v3908_v41, %v684_v44 }
 0x797   :  { %695 = vrot.lane.b32.xlu0 %v690_v45, %s4302_s27  ;;  %693 = vrot.lane.b32.xlu1 %v689_v46, %s4302_s27 }
 0x809   :  { %v696_v47 = vpop.permute.xlu0 %695  ;;  %v694_v48 = vpop.permute.xlu1 %693 }
 0x80a   :  { %v700_v49 = vadd.f32 %v696_v47, %v4511_v30  ;;  %v699_v50 = vadd.f32 %v694_v48, %v4509_v28 }
 0x80c   :  { %3911 = vtanh.f32 %v700_v49 }
 0x80d   :  { %3913 = vtanh.f32 %v699_v50 }
 0x819   :  { %v3912_v51 = vpop.eup %3911 }
 0x81a   :  { %v3914_v52 = vpop.eup %3913  ;;  %709 = vrot.lane.b32.xlu0 %v3912_v51, %s4314_s5 }
 0x81b   :  { %707 = vrot.lane.b32.xlu1 %v3914_v52, %s4314_s5 }
 0x81e   :  { %720 = vrot.lane.b32.xlu0 %v717_v53, %s4315_s11 }
 0x81f   :  { %718 = vrot.lane.b32.xlu1 %v716_v55, %s4315_s11 }
 0x823   :  { %733 = vperm.xlu1 %3826, %v3470_v56  }
 0x88c   :  { %v710_v57 = vpop.permute.xlu0 %709 }
 0x88d   :  { %v708_v58 = vpop.permute.xlu1 %707  ;;  %v714_v62 = vmul.f32 %v710_v57, %v704_v59 }
 0x88e   :  { %v713_v2 = vmul.f32 %v708_v58, %v703_v60 }
 0x890   :  { %v721_v61 = vpop.permute.xlu0 %720 }
 0x891   :  { %v725_v63 = vmul.f32 %v3910_v42, %v721_v61  ;;  %v719_v0 = vpop.permute.xlu1 %718 }
 0x892   :  { %v724_v3 = vmul.f32 %v3908_v41, %v719_v0 }
 0x893   :  { %v727_v4 = vadd.f32 %v725_v63, %v714_v62  ;;  %v3474_v62 = vsel %vm869_vm10, 1.0, %v4312_v1 }
 0x894   :  { %v726_v5 = vadd.f32 %v724_v3, %v713_v2 }
 0x895   :  { %v739_v6 = vrot.slane %v727_v4, 1  ;;  %v746_v9 = vsub.f32 %v727_v4, %v721_v61 }
 0x896   :  { %v738_v11 = vrot.slane %v726_v5, 2  ;;  %v745_v14 = vsub.f32 %v726_v5, %v719_v0 }
 0x897   :  { %v750_v8 = vrot.slane %v746_v9, 1 }
 0x898   :  { %v749_v19 = vrot.slane %v745_v14, 2  ;;  %v4619_v22 = vsel %vm473_vm5, %v739_v6, %v738_v11 }
 0x89a   :  { %v751_v23 = vsel %vm473_vm5, %v750_v8, %v749_v19 }
 0x89b   :  { %752 = vrot.lane.b32.xlu0 %v751_v23, %s4314_s5 }
 0x89e   :  { %v4623_v24 = vpop.permute.xlu1 %733 }
 0x90d   :  { %v753_v25 = vpop.permute.xlu0 %752 }
 0x90e   :  { %v755_v26 = vmul.f32 %v753_v25, %v4623_v24 }
 0x910   :  { %v4627_v27 = vadd.f32 %v755_v26, %v4590_v17 }
 0x912   :  { %v757_v29 = vpack.c.bf16 %v4627_v27, %v4627_v27  ;;  %v858_v60 = vrot.slane %v4627_v27, 6  ;;  %v857_v61 = vrot.slane %v4627_v27, 5 }
 0x914   :  { %3654 = vmatmul.mubr.msk.bf16.vlgmr.msra.gmra.mxu1 %vm217_vm3, %v757_v29 }
 0x915   :  { %3666 = vmatpush3.bf16.msra.mxu1 %v4481_v13  ;;  %3669 = vmatprep.mubr.msk.bf16.mxu1 %vm4313_vm0, %v4312_v1 }
 0x916   :  { %3667 = vmatprep.subr.bf16.mxu1 %v4312_v1 }
 0x919   :  { %3668 = vmatpush3.bf16.msra.mxu1 %v4488_v15 }
 0x91a   :  { %3681 = vmatprep.subr.bf16.mxu1 %v4312_v1 }
 0x9d4   :  { %v795_v31 = vpop.f32.mrf.mxu1 }
 0x9d5   :  { %v820_v17 = vadd.f32 %v795_v31, %v4501_v20  ;;  %v802_v37 = vrot.slane %v795_v31, 5  ;;  %v803_v38 = vrot.slane %v795_v31, 6 }
 0x9d6   :  { %v3655_v32 = vpop.f32.mrf.mxu1 }
 0x9d7   :  { %v823_v33 = vrot.slane %v820_v17, 6  ;;  %v822_v34 = vrot.slane %v820_v17, 5  ;;  %v806_v39 = vadd.f32 %v802_v37, %v4509_v28  ;;  %v807_v40 = vadd.f32 %v803_v38, %v4511_v30 }
 0x9d8   :  { %v798_v35 = vpop.f32.mrf.mxu1 }
 0x9d9   :  { %826 = vrot.lane.b32.xlu0 %v823_v33, %s4302_s27  ;;  %824 = vrot.lane.b32.xlu1 %v822_v34, %s4302_s27  ;;  %v3472_v41 = vmul.f32 -1.442695, %v806_v39  ;;  %v3473_v42 = vmul.f32 -1.442695, %v807_v40 }
 0x9da   :  { %v3656_v36 = vpop.f32.mrf.mxu1 }
 0x9db   :  { %3915 = vpow2.f32 %v3472_v41 }
 0x9dc   :  { %3917 = vpow2.f32 %v3473_v42 }
 0x9e8   :  { %v3916_v43 = vpop.eup %3915 }
 0x9e9   :  { %v3918_v44 = vpop.eup %3917  ;;  %v814_v45 = vadd.f32 1.0, %v3916_v43 }
 0x9ea   :  { %v815_v46 = vadd.f32 1.0, %v3918_v44 }
 0x9eb   :  { %3919 = vrcp.f32 %v814_v45 }
 0x9ec   :  { %3921 = vrcp.f32 %v815_v46 }
 0x9f8   :  { %v3920_v47 = vpop.eup %3919 }
 0x9f9   :  { %v3922_v48 = vpop.eup %3921  ;;  %v844_v3 = vsub.f32 1.0, %v3920_v47 }
 0x9fa   :  { %v845_v2 = vsub.f32 1.0, %v3922_v48 }
 0xa4b   :  { %v827_v49 = vpop.permute.xlu0 %826  ;;  %v825_v50 = vpop.permute.xlu1 %824 }
 0xa4c   :  { %v831_v51 = vmul.f32 %v3922_v48, %v827_v49  ;;  %v830_v52 = vmul.f32 %v3920_v47, %v825_v50 }
 0xa4e   :  { %836 = vrot.lane.b32.xlu0 %v831_v51, %s4302_s27  ;;  %834 = vrot.lane.b32.xlu1 %v830_v52, %s4302_s27 }
 0xac0   :  { %v837_v53 = vpop.permute.xlu0 %836  ;;  %v835_v55 = vpop.permute.xlu1 %834 }
 0xac1   :  { %v841_v56 = vadd.f32 %v837_v53, %v4511_v30  ;;  %v840_v57 = vadd.f32 %v835_v55, %v4509_v28 }
 0xac3   :  { %3923 = vtanh.f32 %v841_v56 }
 0xac4   :  { %3925 = vtanh.f32 %v840_v57 }
 0xad0   :  { %v3924_v58 = vpop.eup %3923 }
 0xad1   :  { %v3926_v59 = vpop.eup %3925  ;;  %850 = vrot.lane.b32.xlu0 %v3924_v58, %s4314_s5 }
 0xad2   :  { %848 = vrot.lane.b32.xlu1 %v3926_v59, %s4314_s5 }
 0xad5   :  { %861 = vrot.lane.b32.xlu0 %v858_v60, %s4315_s11 }
 0xad6   :  { %859 = vrot.lane.b32.xlu1 %v857_v61, %s4315_s11 }
 0xada   :  { %874 = vperm.xlu1 %3826, %v3474_v62  }
 0xb43   :  { %v851_v63 = vpop.permute.xlu0 %850 }
 0xb44   :  { %v849_v0 = vpop.permute.xlu1 %848  ;;  %v855_v5 = vmul.f32 %v851_v63, %v845_v2 }
 0xb45   :  { %v854_v11 = vmul.f32 %v849_v0, %v844_v3 }
 0xb47   :  { %v862_v4 = vpop.permute.xlu0 %861 }
 0xb48   :  { %v866_v6 = vmul.f32 %v3922_v48, %v862_v4  ;;  %v860_v9 = vpop.permute.xlu1 %859 }
 0xb49   :  { %v865_v14 = vmul.f32 %v3920_v47, %v860_v9 }
 0xb4a   :  { %v868_v8 = vadd.f32 %v866_v6, %v855_v5 }
 0xb4b   :  { %v867_v19 = vadd.f32 %v865_v14, %v854_v11 }
 0xb4c   :  { %v880_v23 = vrot.slane %v868_v8, 2  ;;  %v887_v25 = vsub.f32 %v868_v8, %v862_v4 }
 0xb4d   :  { %v879_v26 = vrot.slane %v867_v19, 3  ;;  %v886_v29 = vsub.f32 %v867_v19, %v860_v9  ;;  %v3478_v9 = vsel %vm1010_vm11, 1.0, %v4312_v1 }
 0xb4e   :  { %v891_v31 = vrot.slane %v887_v25, 2 }
 0xb4f   :  { %v890_v17 = vrot.slane %v886_v29, 3  ;;  %v4656_v32 = vsel %vm473_vm5, %v880_v23, %v879_v26 }
 0xb51   :  { %v892_v33 = vsel %vm473_vm5, %v891_v31, %v890_v17 }
 0xb52   :  { %893 = vrot.lane.b32.xlu0 %v892_v33, %s4314_s5 }
 0xb55   :  { %v4660_v34 = vpop.permute.xlu1 %874 }
 0xbc4   :  { %v894_v35 = vpop.permute.xlu0 %893 }
 0xbc5   :  { %v896_v36 = vmul.f32 %v894_v35, %v4660_v34 }
 0xbc7   :  { %v4664_v37 = vadd.f32 %v896_v36, %v4627_v27 }
 0xbc9   :  { %v898_v38 = vpack.c.bf16 %v4664_v37, %v4664_v37  ;;  %v999_v5 = vrot.slane %v4664_v37, 5  ;;  %v998_v6 = vrot.slane %v4664_v37, 4 }
 0xbcb   :  { %3662 = vmatmul.mubr.msk.bf16.vlgmr.msra.gmra.mxu0 %vm217_vm3, %v898_v38 }
 0xbcc   :  { %3674 = vmatpush3.bf16.msra.mxu0 %v4481_v13  ;;  %3677 = vmatprep.mubr.msk.bf16.mxu0 %vm4313_vm0, %v4312_v1 }
 0xbcd   :  { %3675 = vmatprep.subr.bf16.mxu0 %v4312_v1 }
 0xbd0   :  { %3676 = vmatpush3.bf16.msra.mxu0 %v4488_v15 }
 0xbd1   :  { %3689 = vmatprep.subr.bf16.mxu0 %v4312_v1 }
 0xc8b   :  { %v936_v39 = vpop.f32.mrf.mxu0 }
 0xc8c   :  { %v961_v27 = vadd.f32 %v936_v39, %v4501_v20  ;;  %v943_v45 = vrot.slane %v936_v39, 4  ;;  %v944_v46 = vrot.slane %v936_v39, 5 }
 0xc8d   :  { %v3663_v40 = vpop.f32.mrf.mxu0 }
 0xc8e   :  { %v964_v41 = vrot.slane %v961_v27, 5  ;;  %v963_v42 = vrot.slane %v961_v27, 4  ;;  %v947_v47 = vadd.f32 %v943_v45, %v4509_v28  ;;  %v948_v48 = vadd.f32 %v944_v46, %v4511_v30 }
 0xc8f   :  { %v939_v43 = vpop.f32.mrf.mxu0 }
 0xc90   :  { %967 = vrot.lane.b32.xlu0 %v964_v41, %s4302_s27  ;;  %965 = vrot.lane.b32.xlu1 %v963_v42, %s4302_s27  ;;  %v3476_v49 = vmul.f32 -1.442695, %v947_v47  ;;  %v3477_v50 = vmul.f32 -1.442695, %v948_v48 }
 0xc91   :  { %v3664_v44 = vpop.f32.mrf.mxu0 }
 0xc92   :  { %3927 = vpow2.f32 %v3476_v49 }
 0xc93   :  { %3929 = vpow2.f32 %v3477_v50 }
 0xc9f   :  { %v3928_v51 = vpop.eup %3927 }
 0xca0   :  { %v3930_v52 = vpop.eup %3929  ;;  %v955_v53 = vadd.f32 1.0, %v3928_v51 }
 0xca1   :  { %v956_v55 = vadd.f32 1.0, %v3930_v52 }
 0xca2   :  { %3931 = vrcp.f32 %v955_v53 }
 0xca3   :  { %3933 = vrcp.f32 %v956_v55 }
 0xcaf   :  { %v3932_v56 = vpop.eup %3931 }
 0xcb0   :  { %v3934_v57 = vpop.eup %3933  ;;  %v985_v19 = vsub.f32 1.0, %v3932_v56 }
 0xcb1   :  { %v986_v8 = vsub.f32 1.0, %v3934_v57 }
 0xd02   :  { %v968_v58 = vpop.permute.xlu0 %967  ;;  %v966_v59 = vpop.permute.xlu1 %965 }
 0xd03   :  { %v972_v60 = vmul.f32 %v3934_v57, %v968_v58  ;;  %v971_v61 = vmul.f32 %v3932_v56, %v966_v59 }
 0xd05   :  { %977 = vrot.lane.b32.xlu0 %v972_v60, %s4302_s27  ;;  %975 = vrot.lane.b32.xlu1 %v971_v61, %s4302_s27 }
 0xd77   :  { %v978_v62 = vpop.permute.xlu0 %977  ;;  %v976_v63 = vpop.permute.xlu1 %975 }
 0xd78   :  { %v982_v0 = vadd.f32 %v978_v62, %v4511_v30  ;;  %v981_v2 = vadd.f32 %v976_v63, %v4509_v28 }
 0xd7a   :  { %3935 = vtanh.f32 %v982_v0 }
 0xd7b   :  { %3937 = vtanh.f32 %v981_v2 }
 0xd87   :  { %v3936_v3 = vpop.eup %3935 }
 0xd88   :  { %v3938_v4 = vpop.eup %3937  ;;  %991 = vrot.lane.b32.xlu0 %v3936_v3, %s4314_s5 }
 0xd89   :  { %989 = vrot.lane.b32.xlu1 %v3938_v4, %s4314_s5 }
 0xd8c   :  { %1002 = vrot.lane.b32.xlu0 %v999_v5, %s4315_s11 }
 0xd8d   :  { %1000 = vrot.lane.b32.xlu1 %v998_v6, %s4315_s11 }
 0xd91   :  { %1015 = vperm.xlu1 %3826, %v3478_v9  }
 0xdfa   :  { %v992_v11 = vpop.permute.xlu0 %991 }
 0xdfb   :  { %v990_v14 = vpop.permute.xlu1 %989  ;;  %v996_v25 = vmul.f32 %v992_v11, %v986_v8 }
 0xdfc   :  { %v995_v31 = vmul.f32 %v990_v14, %v985_v19 }
 0xdfe   :  { %v1003_v23 = vpop.permute.xlu0 %1002 }
 0xdff   :  { %v1007_v26 = vmul.f32 %v3934_v57, %v1003_v23  ;;  %v1001_v29 = vpop.permute.xlu1 %1000 }
 0xe00   :  { %v1006_v17 = vmul.f32 %v3932_v56, %v1001_v29 }
 0xe01   :  { %v1009_v33 = vadd.f32 %v1007_v26, %v996_v25 }
 0xe02   :  { %v1008_v35 = vadd.f32 %v1006_v17, %v995_v31 }
 0xe03   :  { %v1021_v36 = vrot.slane %v1009_v33, 3  ;;  %v1028_v38 = vsub.f32 %v1009_v33, %v1003_v23 }
 0xe04   :  { %v1020_v39 = vrot.slane %v1008_v35, 4  ;;  %v1027_v27 = vsub.f32 %v1008_v35, %v1001_v29  ;;  %v3482_v29 = vsel %vm1151_vm12, 1.0, %v4312_v1 }
 0xe05   :  { %v1032_v40 = vrot.slane %v1028_v38, 3 }
 0xe06   :  { %v1031_v41 = vrot.slane %v1027_v27, 4  ;;  %v4693_v42 = vsel %vm473_vm5, %v1021_v36, %v1020_v39 }
 0xe08   :  { %v1033_v43 = vsel %vm473_vm5, %v1032_v40, %v1031_v41 }
 0xe09   :  { %1034 = vrot.lane.b32.xlu0 %v1033_v43, %s4314_s5 }
 0xe0c   :  { %v4697_v44 = vpop.permute.xlu1 %1015 }
 0xe7b   :  { %v1035_v45 = vpop.permute.xlu0 %1034 }
 0xe7c   :  { %v1037_v46 = vmul.f32 %v1035_v45, %v4697_v44 }
 0xe7e   :  { %v4701_v47 = vadd.f32 %v1037_v46, %v4664_v37 }
 0xe80   :  { %v1039_v48 = vpack.c.bf16 %v4701_v47, %v4701_v47  ;;  %v1140_v25 = vrot.slane %v4701_v47, 4  ;;  %v1139_v26 = vrot.slane %v4701_v47, 3 }
 0xe82   :  { %3670 = vmatmul.mubr.msk.bf16.vlgmr.msra.gmra.mxu1 %vm217_vm3, %v1039_v48 }
 0xe83   :  { %3682 = vmatpush3.bf16.msra.mxu1 %v4481_v13  ;;  %3685 = vmatprep.mubr.msk.bf16.mxu1 %vm4313_vm0, %v4312_v1 }
 0xe84   :  { %3683 = vmatprep.subr.bf16.mxu1 %v4312_v1 }
 0xe87   :  { %3684 = vmatpush3.bf16.msra.mxu1 %v4488_v15 }
 0xe88   :  { %3697 = vmatprep.subr.bf16.mxu1 %v4312_v1 }
 0xf42   :  { %v1077_v49 = vpop.f32.mrf.mxu1 }
 0xf43   :  { %v1102_v37 = vadd.f32 %v1077_v49, %v4501_v20  ;;  %v1084_v55 = vrot.slane %v1077_v49, 3  ;;  %v1085_v56 = vrot.slane %v1077_v49, 4 }
 0xf44   :  { %v3671_v50 = vpop.f32.mrf.mxu1 }
 0xf45   :  { %v1105_v51 = vrot.slane %v1102_v37, 4  ;;  %v1104_v52 = vrot.slane %v1102_v37, 3  ;;  %v1088_v57 = vadd.f32 %v1084_v55, %v4509_v28  ;;  %v1089_v15 = vadd.f32 %v1085_v56, %v4511_v30 }
 0xf46   :  { %v1080_v53 = vpop.f32.mrf.mxu1 }
 0xf47   :  { %1108 = vrot.lane.b32.xlu0 %v1105_v51, %s4302_s27  ;;  %1106 = vrot.lane.b32.xlu1 %v1104_v52, %s4302_s27  ;;  %v3480_v58 = vmul.f32 -1.442695, %v1088_v57  ;;  %v3481_v59 = vmul.f32 -1.442695, %v1089_v15 }
 0xf48   :  { %v3672_v13 = vpop.f32.mrf.mxu1 }
 0xf49   :  { %3939 = vpow2.f32 %v3480_v58 }
 0xf4a   :  { %3941 = vpow2.f32 %v3481_v59 }
 0xf56   :  { %v3940_v60 = vpop.eup %3939 }
 0xf57   :  { %v3942_v61 = vpop.eup %3941  ;;  %v1096_v62 = vadd.f32 1.0, %v3940_v60 }
 0xf58   :  { %v1097_v63 = vadd.f32 1.0, %v3942_v61 }
 0xf59   :  { %3943 = vrcp.f32 %v1096_v62 }
 0xf5a   :  { %3945 = vrcp.f32 %v1097_v63 }
 0xf66   :  { %v3944_v0 = vpop.eup %3943 }
 0xf67   :  { %v3946_v2 = vpop.eup %3945  ;;  %v1126_v35 = vsub.f32 1.0, %v3944_v0 }
 0xf68   :  { %v1127_v33 = vsub.f32 1.0, %v3946_v2 }
 0xfb9   :  { %v1109_v3 = vpop.permute.xlu0 %1108  ;;  %v1107_v4 = vpop.permute.xlu1 %1106 }
 0xfba   :  { %v1113_v5 = vmul.f32 %v3946_v2, %v1109_v3  ;;  %v1112_v6 = vmul.f32 %v3944_v0, %v1107_v4 }
 0xfbc   :  { %1118 = vrot.lane.b32.xlu0 %v1113_v5, %s4302_s27  ;;  %1116 = vrot.lane.b32.xlu1 %v1112_v6, %s4302_s27 }
0x102e   :  { %v1119_v9 = vpop.permute.xlu0 %1118  ;;  %v1117_v11 = vpop.permute.xlu1 %1116 }
0x102f   :  { %v1123_v14 = vadd.f32 %v1119_v9, %v4511_v30  ;;  %v1122_v8 = vadd.f32 %v1117_v11, %v4509_v28 }
0x1031   :  { %3947 = vtanh.f32 %v1123_v14 }
0x1032   :  { %3949 = vtanh.f32 %v1122_v8 }
0x103e   :  { %v3948_v19 = vpop.eup %3947 }
0x103f   :  { %v3950_v23 = vpop.eup %3949  ;;  %1132 = vrot.lane.b32.xlu0 %v3948_v19, %s4314_s5 }
0x1040   :  { %1130 = vrot.lane.b32.xlu1 %v3950_v23, %s4314_s5 }
0x1043   :  { %1143 = vrot.lane.b32.xlu0 %v1140_v25, %s4315_s11 }
0x1044   :  { %1141 = vrot.lane.b32.xlu1 %v1139_v26, %s4315_s11 }
0x1048   :  { %1156 = vperm.xlu1 %3826, %v3482_v29  }
0x10b1   :  { %v1133_v31 = vpop.permute.xlu0 %1132 }
0x10b2   :  { %v1131_v17 = vpop.permute.xlu1 %1130  ;;  %v1137_v38 = vmul.f32 %v1133_v31, %v1127_v33 }
0x10b3   :  { %v1136_v40 = vmul.f32 %v1131_v17, %v1126_v35 }
0x10b5   :  { %v1144_v36 = vpop.permute.xlu0 %1143 }
0x10b6   :  { %v1148_v39 = vmul.f32 %v3946_v2, %v1144_v36  ;;  %v1142_v27 = vpop.permute.xlu1 %1141 }
0x10b7   :  { %v1147_v41 = vmul.f32 %v3944_v0, %v1142_v27 }
0x10b8   :  { %v1150_v43 = vadd.f32 %v1148_v39, %v1137_v38 }
0x10b9   :  { %v1149_v45 = vadd.f32 %v1147_v41, %v1136_v40  ;;  %v3486_v41 = vsel %vm1292_vm13, 1.0, %v4312_v1 }
0x10ba   :  { %v1162_v46 = vrot.slane %v1150_v43, 4  ;;  %v1169_v48 = vsub.f32 %v1150_v43, %v1144_v36 }
0x10bb   :  { %v1161_v49 = vrot.slane %v1149_v45, 5  ;;  %v1168_v37 = vsub.f32 %v1149_v45, %v1142_v27 }
0x10bc   :  { %v1173_v50 = vrot.slane %v1169_v48, 4 }
0x10bd   :  { %v1172_v51 = vrot.slane %v1168_v37, 5  ;;  %v4730_v52 = vsel %vm473_vm5, %v1162_v46, %v1161_v49 }
0x10bf   :  { %v1174_v53 = vsel %vm473_vm5, %v1173_v50, %v1172_v51 }
0x10c0   :  { %1175 = vrot.lane.b32.xlu0 %v1174_v53, %s4314_s5 }
0x10c3   :  { %v4734_v13 = vpop.permute.xlu1 %1156 }
0x1132   :  { %v1176_v55 = vpop.permute.xlu0 %1175 }
0x1133   :  { %v1178_v56 = vmul.f32 %v1176_v55, %v4734_v13 }
0x1135   :  { %v4738_v57 = vadd.f32 %v1178_v56, %v4701_v47 }
0x1137   :  { %v1180_v15 = vpack.c.bf16 %v4738_v57, %v4738_v57  ;;  %v1281_v27 = vrot.slane %v4738_v57, 3  ;;  %v1280_v40 = vrot.slane %v4738_v57, 2 }
0x1139   :  { %3678 = vmatmul.mubr.msk.bf16.vlgmr.msra.gmra.mxu0 %vm217_vm3, %v1180_v15 }
0x113a   :  { %3693 = vmatprep.mubr.msk.bf16.mxu0 %vm4313_vm0, %v4312_v1 }
0x11f9   :  { %v1218_v58 = vpop.f32.mrf.mxu0 }
0x11fa   :  { %v1243_v59 = vadd.f32 %v1218_v58, %v4501_v20  ;;  %v1225_v0 = vrot.slane %v1218_v58, 2  ;;  %v1226_v2 = vrot.slane %v1218_v58, 3 }
0x11fb   :  { %v3679_v60 = vpop.f32.mrf.mxu0 }
0x11fc   :  { %v1246_v61 = vrot.slane %v1243_v59, 3  ;;  %v1245_v62 = vrot.slane %v1243_v59, 2  ;;  %v1229_v3 = vadd.f32 %v1225_v0, %v4509_v28  ;;  %v1230_v4 = vadd.f32 %v1226_v2, %v4511_v30 }
0x11fd   :  { %v1221_v63 = vpop.f32.mrf.mxu0 }
0x11fe   :  { %1249 = vrot.lane.b32.xlu0 %v1246_v61, %s4302_s27  ;;  %1247 = vrot.lane.b32.xlu1 %v1245_v62, %s4302_s27  ;;  %v3484_v5 = vmul.f32 -1.442695, %v1229_v3  ;;  %v3485_v6 = vmul.f32 -1.442695, %v1230_v4 }
0x11ff   :  { %v3680_v47 = vpop.f32.mrf.mxu0 }
0x1200   :  { %3951 = vpow2.f32 %v3484_v5 }
0x1201   :  { %3953 = vpow2.f32 %v3485_v6 }
0x120d   :  { %v3952_v9 = vpop.eup %3951 }
0x120e   :  { %v3954_v11 = vpop.eup %3953  ;;  %v1237_v14 = vadd.f32 1.0, %v3952_v9 }
0x120f   :  { %v1238_v8 = vadd.f32 1.0, %v3954_v11 }
0x1210   :  { %3955 = vrcp.f32 %v1237_v14 }
0x1211   :  { %3957 = vrcp.f32 %v1238_v8 }
0x121d   :  { %v3956_v19 = vpop.eup %3955 }
0x121e   :  { %v3958_v23 = vpop.eup %3957  ;;  %v1267_v48 = vsub.f32 1.0, %v3956_v19 }
0x121f   :  { %v1268_v46 = vsub.f32 1.0, %v3958_v23 }
0x1270   :  { %v1250_v25 = vpop.permute.xlu0 %1249  ;;  %v1248_v26 = vpop.permute.xlu1 %1247 }
0x1271   :  { %v1254_v29 = vmul.f32 %v3958_v23, %v1250_v25  ;;  %v1253_v31 = vmul.f32 %v3956_v19, %v1248_v26 }
0x1273   :  { %1259 = vrot.lane.b32.xlu0 %v1254_v29, %s4302_s27  ;;  %1257 = vrot.lane.b32.xlu1 %v1253_v31, %s4302_s27 }
0x12e5   :  { %v1260_v17 = vpop.permute.xlu0 %1259  ;;  %v1258_v33 = vpop.permute.xlu1 %1257 }
0x12e6   :  { %v1264_v35 = vadd.f32 %v1260_v17, %v4511_v30  ;;  %v1263_v36 = vadd.f32 %v1258_v33, %v4509_v28 }
0x12e8   :  { %3959 = vtanh.f32 %v1264_v35 }
0x12e9   :  { %3961 = vtanh.f32 %v1263_v36 }
0x12f5   :  { %v3960_v38 = vpop.eup %3959 }
0x12f6   :  { %v3962_v39 = vpop.eup %3961  ;;  %1273 = vrot.lane.b32.xlu0 %v3960_v38, %s4314_s5 }
0x12f7   :  { %1271 = vrot.lane.b32.xlu1 %v3962_v39, %s4314_s5 }
0x12fa   :  { %1284 = vrot.lane.b32.xlu0 %v1281_v27, %s4315_s11 }
0x12fb   :  { %1282 = vrot.lane.b32.xlu1 %v1280_v40, %s4315_s11 }
0x12ff   :  { %1297 = vperm.xlu1 %3826, %v3486_v41  }
0x1368   :  { %v1274_v43 = vpop.permute.xlu0 %1273 }
0x1369   :  { %v1272_v45 = vpop.permute.xlu1 %1271  ;;  %v1278_v37 = vmul.f32 %v1274_v43, %v1268_v46 }
0x136a   :  { %v1277_v53 = vmul.f32 %v1272_v45, %v1267_v48 }
0x136c   :  { %v1285_v49 = vpop.permute.xlu0 %1284 }
0x136d   :  { %v1289_v50 = vmul.f32 %v3958_v23, %v1285_v49  ;;  %v1283_v51 = vpop.permute.xlu1 %1282 }
0x136e   :  { %v1288_v55 = vmul.f32 %v3956_v19, %v1283_v51 }
0x136f   :  { %v1291_v56 = vadd.f32 %v1289_v50, %v1278_v37 }
0x1370   :  { %v1290_v15 = vadd.f32 %v1288_v55, %v1277_v53  ;;  %v4085_v55 = vld [vmem:[%s5327_s2] sm:$0x3] }
0x1371   :  { %v1303_v54 = vrot.slane %v1291_v56, 5  ;;  %v1310_v58 = vsub.f32 %v1291_v56, %v1285_v49  ;;  %vm1433_vm14 = vcmp.gt.s32.totalorder %v4085_v55, 7 }
0x1372   :  { %v1302_v59 = vrot.slane %v1290_v15, 6  ;;  %v1309_v60 = vsub.f32 %v1290_v15, %v1283_v51 }
0x1373   :  { %v1314_v61 = vrot.slane %v1310_v58, 5  ;;  %v4809_v58 = vld [vmem:[%s5333_s8] sm:$0xff]  }
0x1374   :  { %v1313_v62 = vrot.slane %v1309_v60, 6  ;;  %v4763_v63 = vsel %vm473_vm5, %v1303_v54, %v1302_v59 }
0x1376   :  { %v1315_v47 = vsel %vm473_vm5, %v1314_v61, %v1313_v62 }
0x1377   :  { %1316 = vrot.lane.b32.xlu0 %v1315_v47, %s4314_s5 }
0x137a   :  { %v4767_v0 = vpop.permute.xlu1 %1297 }
0x13e9   :  { %v1317_v2 = vpop.permute.xlu0 %1316 }
0x13ea   :  { %v1319_v3 = vmul.f32 %v1317_v2, %v4767_v0 }
0x13ec   :  { %v4771_v4 = vadd.f32 %v1319_v3, %v4738_v57 }
0x13ee   :  { %v1321_v5 = vpack.c.bf16 %v4771_v4, %v4771_v4  ;;  %v1422_v51 = vrot.slane %v4771_v4, 2  ;;  %v1421_v53 = vrot.slane %v4771_v4, 1 }
0x13f0   :  { %3686 = vmatmul.mubr.msk.bf16.vlgmr.msra.gmra.mxu1 %vm217_vm3, %v1321_v5 }
0x13f1   :  { %3701 = vmatprep.mubr.msk.bf16.mxu1 %vm4313_vm0, %v4312_v1 }
0x14b0   :  { %v1359_v6 = vpop.f32.mrf.mxu1 }
0x14b1   :  { %v1384_v9 = vadd.f32 %v1359_v6, %v4501_v20  ;;  %v1366_v23 = vrot.slane %v1359_v6, 1  ;;  %v1367_v25 = vrot.slane %v1359_v6, 2 }
0x14b2   :  { %v3687_v11 = vpop.f32.mrf.mxu1 }
0x14b3   :  { %v1387_v14 = vrot.slane %v1384_v9, 2  ;;  %v1386_v8 = vrot.slane %v1384_v9, 1  ;;  %v1370_v26 = vadd.f32 %v1366_v23, %v4509_v28  ;;  %v1371_v29 = vadd.f32 %v1367_v25, %v4511_v30  ;;  %v3457_v9 = vld [vmem:[#allocation8] ss:$0 sm:$0xff] }
0x14b4   :  { %v1362_v19 = vpop.f32.mrf.mxu1 }
0x14b5   :  { %1390 = vrot.lane.b32.xlu0 %v1387_v14, %s4302_s27  ;;  %1388 = vrot.lane.b32.xlu1 %v1386_v8, %s4302_s27  ;;  %v3488_v31 = vmul.f32 -1.442695, %v1370_v26  ;;  %v3489_v17 = vmul.f32 -1.442695, %v1371_v29 }
0x14b6   :  { %v3688_v57 = vpop.f32.mrf.mxu1 }
0x14b7   :  { %3963 = vpow2.f32 %v3488_v31 }
0x14b8   :  { %3965 = vpow2.f32 %v3489_v17 }
0x14c4   :  { %v3964_v20 = vpop.eup %3963 }
0x14c5   :  { %v3966_v33 = vpop.eup %3965  ;;  %v1378_v35 = vadd.f32 1.0, %v3964_v20 }
0x14c6   :  { %v1379_v36 = vadd.f32 1.0, %v3966_v33 }
0x14c7   :  { %3967 = vrcp.f32 %v1378_v35 }
0x14c8   :  { %3969 = vrcp.f32 %v1379_v36 }
0x14d4   :  { %v3968_v38 = vpop.eup %3967 }
0x14d5   :  { %v3970_v39 = vpop.eup %3969  ;;  %v1408_v59 = vsub.f32 1.0, %v3968_v38 }
0x14d6   :  { %v1409_v54 = vsub.f32 1.0, %v3970_v39 }
0x1527   :  { %v1391_v27 = vpop.permute.xlu0 %1390  ;;  %v1389_v40 = vpop.permute.xlu1 %1388 }
0x1528   :  { %v1395_v41 = vmul.f32 %v3970_v39, %v1391_v27  ;;  %v1394_v43 = vmul.f32 %v3968_v38, %v1389_v40  ;;  %v4086_v40 = vld [vmem:[#allocation5] sm:$0xff]  }
0x152a   :  { %1400 = vrot.lane.b32.xlu0 %v1395_v41, %s4302_s27  ;;  %1398 = vrot.lane.b32.xlu1 %v1394_v43, %s4302_s27  ;;  %v324_v41 = vunpack.c.l.bf16 %v4086_v40  ;;  %v4841_v43 = vshrl.u32 %v161_v7, 7 }
0x159c   :  { %v1401_v45 = vpop.permute.xlu0 %1400  ;;  %v1399_v46 = vpop.permute.xlu1 %1398 }
0x159d   :  { %v1405_v48 = vadd.f32 %v1401_v45, %v4511_v30  ;;  %v1404_v49 = vadd.f32 %v1399_v46, %v4509_v28  ;;  %v4798_v28 = vld [vmem:[%s5333_s8 + $0x8] sm:$0xff]   ;;  %v3490_v30 = vsel %vm1433_vm14, 1.0, %v4312_v1  ;;  %v3452_v45 = vld [vmem:[#allocation7] ss:$0 sm:$0xff] }
0x159e   :  { %3690 = vmatpush3.bf16.msra.mxu0 %v4798_v28  ;;  %3698 = vmatpush3.bf16.msra.mxu1 %v4798_v28  ;;  %v325_v46 = vadd.f32 %v3452_v45, %v324_v41 }
0x159f   :  { %3971 = vtanh.f32 %v1405_v48  ;;  %3691 = vmatprep.subr.bf16.mxu0 %v4312_v1  ;;  %3699 = vmatprep.subr.bf16.mxu1 %v4312_v1  ;;  %v1797_v48 = vsub.s32 2, %v4841_v43 }
0x15a0   :  { %3973 = vtanh.f32 %v1404_v49 }
0x15a1   :  { %v1798_v49 = vrot.slane %v325_v46, %v1797_v48 }
0x15a2   :  { %3692 = vmatpush3.bf16.msra.mxu0 %v4809_v58  ;;  %3700 = vmatpush3.bf16.msra.mxu1 %v4809_v58 }
0x15a3   :  { %3705 = vmatprep.subr.bf16.mxu0 %v4312_v1  ;;  %3713 = vmatprep.subr.bf16.mxu1 %v4312_v1 }
0x15ac   :  { %v3972_v37 = vpop.eup %3971 }
0x15ad   :  { %v3974_v50 = vpop.eup %3973  ;;  %1414 = vrot.lane.b32.xlu0 %v3972_v37, %s4314_s5 }
0x15ae   :  { %1412 = vrot.lane.b32.xlu1 %v3974_v50, %s4314_s5 }
0x15b1   :  { %1425 = vrot.lane.b32.xlu0 %v1422_v51, %s4315_s11 }
0x15b2   :  { %1423 = vrot.lane.b32.xlu1 %v1421_v53, %s4315_s11 }
0x15b6   :  { %1438 = vperm.xlu1 %3826, %v3490_v30  }
0x15ba   :  { %1806 = vrot.lane.b32.xlu1 %v3457_v9, %s4302_s27 }
0x161f   :  { %v1415_v56 = vpop.permute.xlu0 %1414 }
0x1620   :  { %v1413_v15 = vpop.permute.xlu1 %1412  ;;  %v1419_v61 = vmul.f32 %v1415_v56, %v1409_v54 }
0x1621   :  { %v1418_v2 = vmul.f32 %v1413_v15, %v1408_v59 }
0x1623   :  { %v1426_v60 = vpop.permute.xlu0 %1425 }
0x1624   :  { %v1430_v62 = vmul.f32 %v3970_v39, %v1426_v60  ;;  %v1424_v47 = vpop.permute.xlu1 %1423 }
0x1625   :  { %v1429_v3 = vmul.f32 %v3968_v38, %v1424_v47 }
0x1626   :  { %v1432_v5 = vadd.f32 %v1430_v62, %v1419_v61 }
0x1627   :  { %v1431_v6 = vadd.f32 %v1429_v3, %v1418_v2 }
0x1628   :  { %v1444_v11 = vrot.slane %v1432_v5, 6  ;;  %v1451_v14 = vsub.f32 %v1432_v5, %v1426_v60 }
0x1629   :  { %v1443_v8 = vrot.slane %v1431_v6, 7  ;;  %v1450_v19 = vsub.f32 %v1431_v6, %v1424_v47 }
0x162a   :  { %v1455_v57 = vrot.slane %v1451_v14, 6 }
0x162b   :  { %v1454_v23 = vrot.slane %v1450_v19, 7  ;;  %v4817_v25 = vsel %vm473_vm5, %v1444_v11, %v1443_v8 }
0x162d   :  { %v1456_v26 = vsel %vm473_vm5, %v1455_v57, %v1454_v23  ;;  %v4864_v57 = vadd.f32 %v3452_v45, %v4560_v18 }
0x162e   :  { %1457 = vrot.lane.b32.xlu0 %v1456_v26, %s4314_s5  ;;  %v4867_v26 = vadd.f32 %v3452_v45, %v4562_v21 }
0x1631   :  { %v4821_v29 = vpop.permute.xlu1 %1438 }
0x1635   :  { %v4836_v35 = vpop.permute.xlu1 %1806 }
0x16a0   :  { %v1458_v31 = vpop.permute.xlu0 %1457 }
0x16a1   :  { %v1460_v17 = vmul.f32 %v1458_v31, %v4821_v29 }
0x16a3   :  { %v4825_v20 = vadd.f32 %v1460_v17, %v4771_v4 }
0x16a5   :  { %v1739_v33 = vpack.c.bf16 %v4825_v20, %v4825_v20 }
0x16a7   :  { %3694 = vmatmul.mubr.msk.bf16.vlgmr.msra.gmra.mxu0 %vm217_vm3, %v1739_v33 }
0x16a8   :  { %3706 = vmatpush3.bf16.msra.mxu0 %v4798_v28  ;;  %3709 = vmatprep.mubr.msk.bf16.mxu0 %vm4313_vm0, %v4312_v1 }
0x16a9   :  { %3707 = vmatprep.subr.bf16.mxu0 %v4312_v1 }
0x16ac   :  { %3708 = vmatpush3.bf16.msra.mxu0 %v4809_v58 }
0x16ad   :  { %3721 = vmatprep.subr.bf16.mxu0 %v4312_v1 }
0x1767   :  { %v1789_v4 = vpop.f32.mrf.mxu0 }
0x1768   :  { %v1809_v36 = vadd.f32 %v4836_v35, %v1789_v4  ;;  %v1799_v37 = vadd.f32 %v1798_v49, %v1789_v4 }
0x1769   :  { %v3695_v38 = vpop.f32.mrf.mxu0 }
0x176a   :  { %1811 = vrot.lane.b32.xlu0 %v1809_v36, %s4302_s27  ;;  %v3494_v50 = vmul.f32 -1.442695, %v1799_v37 }
0x176b   :  { %v1792_v39 = vpop.f32.mrf.mxu0 }
0x176c   :  { %3975 = vpow2.f32 %v3494_v50 }
0x176d   :  { %v3696_v27 = vpop.f32.mrf.mxu0 }
0x1779   :  { %v3976_v51 = vpop.eup %3975 }
0x177a   :  { %v1803_v53 = vadd.f32 1.0, %v3976_v51 }
0x177c   :  { %3977 = vrcp.f32 %v1803_v53 }
0x1789   :  { %v3978_v55 = vpop.eup %3977 }
0x178a   :  { %v1821_v60 = vsub.f32 1.0, %v3978_v55 }
0x17dc   :  { %v1812_v30 = vpop.permute.xlu0 %1811 }
0x17dd   :  { %v1814_v56 = vmul.f32 %v3978_v55, %v1812_v30 }
0x17df   :  { %1816 = vrot.lane.b32.xlu1 %v1814_v56, %s4302_s27 }
0x17e3   :  { %1828 = vrot.lane.b32.xlu1 %v4825_v20, %s4315_s11 }
0x1851   :  { %v1817_v7 = vpop.permute.xlu1 %1816 }
0x1852   :  { %v1819_v15 = vadd.f32 %v1817_v7, %v1798_v49 }
0x1854   :  { %3979 = vtanh.f32 %v1819_v15 }
0x1855   :  { %v1829_v59 = vpop.permute.xlu1 %1828 }
0x1856   :  { %v1831_v62 = vmul.f32 %v3978_v55, %v1829_v59 }
0x1861   :  { %v3980_v54 = vpop.eup %3979 }
0x1862   :  { %1823 = vrot.lane.b32.xlu0 %v3980_v54, %s4314_s5 }
0x18d4   :  { %v1824_v61 = vpop.permute.xlu0 %1823 }
0x18d5   :  { %v1826_v47 = vmul.f32 %v1824_v61, %v1821_v60 }
0x18d7   :  { %v4848_v2 = vadd.f32 %v1831_v62, %v1826_v47 }
0x18d9   :  { %v1833_v3 = vpack.c.bf16 %v4848_v2, %v4848_v2  ;;  %v1934_v54 = vrot.slane %v4848_v2, 1 }
0x18db   :  { %1835 = vrot.lane.b32.xlu0 %v1833_v3, %s4314_s5 }
0x194d   :  { %v1836_v5 = vpop.permute.xlu0 %1835 }
0x194e   :  { %3702 = vmatmul.mubr.msk.bf16.vlgmr.msra.gmra.mxu1 %vm217_vm3, %v1836_v5 }
0x194f   :  { %3714 = vmatpush3.bf16.msra.mxu1 %v4798_v28  ;;  %3717 = vmatprep.mubr.msk.bf16.mxu1 %vm4313_vm0, %v4312_v1 }
0x1950   :  { %3715 = vmatprep.subr.bf16.mxu1 %v4312_v1 }
0x1953   :  { %3716 = vmatpush3.bf16.msra.mxu1 %v4809_v58 }
0x1954   :  { %3729 = vmatprep.subr.bf16.mxu1 %v4312_v1 }
0x1a0e   :  { %v1874_v6 = vpop.f32.mrf.mxu1 }
0x1a0f   :  { %v1898_v9 = vadd.f32 %v1874_v6, %v4836_v35  ;;  %v1881_v23 = vrot.slane %v1874_v6, 1  ;;  %v1884_v31 = vadd.f32 %v1874_v6, %v4864_v57 }
0x1a10   :  { %v3703_v11 = vpop.f32.mrf.mxu1 }
0x1a11   :  { %1901 = vrot.lane.b32.xlu0 %v1898_v9, %s4302_s27  ;;  %v1900_v14 = vrot.slane %v1898_v9, 1  ;;  %v1885_v17 = vadd.f32 %v1881_v23, %v4867_v26  ;;  %v3496_v33 = vmul.f32 -1.442695, %v1884_v31 }
0x1a12   :  { %v1877_v8 = vpop.f32.mrf.mxu1 }
0x1a13   :  { %1903 = vrot.lane.b32.xlu1 %v1900_v14, %s4302_s27  ;;  %v3497_v4 = vmul.f32 -1.442695, %v1885_v17  ;;  %3981 = vpow2.f32 %v3496_v33 }
0x1a14   :  { %v3704_v19 = vpop.f32.mrf.mxu1 }
0x1a15   :  { %3983 = vpow2.f32 %v3497_v4 }
0x1a20   :  { %v3982_v36 = vpop.eup %3981 }
0x1a21   :  { %v1892_v39 = vadd.f32 1.0, %v3982_v36 }
0x1a22   :  { %v3984_v38 = vpop.eup %3983 }
0x1a23   :  { %v1893_v27 = vadd.f32 1.0, %v3984_v38  ;;  %3985 = vrcp.f32 %v1892_v39 }
0x1a25   :  { %3987 = vrcp.f32 %v1893_v27 }
0x1a30   :  { %v3986_v18 = vpop.eup %3985 }
0x1a31   :  { %v1921_v55 = vsub.f32 1.0, %v3986_v18  ;;  %v1937_v56 = vmul.f32 %v3986_v18, %v4848_v2 }
0x1a32   :  { %v3988_v46 = vpop.eup %3987 }
0x1a33   :  { %v1922_v15 = vsub.f32 1.0, %v3988_v46  ;;  %v1938_v61 = vmul.f32 %v3988_v46, %v1934_v54 }
0x1a83   :  { %v1902_v40 = vpop.permute.xlu0 %1901 }
0x1a84   :  { %v1907_v41 = vmul.f32 %v3986_v18, %v1902_v40 }
0x1a85   :  { %v1904_v21 = vpop.permute.xlu1 %1903 }
0x1a86   :  { %v1908_v45 = vmul.f32 %v3988_v46, %v1904_v21  ;;  %1911 = vrot.lane.b32.xlu0 %v1907_v41, %s4302_s27 }
0x1a88   :  { %1913 = vrot.lane.b32.xlu1 %v1908_v45, %s4302_s27 }
0x1af8   :  { %v1912_v48 = vpop.permute.xlu0 %1911 }
0x1af9   :  { %v1917_v49 = vadd.f32 %v1912_v48, %v4864_v57 }
0x1afa   :  { %v1914_v37 = vpop.permute.xlu1 %1913 }
0x1afb   :  { %3989 = vtanh.f32 %v1917_v49  ;;  %v1918_v50 = vadd.f32 %v1914_v37, %v4867_v26 }
0x1afd   :  { %3991 = vtanh.f32 %v1918_v50 }
0x1b08   :  { %v3990_v51 = vpop.eup %3989 }
0x1b09   :  { %1925 = vrot.lane.b32.xlu0 %v3990_v51, %s4314_s5 }
0x1b0a   :  { %v3992_v53 = vpop.eup %3991 }
0x1b0b   :  { %1927 = vrot.lane.b32.xlu1 %v3992_v53, %s4314_s5 }
0x1b7b   :  { %v1926_v30 = vpop.permute.xlu0 %1925 }
0x1b7c   :  { %v1931_v7 = vmul.f32 %v1926_v30, %v1921_v55 }
0x1b7d   :  { %v1928_v59 = vpop.permute.xlu1 %1927 }
0x1b7e   :  { %v4879_v60 = vadd.f32 %v1937_v56, %v1931_v7  ;;  %v1932_v62 = vmul.f32 %v1928_v59, %v1922_v15 }
0x1b80   :  { %v4881_v47 = vadd.f32 %v1938_v61, %v1932_v62  ;;  %v1941_v3 = vpack.c.bf16 %v4879_v60, %v4879_v60  ;;  %v2729_v5 = vrot.slane %v4879_v60, 6 }
0x1b82   :  { %v1942_v6 = vpack.c.bf16 %v4881_v47, %v4881_v47  ;;  %v2730_v9 = vrot.slane %v4881_v47, 6  ;;  %v1945_v8 = vunpack.c.l.b16 %v1941_v3 }
0x1b84   :  { %v1946_v11 = vunpack.c.l.b16 %v1942_v6  ;;  %v4889_v14 = vpack.i.bf16 %v2730_v9, %v2729_v5  ;;  %v2051_v5 = vrot.slane %v4881_v47, 7 }
0x1b86   :  { %v1947_v19 = vrot.slane %v1946_v11, 7 }
0x1b88   :  { %v1948_v23 = vsel %vm473_vm5, %v1947_v19, %v1945_v8  ;;  %v2050_v19 = vrot.slane %v4879_v60, 7 }
0x1b89   :  { %v1949_v31 = vpack.c.b16 %v1948_v23, %v1948_v23 }
0x1b8b   :  { %1950 = vrot.lane.b32.xlu1 %v1949_v31, %s4314_s5 }
0x1bfd   :  { %v1951_v17 = vpop.permute.xlu1 %1950 }
0x1bfe   :  { %3710 = vmatmul.mubr.msk.bf16.vlgmr.msra.gmra.mxu0 %vm217_vm3, %v1951_v17 }
0x1bff   :  { %3722 = vmatpush3.bf16.msra.mxu0 %v4798_v28  ;;  %3725 = vmatprep.mubr.msk.bf16.mxu0 %vm4313_vm0, %v4312_v1 }
0x1c00   :  { %3723 = vmatprep.subr.bf16.mxu0 %v4312_v1 }
0x1c03   :  { %3724 = vmatpush3.bf16.msra.mxu0 %v4809_v58 }
0x1c04   :  { %3737 = vmatprep.subr.bf16.mxu0 %v4312_v1 }
0x1cbe   :  { %v1989_v33 = vpop.f32.mrf.mxu0 }
0x1cbf   :  { %v2013_v4 = vadd.f32 %v1989_v33, %v4836_v35  ;;  %v1996_v18 = vrot.slane %v1989_v33, 7  ;;  %v2000_v40 = vadd.f32 %v1989_v33, %v4867_v26 }
0x1cc0   :  { %v3711_v36 = vpop.f32.mrf.mxu0 }
0x1cc1   :  { %2018 = vrot.lane.b32.xlu1 %v2013_v4, %s4302_s27  ;;  %v2015_v38 = vrot.slane %v2013_v4, 7  ;;  %v1999_v41 = vadd.f32 %v1996_v18, %v4864_v57  ;;  %v3500_v46 = vmul.f32 -1.442695, %v2000_v40 }
0x1cc2   :  { %v1992_v39 = vpop.f32.mrf.mxu0 }
0x1cc3   :  { %2016 = vrot.lane.b32.xlu0 %v2015_v38, %s4302_s27  ;;  %v3499_v21 = vmul.f32 -1.442695, %v1999_v41  ;;  %3993 = vpow2.f32 %v3500_v46 }
0x1cc4   :  { %v3712_v27 = vpop.f32.mrf.mxu0 }
0x1cc5   :  { %3995 = vpow2.f32 %v3499_v21 }
0x1cd0   :  { %v3994_v45 = vpop.eup %3993 }
0x1cd1   :  { %v2008_v49 = vadd.f32 1.0, %v3994_v45 }
0x1cd2   :  { %v3996_v48 = vpop.eup %3995 }
0x1cd3   :  { %v2007_v37 = vadd.f32 1.0, %v3996_v48  ;;  %3997 = vrcp.f32 %v2008_v49 }
0x1cd5   :  { %3999 = vrcp.f32 %v2007_v37 }
0x1ce0   :  { %v3998_v50 = vpop.eup %3997 }
0x1ce1   :  { %v2037_v3 = vsub.f32 1.0, %v3998_v50  ;;  %v2055_v9 = vmul.f32 %v3998_v50, %v2051_v5 }
0x1ce2   :  { %v4000_v55 = vpop.eup %3999 }
0x1ce3   :  { %v2036_v8 = vsub.f32 1.0, %v4000_v55  ;;  %v2054_v17 = vmul.f32 %v4000_v55, %v2050_v19 }
0x1d33   :  { %v2019_v51 = vpop.permute.xlu1 %2018 }
0x1d34   :  { %v2023_v53 = vmul.f32 %v3998_v50, %v2019_v51 }
0x1d35   :  { %v2017_v30 = vpop.permute.xlu0 %2016 }
0x1d36   :  { %v2022_v56 = vmul.f32 %v4000_v55, %v2017_v30  ;;  %2028 = vrot.lane.b32.xlu1 %v2023_v53, %s4302_s27 }
0x1d38   :  { %2026 = vrot.lane.b32.xlu0 %v2022_v56, %s4302_s27 }
0x1da8   :  { %v2029_v7 = vpop.permute.xlu1 %2028 }
0x1da9   :  { %v2033_v15 = vadd.f32 %v2029_v7, %v4867_v26 }
0x1daa   :  { %v2027_v54 = vpop.permute.xlu0 %2026 }
0x1dab   :  { %4001 = vtanh.f32 %v2033_v15  ;;  %v2032_v59 = vadd.f32 %v2027_v54, %v4864_v57 }
0x1dad   :  { %4003 = vtanh.f32 %v2032_v59 }
0x1db8   :  { %v4002_v61 = vpop.eup %4001 }
0x1db9   :  { %2042 = vrot.lane.b32.xlu1 %v4002_v61, %s4314_s5 }
0x1dba   :  { %v4004_v62 = vpop.eup %4003 }
0x1dbb   :  { %2040 = vrot.lane.b32.xlu0 %v4004_v62, %s4314_s5 }
0x1e2b   :  { %v2043_v6 = vpop.permute.xlu1 %2042 }
0x1e2c   :  { %v2047_v11 = vmul.f32 %v2043_v6, %v2037_v3 }
0x1e2d   :  { %v2041_v23 = vpop.permute.xlu0 %2040 }
0x1e2e   :  { %v4915_v31 = vadd.f32 %v2055_v9, %v2047_v11  ;;  %v2046_v33 = vmul.f32 %v2041_v23, %v2036_v8 }
0x1e30   :  { %v4919_v4 = vadd.f32 %v2054_v17, %v2046_v33  ;;  %v2059_v36 = vpack.c.bf16 %v4915_v31, %v4915_v31  ;;  %v2738_v38 = vrot.slane %v4915_v31, 6 }
0x1e32   :  { %v2058_v39 = vpack.c.bf16 %v4919_v4, %v4919_v4  ;;  %v2737_v27 = vrot.slane %v4919_v4, 6  ;;  %v2063_v41 = vunpack.c.l.b16 %v2059_v36 }
0x1e34   :  { %v2062_v18 = vunpack.c.l.b16 %v2058_v39  ;;  %v4927_v40 = vpack.i.bf16 %v2738_v38, %v2737_v27 }
0x1e36   :  { %v2064_v46 = vrot.slane %v2062_v18, 1 }
0x1e38   :  { %v2065_v21 = vsel %vm473_vm5, %v2063_v41, %v2064_v46 }
0x1e39   :  { %v2066_v45 = vpack.c.b16 %v2065_v21, %v2065_v21 }
0x1e3b   :  { %2067 = vrot.lane.b32.xlu0 %v2066_v45, %s4314_s5  ;;  %v2170_v45 = vrot.slane %v4915_v31, 7 }
0x1ead   :  { %v2068_v48 = vpop.permute.xlu0 %2067 }
0x1eae   :  { %3718 = vmatmul.mubr.msk.bf16.vlgmr.msra.gmra.mxu1 %vm217_vm3, %v2068_v48 }
0x1eaf   :  { %3730 = vmatpush3.bf16.msra.mxu1 %v4798_v28  ;;  %3733 = vmatprep.mubr.msk.bf16.mxu1 %vm4313_vm0, %v4312_v1 }
0x1eb0   :  { %3731 = vmatprep.subr.bf16.mxu1 %v4312_v1 }
0x1eb3   :  { %3732 = vmatpush3.bf16.msra.mxu1 %v4809_v58 }
0x1eb4   :  { %3745 = vmatprep.subr.bf16.mxu1 %v4312_v1 }
0x1f6e   :  { %v2106_v49 = vpop.f32.mrf.mxu1 }
0x1f6f   :  { %v2131_v37 = vadd.f32 %v2106_v49, %v4836_v35  ;;  %v2113_v56 = vrot.slane %v2106_v49, 6  ;;  %v2114_v7 = vrot.slane %v2106_v49, 7 }
0x1f70   :  { %v3719_v50 = vpop.f32.mrf.mxu1 }
0x1f71   :  { %v2134_v51 = vrot.slane %v2131_v37, 7  ;;  %v2133_v53 = vrot.slane %v2131_v37, 6  ;;  %v2117_v15 = vadd.f32 %v2113_v56, %v4864_v57  ;;  %v2118_v54 = vadd.f32 %v2114_v7, %v4867_v26 }
0x1f72   :  { %v2109_v55 = vpop.f32.mrf.mxu1  ;;  %v2169_v37 = vrot.slane %v4919_v4, 7 }
0x1f73   :  { %2137 = vrot.lane.b32.xlu0 %v2134_v51, %s4302_s27  ;;  %2135 = vrot.lane.b32.xlu1 %v2133_v53, %s4302_s27  ;;  %v3502_v59 = vmul.f32 -1.442695, %v2117_v15  ;;  %v3503_v61 = vmul.f32 -1.442695, %v2118_v54 }
0x1f74   :  { %v3720_v30 = vpop.f32.mrf.mxu1 }
0x1f75   :  { %4005 = vpow2.f32 %v3502_v59 }
0x1f76   :  { %4007 = vpow2.f32 %v3503_v61 }
0x1f82   :  { %v4006_v62 = vpop.eup %4005 }
0x1f83   :  { %v4008_v3 = vpop.eup %4007  ;;  %v2125_v6 = vadd.f32 1.0, %v4006_v62 }
0x1f84   :  { %v2126_v9 = vadd.f32 1.0, %v4008_v3 }
0x1f85   :  { %4009 = vrcp.f32 %v2125_v6 }
0x1f86   :  { %4011 = vrcp.f32 %v2126_v9 }
0x1f92   :  { %v4010_v11 = vpop.eup %4009 }
0x1f93   :  { %v4012_v8 = vpop.eup %4011  ;;  %v2155_v49 = vsub.f32 1.0, %v4010_v11  ;;  %v2173_v55 = vmul.f32 %v4010_v11, %v2169_v37 }
0x1f94   :  { %v2156_v21 = vsub.f32 1.0, %v4012_v8  ;;  %v2174_v50 = vmul.f32 %v4012_v8, %v2170_v45 }
0x1fe5   :  { %v2138_v23 = vpop.permute.xlu0 %2137  ;;  %v2136_v17 = vpop.permute.xlu1 %2135 }
0x1fe6   :  { %v2142_v33 = vmul.f32 %v4012_v8, %v2138_v23  ;;  %v2141_v36 = vmul.f32 %v4010_v11, %v2136_v17 }
0x1fe8   :  { %2147 = vrot.lane.b32.xlu0 %v2142_v33, %s4302_s27  ;;  %2145 = vrot.lane.b32.xlu1 %v2141_v36, %s4302_s27 }
0x205a   :  { %v2148_v38 = vpop.permute.xlu0 %2147  ;;  %v2146_v39 = vpop.permute.xlu1 %2145 }
0x205b   :  { %v2152_v27 = vadd.f32 %v2148_v38, %v4867_v26  ;;  %v2151_v18 = vadd.f32 %v2146_v39, %v4864_v57 }
0x205d   :  { %4013 = vtanh.f32 %v2152_v27 }
0x205e   :  { %4015 = vtanh.f32 %v2151_v18 }
0x206a   :  { %v4014_v41 = vpop.eup %4013 }
0x206b   :  { %v4016_v46 = vpop.eup %4015  ;;  %2161 = vrot.lane.b32.xlu0 %v4014_v41, %s4314_s5 }
0x206c   :  { %2159 = vrot.lane.b32.xlu1 %v4016_v46, %s4314_s5 }
0x20dd   :  { %v2162_v48 = vpop.permute.xlu0 %2161 }
0x20de   :  { %v2166_v51 = vmul.f32 %v2162_v48, %v2156_v21  ;;  %v2160_v53 = vpop.permute.xlu1 %2159 }
0x20df   :  { %v2165_v30 = vmul.f32 %v2160_v53, %v2155_v49 }
0x20e0   :  { %v4955_v56 = vadd.f32 %v2174_v50, %v2166_v51 }
0x20e1   :  { %v4957_v7 = vadd.f32 %v2173_v55, %v2165_v30 }
0x20e2   :  { %v2178_v15 = vpack.c.bf16 %v4955_v56, %v4955_v56  ;;  %v2746_v54 = vrot.slane %v4955_v56, 6 }
0x20e3   :  { %v2177_v59 = vpack.c.bf16 %v4957_v7, %v4957_v7  ;;  %v2745_v61 = vrot.slane %v4957_v7, 6 }
0x20e4   :  { %v2182_v62 = vunpack.c.l.b16 %v2178_v15 }
0x20e5   :  { %v2181_v3 = vunpack.c.l.b16 %v2177_v59  ;;  %v4965_v6 = vpack.i.bf16 %v2746_v54, %v2745_v61 }
0x20e6   :  { %v2184_v9 = vrot.slane %v2182_v62, 1 }
0x20e7   :  { %v2183_v11 = vrot.slane %v2181_v3, 2 }
0x20e9   :  { %v2185_v8 = vsel %vm473_vm5, %v2184_v9, %v2183_v11 }
0x20ea   :  { %v2186_v23 = vpack.c.b16 %v2185_v8, %v2185_v8 }
0x20ec   :  { %2187 = vrot.lane.b32.xlu1 %v2186_v23, %s4314_s5 }
0x215e   :  { %v2188_v17 = vpop.permute.xlu1 %2187 }
0x215f   :  { %3726 = vmatmul.mubr.msk.bf16.vlgmr.msra.gmra.mxu0 %vm217_vm3, %v2188_v17 }
0x2160   :  { %3738 = vmatpush3.bf16.msra.mxu0 %v4798_v28  ;;  %3741 = vmatprep.mubr.msk.bf16.mxu0 %vm4313_vm0, %v4312_v1 }
0x2161   :  { %3739 = vmatprep.subr.bf16.mxu0 %v4312_v1 }
0x2164   :  { %3740 = vmatpush3.bf16.msra.mxu0 %v4809_v58 }
0x2165   :  { %3753 = vmatprep.subr.bf16.mxu0 %v4312_v1 }
0x221f   :  { %v2226_v33 = vpop.f32.mrf.mxu0 }
0x2220   :  { %v2251_v36 = vadd.f32 %v2226_v33, %v4836_v35  ;;  %v2233_v46 = vrot.slane %v2226_v33, 5  ;;  %v2234_v21 = vrot.slane %v2226_v33, 6 }
0x2221   :  { %v3727_v38 = vpop.f32.mrf.mxu0 }
0x2222   :  { %v2254_v39 = vrot.slane %v2251_v36, 6  ;;  %v2253_v27 = vrot.slane %v2251_v36, 5  ;;  %v2237_v48 = vadd.f32 %v2233_v46, %v4864_v57  ;;  %v2238_v49 = vadd.f32 %v2234_v21, %v4867_v26 }
0x2223   :  { %v2229_v18 = vpop.f32.mrf.mxu0 }
0x2224   :  { %2257 = vrot.lane.b32.xlu1 %v2254_v39, %s4302_s27  ;;  %2255 = vrot.lane.b32.xlu0 %v2253_v27, %s4302_s27  ;;  %v3505_v50 = vmul.f32 -1.442695, %v2237_v48  ;;  %v3506_v51 = vmul.f32 -1.442695, %v2238_v49  ;;  %v2290_v39 = vrot.slane %v4955_v56, 7 }
0x2225   :  { %v3728_v41 = vpop.f32.mrf.mxu0 }
0x2226   :  { %4017 = vpow2.f32 %v3505_v50  ;;  %v2289_v41 = vrot.slane %v4957_v7, 7 }
0x2227   :  { %4019 = vpow2.f32 %v3506_v51 }
0x2233   :  { %v4018_v53 = vpop.eup %4017 }
0x2234   :  { %v4020_v55 = vpop.eup %4019  ;;  %v2245_v30 = vadd.f32 1.0, %v4018_v53 }
0x2235   :  { %v2246_v15 = vadd.f32 1.0, %v4020_v55 }
0x2236   :  { %4021 = vrcp.f32 %v2245_v30 }
0x2237   :  { %4023 = vrcp.f32 %v2246_v15 }
0x2243   :  { %v4022_v54 = vpop.eup %4021 }
0x2244   :  { %v4024_v59 = vpop.eup %4023  ;;  %v2275_v18 = vsub.f32 1.0, %v4022_v54  ;;  %v2293_v49 = vmul.f32 %v4022_v54, %v2289_v41 }
0x2245   :  { %v2276_v38 = vsub.f32 1.0, %v4024_v59  ;;  %v2294_v46 = vmul.f32 %v4024_v59, %v2290_v39 }
0x2296   :  { %v2258_v61 = vpop.permute.xlu1 %2257  ;;  %v2256_v62 = vpop.permute.xlu0 %2255 }
0x2297   :  { %v2262_v3 = vmul.f32 %v4024_v59, %v2258_v61  ;;  %v2261_v9 = vmul.f32 %v4022_v54, %v2256_v62 }
0x2299   :  { %2267 = vrot.lane.b32.xlu1 %v2262_v3, %s4302_s27  ;;  %2265 = vrot.lane.b32.xlu0 %v2261_v9, %s4302_s27 }
0x230b   :  { %v2268_v11 = vpop.permute.xlu1 %2267  ;;  %v2266_v8 = vpop.permute.xlu0 %2265 }
0x230c   :  { %v2272_v23 = vadd.f32 %v2268_v11, %v4867_v26  ;;  %v2271_v17 = vadd.f32 %v2266_v8, %v4864_v57 }
0x230e   :  { %4025 = vtanh.f32 %v2272_v23 }
0x230f   :  { %4027 = vtanh.f32 %v2271_v17 }
0x231b   :  { %v4026_v33 = vpop.eup %4025 }
0x231c   :  { %v4028_v36 = vpop.eup %4027  ;;  %2281 = vrot.lane.b32.xlu1 %v4026_v33, %s4314_s5 }
0x231d   :  { %2279 = vrot.lane.b32.xlu0 %v4028_v36, %s4314_s5 }
0x238e   :  { %v2282_v27 = vpop.permute.xlu1 %2281 }
0x238f   :  { %v2286_v21 = vmul.f32 %v2282_v27, %v2276_v38  ;;  %v2280_v48 = vpop.permute.xlu0 %2279 }
0x2390   :  { %v2285_v50 = vmul.f32 %v2280_v48, %v2275_v18 }
0x2391   :  { %v4993_v51 = vadd.f32 %v2294_v46, %v2286_v21 }
0x2392   :  { %v4995_v53 = vadd.f32 %v2293_v49, %v2285_v50 }
0x2393   :  { %v2298_v55 = vpack.c.bf16 %v4993_v51, %v4993_v51  ;;  %v2754_v30 = vrot.slane %v4993_v51, 6 }
0x2394   :  { %v2297_v15 = vpack.c.bf16 %v4995_v53, %v4995_v53  ;;  %v2753_v59 = vrot.slane %v4995_v53, 6 }
0x2395   :  { %v2302_v61 = vunpack.c.l.b16 %v2298_v55 }
0x2396   :  { %v2301_v62 = vunpack.c.l.b16 %v2297_v15  ;;  %v5003_v3 = vpack.i.bf16 %v2754_v30, %v2753_v59 }
0x2397   :  { %v2304_v54 = vrot.slane %v2302_v61, 2 }
0x2398   :  { %v2303_v9 = vrot.slane %v2301_v62, 3 }
0x239a   :  { %v2305_v11 = vsel %vm473_vm5, %v2304_v54, %v2303_v9 }
0x239b   :  { %v2306_v8 = vpack.c.b16 %v2305_v11, %v2305_v11 }
0x239d   :  { %2307 = vrot.lane.b32.xlu0 %v2306_v8, %s4314_s5 }
0x240f   :  { %v2308_v23 = vpop.permute.xlu0 %2307 }
0x2410   :  { %3734 = vmatmul.mubr.msk.bf16.vlgmr.msra.gmra.mxu1 %vm217_vm3, %v2308_v23 }
0x2411   :  { %3746 = vmatpush3.bf16.msra.mxu1 %v4798_v28  ;;  %3749 = vmatprep.mubr.msk.bf16.mxu1 %vm4313_vm0, %v4312_v1 }
0x2412   :  { %3747 = vmatprep.subr.bf16.mxu1 %v4312_v1 }
0x2415   :  { %3748 = vmatpush3.bf16.msra.mxu1 %v4809_v58 }
0x2416   :  { %3761 = vmatprep.subr.mxu1 %v4312_v1 }
0x24d0   :  { %v2346_v17 = vpop.f32.mrf.mxu1 }
0x24d1   :  { %v2371_v33 = vadd.f32 %v2346_v17, %v4836_v35  ;;  %v2353_v46 = vrot.slane %v2346_v17, 4  ;;  %v2354_v21 = vrot.slane %v2346_v17, 5 }
0x24d2   :  { %v3735_v36 = vpop.f32.mrf.mxu1 }
0x24d3   :  { %v2374_v38 = vrot.slane %v2371_v33, 5  ;;  %v2373_v27 = vrot.slane %v2371_v33, 4  ;;  %v2357_v48 = vadd.f32 %v2353_v46, %v4864_v57  ;;  %v2358_v58 = vadd.f32 %v2354_v21, %v4867_v26 }
0x24d4   :  { %v2349_v18 = vpop.f32.mrf.mxu1 }
0x24d5   :  { %2377 = vrot.lane.b32.xlu0 %v2374_v38, %s4302_s27  ;;  %2375 = vrot.lane.b32.xlu1 %v2373_v27, %s4302_s27  ;;  %v3508_v49 = vmul.f32 -1.442695, %v2357_v48  ;;  %v3509_v50 = vmul.f32 -1.442695, %v2358_v58  ;;  %v2409_v48 = vrot.slane %v4995_v53, 7 }
0x24d6   :  { %v3736_v28 = vpop.f32.mrf.mxu1 }
0x24d7   :  { %4029 = vpow2.f32 %v3508_v49  ;;  %v2410_v28 = vrot.slane %v4993_v51, 7 }
0x24d8   :  { %4031 = vpow2.f32 %v3509_v50 }
0x24e4   :  { %v4030_v55 = vpop.eup %4029 }
0x24e5   :  { %v4032_v30 = vpop.eup %4031  ;;  %v2365_v15 = vadd.f32 1.0, %v4030_v55 }
0x24e6   :  { %v2366_v59 = vadd.f32 1.0, %v4032_v30 }
0x24e7   :  { %4033 = vrcp.f32 %v2365_v15 }
0x24e8   :  { %4035 = vrcp.f32 %v2366_v59 }
0x24f4   :  { %v4034_v61 = vpop.eup %4033 }
0x24f5   :  { %v4036_v62 = vpop.eup %4035  ;;  %v2395_v21 = vsub.f32 1.0, %v4034_v61  ;;  %v2413_v55 = vmul.f32 %v4034_v61, %v2409_v48 }
0x24f6   :  { %v2396_v18 = vsub.f32 1.0, %v4036_v62  ;;  %v2414_v58 = vmul.f32 %v4036_v62, %v2410_v28 }
0x2547   :  { %v2378_v54 = vpop.permute.xlu0 %2377  ;;  %v2376_v9 = vpop.permute.xlu1 %2375 }
0x2548   :  { %v2382_v11 = vmul.f32 %v4036_v62, %v2378_v54  ;;  %v2381_v8 = vmul.f32 %v4034_v61, %v2376_v9 }
0x254a   :  { %2387 = vrot.lane.b32.xlu0 %v2382_v11, %s4302_s27  ;;  %2385 = vrot.lane.b32.xlu1 %v2381_v8, %s4302_s27 }
0x25bc   :  { %v2388_v23 = vpop.permute.xlu0 %2387  ;;  %v2386_v17 = vpop.permute.xlu1 %2385 }
0x25bd   :  { %v2392_v33 = vadd.f32 %v2388_v23, %v4867_v26  ;;  %v2391_v36 = vadd.f32 %v2386_v17, %v4864_v57 }
0x25bf   :  { %4037 = vtanh.f32 %v2392_v33 }
0x25c0   :  { %4039 = vtanh.f32 %v2391_v36 }
0x25cc   :  { %v4038_v38 = vpop.eup %4037 }
0x25cd   :  { %v4040_v27 = vpop.eup %4039  ;;  %2401 = vrot.lane.b32.xlu0 %v4038_v38, %s4314_s5 }
0x25ce   :  { %2399 = vrot.lane.b32.xlu1 %v4040_v27, %s4314_s5 }
0x263f   :  { %v2402_v46 = vpop.permute.xlu0 %2401 }
0x2640   :  { %v2406_v49 = vmul.f32 %v2402_v46, %v2396_v18  ;;  %v2400_v50 = vpop.permute.xlu1 %2399 }
0x2641   :  { %v2405_v30 = vmul.f32 %v2400_v50, %v2395_v21 }
0x2642   :  { %v5031_v15 = vadd.f32 %v2414_v58, %v2406_v49 }
0x2643   :  { %v5033_v59 = vadd.f32 %v2413_v55, %v2405_v30 }
0x2644   :  { %v2418_v54 = vpack.c.bf16 %v5031_v15, %v5031_v15  ;;  %v2762_v9 = vrot.slane %v5031_v15, 6 }
0x2645   :  { %v2417_v11 = vpack.c.bf16 %v5033_v59, %v5033_v59  ;;  %v2761_v62 = vrot.slane %v5033_v59, 6 }
0x2646   :  { %v2422_v8 = vunpack.c.l.b16 %v2418_v54 }
0x2647   :  { %v2421_v23 = vunpack.c.l.b16 %v2417_v11  ;;  %v5041_v17 = vpack.i.bf16 %v2762_v9, %v2761_v62 }
0x2648   :  { %v2424_v61 = vrot.slane %v2422_v8, 3 }
0x2649   :  { %v2423_v33 = vrot.slane %v2421_v23, 4 }
0x264b   :  { %v2425_v36 = vsel %vm473_vm5, %v2424_v61, %v2423_v33 }
0x264c   :  { %v2426_v38 = vpack.c.b16 %v2425_v36, %v2425_v36 }
0x264e   :  { %2427 = vrot.lane.b32.xlu1 %v2426_v38, %s4314_s5 }
0x26c0   :  { %v2428_v27 = vpop.permute.xlu1 %2427 }
0x26c1   :  { %3742 = vmatmul.mubr.msk.bf16.vlgmr.msra.gmra.mxu0 %vm217_vm3, %v2428_v27 }
0x26c2   :  { %3757 = vmatprep.mubr.msk.bf16.mxu0 %vm4313_vm0, %v4312_v1 }
0x2781   :  { %v2466_v18 = vpop.f32.mrf.mxu0 }
0x2782   :  { %v2491_v46 = vadd.f32 %v2466_v18, %v4836_v35  ;;  %v2473_v30 = vrot.slane %v2466_v18, 3  ;;  %v2474_v54 = vrot.slane %v2466_v18, 4 }
0x2783   :  { %v3743_v21 = vpop.f32.mrf.mxu0 }
0x2784   :  { %v2494_v58 = vrot.slane %v2491_v46, 4  ;;  %v2493_v49 = vrot.slane %v2491_v46, 3  ;;  %v2477_v9 = vadd.f32 %v2473_v30, %v4864_v57  ;;  %v2478_v11 = vadd.f32 %v2474_v54, %v4867_v26 }
0x2785   :  { %v2469_v50 = vpop.f32.mrf.mxu0 }
0x2786   :  { %2497 = vrot.lane.b32.xlu1 %v2494_v58, %s4302_s27  ;;  %2495 = vrot.lane.b32.xlu0 %v2493_v49, %s4302_s27  ;;  %v3511_v62 = vmul.f32 -1.442695, %v2477_v9  ;;  %v3512_v8 = vmul.f32 -1.442695, %v2478_v11  ;;  %v4316_v49 = vmov 1966171168  }
0x2787   :  { %v3744_v55 = vpop.f32.mrf.mxu0  ;;  %v1464_v50 = vunpack.c.l.s4 %v4316_v49 }
0x2788   :  { %4041 = vpow2.f32 %v3511_v62 }
0x2789   :  { %4043 = vpow2.f32 %v3512_v8  ;;  %v1465_v55 = vunpack.c.0.s8 %v1464_v50 }
0x278b   :  { %v5058_v62 = vsub.s32 %v1465_v55, %v4841_v43 }
0x278d   :  { %v2697_v8 = vrot.slane %v4848_v2, %v5058_v62 }
0x2795   :  { %v4042_v23 = vpop.eup %4041 }
0x2796   :  { %v4044_v61 = vpop.eup %4043  ;;  %v2485_v33 = vadd.f32 1.0, %v4042_v23  ;;  %v2698_v23 = vcombine.high %v2697_v8, %v2697_v8 }
0x2797   :  { %v2486_v36 = vadd.f32 1.0, %v4044_v61 }
0x2798   :  { %4045 = vrcp.f32 %v2485_v33  ;;  %v5063_v61 = vrot.slane %v2698_v23, %v5058_v62  ;;  %v5066_v33 = vsub.s32 0, %v4841_v43  ;;  %v3870_v43 = vld [vmem:[#allocation10 + $0x8] sm:$0xff]  }
0x2799   :  { %4047 = vrcp.f32 %v2486_v36  ;;  %v5069_v36 = vrot.slane %v2697_v8, %v5058_v62  ;;  %3754 = vmatpush3.bf16.msra.mxu0 %v3870_v43 }
0x279a   :  { %3755 = vmatprep.subr.bf16.mxu0 %v4312_v1 }
0x279b   :  { %v2718_v2 = vrot.slane %v5069_v36, %v5066_v33 }
0x27a5   :  { %v4046_v38 = vpop.eup %4045 }
0x27a6   :  { %v4048_v27 = vpop.eup %4047 }
0x27f8   :  { %v2498_v46 = vpop.permute.xlu1 %2497  ;;  %v2496_v21 = vpop.permute.xlu0 %2495 }
0x27f9   :  { %v2502_v58 = vmul.f32 %v4048_v27, %v2498_v46  ;;  %v2501_v18 = vmul.f32 %v4046_v38, %v2496_v21  ;;  %v2722_v21 = vrot.slane %v5063_v61, %v5066_v33 }
0x27fb   :  { %2507 = vrot.lane.b32.xlu1 %v2502_v58, %s4302_s27  ;;  %2505 = vrot.lane.b32.xlu0 %v2501_v18, %s4302_s27  ;;  %v3827_v18 = vpack.i.bf16 %v2722_v21, %v2718_v2 }
0x286d   :  { %v2508_v30 = vpop.permute.xlu1 %2507  ;;  %v2506_v54 = vpop.permute.xlu0 %2505 }
0x286e   :  { %v2512_v9 = vadd.f32 %v2508_v30, %v4867_v26  ;;  %v2511_v11 = vadd.f32 %v2506_v54, %v4864_v57 }
0x2870   :  { %4049 = vtanh.f32 %v2512_v9 }
0x2871   :  { %4051 = vtanh.f32 %v2511_v11 }
0x287d   :  { %v4050_v46 = vpop.eup %4049 }
0x287e   :  { %v4052_v58 = vpop.eup %4051  ;;  %2521 = vrot.lane.b32.xlu1 %v4050_v46, %s4314_s5 }
0x287f   :  { %2519 = vrot.lane.b32.xlu0 %v4052_v58, %s4314_s5 }
0x2882   :  { %3833 = vrot.lane.b32.xlu1 %v4889_v14, %s4314_s5  ;;  %v3871_v14 = vld [vmem:[#allocation10] sm:$0xff]  }
0x2883   :  { %3828 = vrot.lane.b32.xlu0 %v3827_v18, %s4314_s5  ;;  %3756 = vmatpush3.bf16.msra.mxu0 %v3871_v14  ;;  %v5121_v18 = vrot.slane %v4549_v16, %v5058_v62 }
0x2884   :  { %3781 = vmatprep.subr.bf16.mxu0 %v4312_v1 }
0x2886   :  { %3843 = vrot.lane.b32.xlu1 %v4965_v6, %s4314_s5  ;;  %v2530_v6 = vrot.slane %v5031_v15, 7 }
0x2887   :  { %3838 = vrot.lane.b32.xlu0 %v4927_v40, %s4314_s5  ;;  %v2516_v40 = vsub.f32 1.0, %v4048_v27 }
0x288a   :  { %3853 = vrot.lane.b32.xlu1 %v5041_v17, %s4314_s5  ;;  %v2515_v17 = vsub.f32 1.0, %v4046_v38 }
0x288b   :  { %3848 = vrot.lane.b32.xlu0 %v5003_v3, %s4314_s5 }
0x288e   :  { %601 = vrot.lane.b32.xlu1 %v4582_v10, %s4314_s5  ;;  %v2529_v10 = vrot.slane %v5033_v59, 7 }
0x2890   :  { %v2533_v50 = vmul.f32 %v4046_v38, %v2529_v10 }
0x2892   :  { %882 = vrot.lane.b32.xlu1 %v4656_v32, %s4314_s5  ;;  %v2534_v32 = vmul.f32 %v4048_v27, %v2530_v6 }
0x2896   :  { %1164 = vrot.lane.b32.xlu1 %v4730_v52, %s4314_s5 }
0x289a   :  { %1446 = vrot.lane.b32.xlu1 %v4817_v25, %s4314_s5 }
0x28f0   :  { %v2522_v3 = vpop.permute.xlu1 %2521 }
0x28f1   :  { %v2526_v49 = vmul.f32 %v2522_v3, %v2516_v40  ;;  %v2520_v52 = vpop.permute.xlu0 %2519 }
0x28f2   :  { %v2525_v25 = vmul.f32 %v2520_v52, %v2515_v17  ;;  %v1470_v17 = vcombine.high %v5121_v18, %v5121_v18 }
0x28f3   :  { %v5104_v55 = vadd.f32 %v2534_v32, %v2526_v49 }
0x28f4   :  { %v5106_v30 = vadd.f32 %v2533_v50, %v2525_v25  ;;  %v3834_v54 = vpop.permute.xlu1 %3833  ;;  %v1484_v49 = vrot.slane %v1470_v17, %v5058_v62  ;;  %v2673_v25 = vrot.slane %v4825_v20, %v5058_v62 }
0x28f5   :  { %v2770_v9 = vrot.slane %v5104_v55, 6  ;;  %v2538_v27 = vpack.c.bf16 %v5104_v55, %v5104_v55  ;;  %v3829_v50 = vpop.permute.xlu0 %3828 }
0x28f6   :  { %v2769_v11 = vrot.slane %v5106_v30, 6  ;;  %v2537_v46 = vpack.c.bf16 %v5106_v30, %v5106_v30 }
0x28f7   :  { %v2542_v21 = vunpack.c.l.b16 %v2538_v27  ;;  %v2681_v27 = vrot.slane %v2673_v25, %v5058_v62 }
0x28f8   :  { %v3844_v8 = vpop.permute.xlu1 %3843  ;;  %v3857_v23 = vpack.i.bf16 %v2770_v9, %v2769_v11  ;;  %v2541_v58 = vunpack.c.l.b16 %v2537_v46  ;;  %v2674_v9 = vcombine.high %v2673_v25, %v2673_v25 }
0x28f9   :  { %v2544_v43 = vrot.slane %v2542_v21, 4  ;;  %v3839_v11 = vpop.permute.xlu0 %3838  ;;  %v3836_v21 = vunpack.i.h.bf16 %v3834_v54  ;;  %v3846_v20 = vunpack.i.h.bf16 %v3844_v8 }
0x28fa   :  { %3858 = vrot.lane.b32.xlu0 %v3857_v23, %s4314_s5  ;;  %v2543_v14 = vrot.slane %v2541_v58, 5  ;;  %v3830_v23 = vunpack.i.l.bf16 %v3829_v50  ;;  %v2688_v46 = vrot.slane %v2674_v9, %v5058_v62  ;;  %v3835_v58 = vunpack.i.l.bf16 %v3834_v54 }
0x28fc   :  { %v5115_v38 = vpop.permute.xlu1 %3853  ;;  %v2545_v32 = vsel %vm473_vm5, %v2544_v43, %v2543_v14  ;;  %v2777_v43 = vsel %vm1718_vm15, %v2681_v27, %v3830_v23  ;;  %v3841_v14 = vunpack.i.h.bf16 %v3839_v11  ;;  %vm1730_vm5 = vcmask 1044480  }
0x28fd   :  { %v3849_v17 = vpop.permute.xlu0 %3848  ;;  %v3856_v9 = vunpack.i.h.bf16 %v5115_v38 }
0x28fe   :  { %741 = vrot.lane.b32.xlu0 %v4619_v22, %s4314_s5 }
0x2900   :  { %v602_v2 = vpop.permute.xlu1 %601 }
0x2901   :  { %v604_v40 = vmul.f32 %v602_v2, %v4586_v12  ;;  %v2546_v12 = vpack.c.b16 %v2545_v32, %v2545_v32  ;;  %v3845_v32 = vunpack.i.l.bf16 %v3844_v8 }
0x2902   :  { %1023 = vrot.lane.b32.xlu0 %v4693_v42, %s4314_s5 }
0x2903   :  { %v5127_v3 = vrot.slane %v604_v40, %v5058_v62  ;;  %v3840_v40 = vunpack.i.l.bf16 %v3839_v11  ;;  %v3855_v11 = vunpack.i.l.bf16 %v5115_v38 }
0x2905   :  { %v1495_v22 = vcombine.high %v5127_v3, %v5127_v3 }
0x2906   :  { %1305 = vrot.lane.b32.xlu0 %v4763_v63, %s4314_s5  ;;  %v3831_v63 = vunpack.i.h.bf16 %v3829_v50  ;;  %v3850_v50 = vunpack.i.l.bf16 %v3849_v17 }
0x2907   :  { %v1509_v16 = vrot.slane %v1495_v22, %v5058_v62  ;;  %v883_v22 = vpop.permute.xlu1 %882 }
0x2908   :  { %v2778_v2 = vsel %vm1718_vm15, %v2688_v46, %v3831_v63  ;;  %v885_v25 = vmul.f32 %v883_v22, %v4660_v34  ;;  %v1502_v22 = vrot.slane %v5127_v3, %v5058_v62 }
0x2909   :  { %v1655_v42 = vrot.slane %v1509_v16, %v5066_v33  ;;  %v2779_v16 = vsel %vm1721_vm1, %v2777_v43, %v3835_v58 }
0x290a   :  { %2547 = vrot.lane.b32.xlu0 %v2546_v12, %s4314_s5  ;;  %v2780_v12 = vsel %vm1721_vm1, %v2778_v2, %v3836_v21  ;;  %v1540_v58 = vrot.slane %v885_v25, %v5058_v62 }
0x290b   :  { %v5141_v52 = vsel %vm1718_vm15, %v1484_v49, %v1655_v42  ;;  %v2781_v49 = vsel %vm1724_vm2, %v2779_v16, %v3840_v40  ;;  %v2782_v54 = vsel %vm1724_vm2, %v2780_v12, %v3841_v14  ;;  %v3851_v42 = vunpack.i.h.bf16 %v3849_v17  ;;  %v1165_v23 = vpop.permute.xlu1 %1164 }
0x290c   :  { %v2783_v8 = vsel %vm1727_vm4, %v2781_v49, %v3845_v32  ;;  %v2784_v63 = vsel %vm1727_vm4, %v2782_v54, %v3846_v20  ;;  %v1167_v43 = vmul.f32 %v1165_v23, %v4734_v13  ;;  %v1541_v12 = vcombine.high %v1540_v58, %v1540_v58 }
0x290d   :  { %v2785_v27 = vsel %vm1730_vm5, %v2783_v8, %v3850_v50  ;;  %v2786_v46 = vsel %vm1730_vm5, %v2784_v63, %v3851_v42  ;;  %v1651_v50 = vrot.slane %v1502_v22, %v5066_v33  ;;  %v1548_v3 = vrot.slane %v1540_v58, %v5058_v62 }
0x290e   :  { %v2787_v38 = vsel %vm1733_vm7, %v2785_v27, %v3855_v11  ;;  %v2788_v14 = vsel %vm1733_vm7, %v2786_v46, %v3856_v9  ;;  %v1586_v54 = vrot.slane %v1167_v43, %v5058_v62  ;;  %v1555_v9 = vrot.slane %v1541_v12, %v5058_v62 }
0x290f   :  { %v1447_v20 = vpop.permute.xlu1 %1446 }
0x2910   :  { %v1449_v13 = vmul.f32 %v1447_v20, %v4821_v29  ;;  %v1477_v29 = vrot.slane %v5121_v18, %v5058_v62  ;;  %v1587_v63 = vcombine.high %v1586_v54, %v1586_v54  ;;  %v1675_v43 = vrot.slane %v1555_v9, %v5066_v33 }
0x2912   :  { %v1632_v23 = vrot.slane %v1449_v13, %v5058_v62  ;;  %v1719_v58 = vsel %vm1718_vm15, %v1477_v29, %v1651_v50 }
0x2914   :  { %v1633_v20 = vcombine.high %v1632_v23, %v1632_v23 }
0x296c   :  { %v3859_v21 = vpop.permute.xlu0 %3858 }
0x296d   :  { %v3861_v2 = vunpack.i.h.bf16 %v3859_v21  ;;  %v3860_v34 = vunpack.i.l.bf16 %v3859_v21 }
0x296f   :  { %v2789_v40 = vsel %vm1736_vm6, %v2787_v38, %v3860_v34  ;;  %v2790_v17 = vsel %vm1736_vm6, %v2788_v14, %v3861_v2  ;;  %v1671_v2 = vrot.slane %v1548_v3, %v5066_v33  ;;  %v1594_v14 = vrot.slane %v1586_v54, %v5058_v62 }
0x2970   :  { %v2808_v32 = vpack.c.bf16 %v2790_v17, %v2789_v40  ;;  %v742_v16 = vpop.permute.xlu0 %741  ;;  %v1601_v40 = vrot.slane %v1587_v63, %v5058_v62  ;;  %v1640_v54 = vrot.slane %v1632_v23, %v5058_v62 }
0x2971   :  { %v744_v49 = vmul.f32 %v742_v16, %v4623_v24 }
0x2972   :  { %3758 = vmatmul.mubr.msk.bf16.vlgmr.msra.gmra.mxu0 %vm217_vm3, %v2808_v32 }
0x2973   :  { %v1517_v42 = vrot.slane %v744_v49, %v5058_v62  ;;  %3785 = vmatprep.mubr.msk.bf16.mxu0 %vm4313_vm0, %v4312_v1 }
0x2974   :  { %v1024_v25 = vpop.permute.xlu0 %1023 }
0x2975   :  { %v1518_v11 = vcombine.high %v1517_v42, %v1517_v42  ;;  %v1525_v24 = vrot.slane %v1517_v42, %v5058_v62  ;;  %v1026_v8 = vmul.f32 %v1024_v25, %v4697_v44 }
0x2977   :  { %v1532_v27 = vrot.slane %v1518_v11, %v5058_v62  ;;  %v1661_v46 = vrot.slane %v1525_v24, %v5066_v33  ;;  %v1563_v21 = vrot.slane %v1026_v8, %v5058_v62  ;;  %v1691_v11 = vrot.slane %v1594_v14, %v5066_v33 }
0x2978   :  { %v1306_v34 = vpop.permute.xlu0 %1305  ;;  %v1647_v24 = vrot.slane %v1633_v20, %v5058_v62 }
0x2979   :  { %v1665_v44 = vrot.slane %v1532_v27, %v5066_v33  ;;  %v1564_v38 = vcombine.high %v1563_v21, %v1563_v21  ;;  %v1571_v18 = vrot.slane %v1563_v21, %v5058_v62  ;;  %v1722_v17 = vsel %vm1721_vm1, %v1719_v58, %v1661_v46 }
0x297a   :  { %v1308_v22 = vmul.f32 %v1306_v34, %v4767_v0  ;;  %v1725_v50 = vsel %vm1724_vm2, %v1722_v17, %v1671_v2  ;;  %v1695_v0 = vrot.slane %v1601_v40, %v5066_v33  ;;  %v1711_v27 = vrot.slane %v1640_v54, %v5066_v33 }
0x297b   :  { %v1723_v32 = vsel %vm1721_vm1, %v5141_v52, %v1665_v44  ;;  %v1578_v16 = vrot.slane %v1564_v38, %v5058_v62  ;;  %v1681_v12 = vrot.slane %v1571_v18, %v5066_v33  ;;  %v1715_v2 = vrot.slane %v1647_v24, %v5066_v33 }
0x297c   :  { %v1609_v49 = vrot.slane %v1308_v22, %v5058_v62  ;;  %v2548_v13 = vpop.permute.xlu0 %2547  ;;  %v1726_v42 = vsel %vm1724_vm2, %v1723_v32, %v1675_v43 }
0x297d   :  { %v1685_v3 = vrot.slane %v1578_v16, %v5066_v33  ;;  %3750 = vmatmul.mubr.msk.bf16.vlgmr.msra.gmra.mxu1 %vm217_vm3, %v2548_v13  ;;  %v1728_v52 = vsel %vm1727_vm4, %v1725_v50, %v1681_v12 }
0x297e   :  { %v1610_v25 = vcombine.high %v1609_v49, %v1609_v49  ;;  %v1617_v9 = vrot.slane %v1609_v49, %v5058_v62  ;;  %3763 = vmatprep.mubr.msk.f32.mxu1 %vm4313_vm0, %v4312_v1  ;;  %v1731_v46 = vsel %vm1730_vm5, %v1728_v52, %v1691_v11 }
0x297f   :  { %v1729_v8 = vsel %vm1727_vm4, %v1726_v42, %v1685_v3 }
0x2980   :  { %v1624_v29 = vrot.slane %v1610_v25, %v5058_v62  ;;  %v1701_v63 = vrot.slane %v1617_v9, %v5066_v33  ;;  %v1732_v23 = vsel %vm1730_vm5, %v1729_v8, %v1695_v0 }
0x2982   :  { %v1705_v21 = vrot.slane %v1624_v29, %v5066_v33  ;;  %v1734_v58 = vsel %vm1733_vm7, %v1731_v46, %v1701_v63 }
0x2983   :  { %v1737_v34 = vsel %vm1736_vm6, %v1734_v58, %v1711_v27 }
0x2984   :  { %3762 = vmatpush3.xpose.msk.msra.mxu1 %vm217_vm3, %v1737_v34  ;;  %v1735_v62 = vsel %vm1733_vm7, %v1732_v23, %v1705_v21 }
0x2985   :  { %3766 = vmatprep.subr.mxu1 %v4312_v1  ;;  %v5226_v43 = vsel %vm1736_vm6, %v1735_v62, %v1715_v2 }
0x2a32   :  { %v2862_v44 = vpop.f32.mrf.mxu0 }
0x2a33   :  { %3764 = vmatmul.mubr.msk.f32.vlgmr.msra.gmra.mxu1 %vm217_vm3, %v2862_v44 }
0x2a34   :  { %3767 = vmatpush3.xpose.msk.msra.mxu1 %vm217_vm3, %v5226_v43  ;;  %v3759_v38 = vpop.f32.mrf.mxu0  ;;  %3768 = vmatprep.mubr.msk.f32.mxu1 %vm4313_vm0, %v4312_v1 }
0x2a35   :  { %3771 = vmatprep.subr.mxu1 %v4312_v1 }
0x2a36   :  { %v2865_v33 = vpop.f32.mrf.mxu0 }
0x2a37   :  { %3769 = vmatmul.mubr.msk.f32.vlgmr.msra.gmra.mxu1 %vm217_vm3, %v2865_v33 }
0x2a38   :  { %3772 = vmatpush3.msra.mxu1 %v1737_v34  ;;  %v3760_v18 = vpop.f32.mrf.mxu0  ;;  %3773 = vmatprep.mubr.msk.f32.mxu1 %vm4313_vm0, %v4312_v1 }
0x2a39   :  { %3776 = vmatprep.subr.mxu1 %v4312_v1 }
0x2a3d   :  { %v2586_v14 = vpop.f32.mrf.mxu1 }
0x2a3e   :  { %v2611_v8 = vadd.f32 %v2586_v14, %v4836_v35  ;;  %v2593_v23 = vrot.slane %v2586_v14, 2  ;;  %v2594_v27 = vrot.slane %v2586_v14, 3 }
0x2a3f   :  { %v3751_v40 = vpop.f32.mrf.mxu1 }
0x2a40   :  { %v2614_v29 = vrot.slane %v2611_v8, 3  ;;  %v2613_v63 = vrot.slane %v2611_v8, 2  ;;  %v2597_v46 = vadd.f32 %v2593_v23, %v4864_v57  ;;  %v2598_v21 = vadd.f32 %v2594_v27, %v4867_v26 }
0x2a41   :  { %v2589_v17 = vpop.f32.mrf.mxu1 }
0x2a42   :  { %v3514_v58 = vmul.f32 -1.442695, %v2597_v46  ;;  %v3515_v2 = vmul.f32 -1.442695, %v2598_v21 }
0x2a43   :  { %v3752_v22 = vpop.f32.mrf.mxu1 }
0x2af3   :  { %v2941_v20 = vpop.f32.mrf.mxu1 }
0x2af4   :  { %v3022_v32 = vsel %vm3021_vm8, %v2941_v20, -inf }
0x2af5   :  { %3023 = vmax.xlane.f32.xlu1 %v3022_v32  ;;  %v3765_v16 = vpop.f32.mrf.mxu1 }
0x2af7   :  { %v3017_v12 = vpop.f32.mrf.mxu1 }
0x2af8   :  { %v3025_v49 = vsel %vm3021_vm8, %v3017_v12, -inf }
0x2af9   :  { %3026 = vmax.xlane.f32.xlu0 %v3025_v49  ;;  %v3770_v13 = vpop.f32.mrf.mxu1 }
0x2afa   :  { %v3872_v13 = vld [vmem:[#allocation13 + $0x8] sm:$0xff]  }
0x2afb   :  { %3782 = vmatpush3.bf16.msra.mxu0 %v3872_v13 }
0x2afc   :  { %3783 = vmatprep.subr.bf16.mxu0 %v4312_v1 }
0x2b7e   :  { %v3024_v42 = vpop.xlane.xlu1 %3023 }
0x2b7f   :  { %v3028_v54 = vsub.f32 %v2941_v20, %v3024_v42  ;;  %v3873_v42 = vld [vmem:[#allocation13] sm:$0xff]  }
0x2b80   :  { %3784 = vmatpush3.bf16.msra.mxu0 %v3873_v42 }
0x2b81   :  { %v3030_v50 = vmul.f32 1.442695, %v3028_v54  ;;  %3797 = vmatprep.subr.bf16.mxu0 %v4312_v1 }
0x2b82   :  { %v3027_v3 = vpop.xlane.xlu0 %3026 }
0x2b83   :  { %4053 = vpow2.f32 %v3030_v50  ;;  %v3029_v0 = vsub.f32 %v3017_v12, %v3027_v3 }
0x2b85   :  { %v3032_v52 = vmul.f32 1.442695, %v3029_v0 }
0x2b87   :  { %4055 = vpow2.f32 %v3032_v52  ;;  %v3874_v52 = vld [vmem:[#allocation11 + $0x8] sm:$0xff]  }
0x2b88   :  { %4057 = vpow2.f32 %v3514_v58 }
0x2b89   :  { %4059 = vpow2.f32 %v3515_v2  ;;  %v2650_v2 = vrot.slane %v5104_v55, 7 }
0x2b90   :  { %v4054_v25 = vpop.eup %4053 }
0x2b91   :  { %v3034_v9 = vsel %vm3021_vm8, %v4054_v25, 0.0 }
0x2b92   :  { %3035 = vadd.xlane.f32.xlu0 %v3034_v9 }
0x2b94   :  { %v4056_v11 = vpop.eup %4055 }
0x2b95   :  { %v3037_v24 = vsel %vm3021_vm8, %v4056_v11, 0.0  ;;  %v4058_v34 = vpop.eup %4057 }
0x2b96   :  { %3038 = vadd.xlane.f32.xlu1 %v3037_v24  ;;  %v2605_v62 = vadd.f32 1.0, %v4058_v34  ;;  %v4060_v44 = vpop.eup %4059 }
0x2b97   :  { %v2606_v35 = vadd.f32 1.0, %v4060_v44  ;;  %v2794_v44 = vsel %vm1718_vm15, %v5069_v36, %v2050_v19 }
0x2b98   :  { %4061 = vrcp.f32 %v2605_v62  ;;  %v2795_v62 = vsel %vm1718_vm15, %v5063_v61, %v2051_v5  ;;  %v2796_v55 = vsel %vm1721_vm1, %v2794_v44, %v2169_v37 }
0x2b99   :  { %4063 = vrcp.f32 %v2606_v35  ;;  %v2798_v60 = vsel %vm1724_vm2, %v2796_v55, %v2289_v41 }
0x2b9a   :  { %v2800_v4 = vsel %vm1727_vm4, %v2798_v60, %v2409_v48 }
0x2b9b   :  { %v2802_v37 = vsel %vm1730_vm5, %v2800_v4, %v2529_v10  ;;  %v3877_v10 = vld [vmem:[#allocation14] sm:$0xff]  }
0x2ba5   :  { %v4062_v33 = vpop.eup %4061 }
0x2ba6   :  { %v4064_v17 = vpop.eup %4063 }
0x2ba7   :  { %2617 = vrot.lane.b32.xlu1 %v2614_v29, %s4302_s27  ;;  %v2636_v58 = vsub.f32 1.0, %v4064_v17  ;;  %v2654_v35 = vmul.f32 %v4064_v17, %v2650_v2 }
0x2ba8   :  { %2615 = vrot.lane.b32.xlu0 %v2613_v63, %s4302_s27  ;;  %v2649_v63 = vrot.slane %v5106_v30, 7 }
0x2baa   :  { %v2653_v27 = vmul.f32 %v4062_v33, %v2649_v63 }
0x2c1b   :  { %v3036_v38 = vpop.xlane.xlu0 %3035 }
0x2c1c   :  { %4065 = vrcp.f32 %v3036_v38  ;;  %v2797_v38 = vsel %vm1721_vm1, %v2795_v62, %v2170_v45 }
0x2c1d   :  { %v2799_v47 = vsel %vm1724_vm2, %v2797_v38, %v2290_v39  ;;  %v2804_v39 = vsel %vm1733_vm7, %v2802_v37, %v2649_v63 }
0x2c1e   :  { %v2801_v31 = vsel %vm1727_vm4, %v2799_v47, %v2410_v28 }
0x2c1f   :  { %v3039_v18 = vpop.xlane.xlu1 %3038  ;;  %v2616_v40 = vpop.permute.xlu0 %2615  ;;  %v2803_v45 = vsel %vm1730_vm5, %v2801_v31, %v2530_v6  ;;  %v3876_v6 = vld [vmem:[#allocation14 + $0x8] sm:$0xff]  }
0x2c20   :  { %4067 = vrcp.f32 %v3039_v18  ;;  %v2621_v14 = vmul.f32 %v4062_v33, %v2616_v40  ;;  %v2805_v7 = vsel %vm1733_vm7, %v2803_v45, %v2650_v2 }
0x2c22   :  { %2625 = vrot.lane.b32.xlu1 %v2621_v14, %s4302_s27 }
0x2c23   :  { %v2618_v22 = vpop.permute.xlu1 %2617 }
0x2c24   :  { %v2622_v20 = vmul.f32 %v4064_v17, %v2618_v22 }
0x2c26   :  { %2627 = vrot.lane.b32.xlu0 %v2622_v20, %s4302_s27 }
0x2c29   :  { %v4066_v32 = vpop.eup %4065 }
0x2c2a   :  { %v3041_v16 = vmul.f32 %v4066_v32, %v4054_v25  ;;  %v3875_v25 = vld [vmem:[#allocation11] sm:$0xff]  }
0x2c2c   :  { %3774 = vmatmul.mubr.msk.f32.vlgmr.msra.gmra.mxu1 %vm3021_vm8, %v3041_v16 }
0x2c2d   :  { %v4068_v12 = vpop.eup %4067  ;;  %3777 = vmatpush3.msra.mxu1 %v5226_v43  ;;  %3778 = vmatprep.mubr.msk.f32.mxu1 %vm4313_vm0, %v4312_v1 }
0x2c2e   :  { %v3043_v49 = vmul.f32 %v4068_v12, %v4056_v11  ;;  %3789 = vmatprep.subr.bf16.mxu1 %v4312_v1  ;;  %v3531_v12 = vld [vmem:[%s5340_s15] ss:$0 sm:$0xff]  ;;  %s4317_s15 = smov [#allocation17]  }
0x2c2f   :  { %s3431_s12 = sshll.u32 %s4317_s15, 4  ;;  %s3432_s12 = int_to_ptr.vmem [resolvable:$true] %s3431_s12 }
0x2c30   :  { %3779 = vmatmul.mubr.msk.f32.vlgmr.msra.gmra.mxu1 %vm3021_vm8, %v3043_v49  ;;  %s4247_s1 = scalar_lea.vmem %s3432_s12, 32  ;;  %p4252_p13 = scmp.lt.s32.totalorder %s3432_s12, %s3432_s12 }
0x2c31   :  { %3793 = vmatprep.mubr.msk.bf16.mxu1 %vm4313_vm0, %v4312_v1  ;;  %3790 = vmatpush3.bf16.msra.mxu1 %v3874_v52  ;;  %p4248_p12 = scmp.ne.s32.totalorder %s3432_s12, %s4247_s1  ;;  %p4253_p0 = scmp.lt.s32.totalorder %s4247_s1, %s4247_s1 }
0x2c32   :  { %3791 = vmatprep.subr.bf16.mxu1 %v4312_v1 }
0x2c33   :  { %p4254_p1 = por %p4253_p0, %p4252_p13 }
0x2c35   :  { %3792 = vmatpush3.bf16.msra.mxu1 %v3875_v25  ;;  %p4255_p2 = pnand %p4254_p1, %p4248_p12 }
0x2c94   :  { %v2626_v43 = vpop.permute.xlu1 %2625 }
0x2c95   :  { %v2631_v54 = vadd.f32 %v2626_v43, %v4864_v57 }
0x2c97   :  { %4069 = vtanh.f32 %v2631_v54 }
0x2c98   :  { %v2628_v50 = vpop.permute.xlu0 %2627 }
0x2c99   :  { %v2632_v3 = vadd.f32 %v2628_v50, %v4867_v26  ;;  %v2635_v26 = vsub.f32 1.0, %v4062_v33 }
0x2c9b   :  { %4071 = vtanh.f32 %v2632_v3 }
0x2ca4   :  { %v4070_v0 = vpop.eup %4069 }
0x2ca5   :  { %2639 = vrot.lane.b32.xlu1 %v4070_v0, %s4314_s5 }
0x2ca8   :  { %v4072_v9 = vpop.eup %4071 }
0x2ca9   :  { %2641 = vrot.lane.b32.xlu0 %v4072_v9, %s4314_s5 }
0x2cec   :  { %v3113_v11 = vpop.f32.mrf.mxu1 }
0x2cee   :  { %v3775_v24 = vpop.f32.mrf.mxu1 }
0x2cf0   :  { %v3186_v57 = vpop.f32.mrf.mxu1 }
0x2cf1   :  { %v3195_v8 = vpack.c.bf16 %v3186_v57, %v3113_v11 }
0x2cf2   :  { %v3780_v29 = vpop.f32.mrf.mxu1 }
0x2cf3   :  { %3786 = vmatmul.mubr.msk.bf16.vlgmr.msra.gmra.mxu0 %vm217_vm3, %v3195_v8 }
0x2cf4   :  { %3801 = vmatprep.mubr.msk.bf16.mxu0 %vm4313_vm0, %v4312_v1  ;;  %vm2660_vm0 = vcmask 1047559   ;;  %3798 = vmatpush3.bf16.msra.mxu0 %v3876_v6 }
0x2cf5   :  { %3799 = vmatprep.subr.bf16.mxu0 %v4312_v1 }
0x2cf8   :  { %3800 = vmatpush3.bf16.msra.mxu0 %v3877_v10 }
0x2d17   :  { %v2640_v23 = vpop.permute.xlu1 %2639 }
0x2d18   :  { %v2645_v46 = vmul.f32 %v2640_v23, %v2635_v26 }
0x2d1a   :  { %v2655_v21 = vadd.f32 %v2653_v27, %v2645_v46 }
0x2d1b   :  { %v2642_v34 = vpop.permute.xlu0 %2641 }
0x2d1c   :  { %v2646_v30 = vmul.f32 %v2642_v34, %v2636_v58  ;;  %v2791_v5 = vrot.slane %v2655_v21, 7 }
0x2d1e   :  { %v2656_v19 = vadd.f32 %v2654_v35, %v2646_v30  ;;  %v2806_v51 = vsel %vm1736_vm6, %v2804_v39, %v2791_v5 }
0x2d20   :  { %v2659_v56 = vrot.slane %v2656_v19, 7 }
0x2d22   :  { %v2807_v41 = vsel %vm1736_vm6, %v2805_v7, %v2659_v56  ;;  %v2661_v53 = vsel %vm2660_vm0, %v2659_v56, %v2655_v21 }
0x2d23   :  { %v3190_v28 = vpack.c.bf16 %v2807_v41, %v2806_v51 }
0x2d25   :  { %3257 = vrot.lane.b32.xlu1 %v3190_v28, %s4314_s5 }
0x2d97   :  { %v3258_v48 = vpop.permute.xlu1 %3257 }
0x2d98   :  { %3794 = vmatmul.mubr.msk.bf16.vlgmr.msra.gmra.mxu1 %vm217_vm3, %v3258_v48 }
0x2db3   :  { %v3249_v15 = vpop.f32.mrf.mxu0 }
0x2db5   :  { %v3787_v59 = vpop.f32.mrf.mxu0 }
0x2db7   :  { %v3252_v61 = vpop.f32.mrf.mxu0 }
0x2db9   :  { %v3788_v36 = vpop.f32.mrf.mxu0 }
0x2e58   :  { %v3308_v33 = vpop.f32.mrf.mxu1 }
0x2e59   :  { %v3309_v18 = vadd.f32 %v3308_v33, %v3249_v15 }
0x2e5a   :  { %v3795_v40 = vpop.f32.mrf.mxu1 }
0x2e5b   :  { %4073 = vtanh.f32 %v3309_v18 }
0x2e5c   :  { %v3311_v14 = vpop.f32.mrf.mxu1 }
0x2e5d   :  { %v3312_v17 = vadd.f32 %v3311_v14, %v3252_v61 }
0x2e5e   :  { %v3796_v22 = vpop.f32.mrf.mxu1 }
0x2e5f   :  { %4075 = vtanh.f32 %v3312_v17 }
0x2e68   :  { %v4074_v20 = vpop.eup %4073 }
0x2e6c   :  { %v4076_v32 = vpop.eup %4075 }
0x2e6d   :  { %v3317_v16 = vpack.c.bf16 %v4076_v32, %v4074_v20 }
0x2e6f   :  { %3802 = vmatmul.mubr.msk.bf16.vlgmr.msra.gmra.mxu0 %vm217_vm3, %v3317_v16 }
0x2f2f   :  { %v3378_v49 = vpop.f32.mrf.mxu0 }
0x2f30   :  { %v3379_v1 = vadd.f32 %v3531_v12, %v3378_v49 }
0x2f31   :  { %v3803_v13 = vpop.f32.mrf.mxu0 }
0x2f32   :  { %v3385_v42 = vsel %vm217_vm3, %v3379_v1, -inf }
0x2f33   :  { %3386 = vmax.xlane.f32.xlu0 %v3385_v42  ;;  %v3381_v43 = vpop.f32.mrf.mxu0 }
0x2f34   :  { %v3382_v54 = vadd.f32 %v3531_v12, %v3381_v43 }
0x2f35   :  { %v3804_v50 = vpop.f32.mrf.mxu0 }
0x2f36   :  { %v3388_v3 = vsel %vm217_vm3, %v3382_v54, -inf }
0x2f37   :  { %3389 = vmax.xlane.f32.xlu1 %v3388_v3 }
0x2f48   :  { %2662 = vrot.lane.b32.xlu1 %v2661_v53, %s4314_s5 }
0x2fbc   :  { %v3387_v0 = vpop.xlane.xlu0 %3386 }
0x2fbd   :  { %v3391_v52 = vsub.f32 %v3379_v1, %v3387_v0 }
0x2fbf   :  { %v3393_v25 = vmul.f32 1.442695, %v3391_v52 }
0x2fc0   :  { %v3390_v9 = vpop.xlane.xlu1 %3389 }
0x2fc1   :  { %4077 = vpow2.f32 %v3393_v25  ;;  %v3392_v11 = vsub.f32 %v3382_v54, %v3390_v9 }
0x2fc3   :  { %v3395_v24 = vmul.f32 1.442695, %v3392_v11 }
0x2fc4   :  { %v2663_v57 = vpop.permute.xlu1 %2662 }
0x2fc5   :  { %4079 = vpow2.f32 %v3395_v24  ;;  %2666 = vst.msk [vmem:[#allocation17 - $0x6] sm:$0xc0] %vm2665_vm9, %v2663_v57 }
0x2fce   :  { %v4078_v8 = vpop.eup %4077 }
0x2fcf   :  { %v3397_v29 = vsel %vm217_vm3, %v4078_v8, 0.0 }
0x2fd0   :  { %3398 = vadd.xlane.f32.xlu0 %v3397_v29 }
0x2fd2   :  { %v4080_v26 = vpop.eup %4079 }
0x2fd3   :  { %v3400_v63 = vsel %vm217_vm3, %v4080_v26, 0.0 }
0x2fd4   :  { %3401 = vadd.xlane.f32.xlu0 %v3400_v63 }
0x2fd5   :  { %4258 = shalt.err (!%p4255_p2)
}
0x2fd6   :  { %3434 = dma.vmem_to_hbm [thread:$0]  %s3432_s12, 32, %s5342_s17, [#allocation18]  }
0x2fd7   :  { %s4318_s24 = smov [#allocation16]  }
0x2fd8   :  { %s3418_s3 = sshll.u32 %s4318_s24, 4  ;;  %s3419_s3 = int_to_ptr.vmem [resolvable:$true] %s3418_s3 }
0x2fd9   :  { %s4267_s17 = scalar_lea.vmem %s3419_s3, 256  ;;  %p4272_p4 = scmp.lt.s32.totalorder %s3419_s3, %s3419_s3 }
0x2fda   :  { %p4268_p3 = scmp.ne.s32.totalorder %s3419_s3, %s4267_s17  ;;  %p4273_p5 = scmp.lt.s32.totalorder %s4267_s17, %s4267_s17 }
0x2fdc   :  { %p4274_p6 = por %p4273_p5, %p4272_p4 }
0x2fde   :  { %p4275_p7 = pnand %p4274_p6, %p4268_p3 }
0x3059   :  { %v3399_v23 = vpop.xlane.xlu0 %3398 }
0x305a   :  { %4081 = vlog2.f32 %v3399_v23 }
0x305d   :  { %v3402_v27 = vpop.xlane.xlu0 %3401 }
0x305e   :  { %4083 = vlog2.f32 %v3402_v27 }
0x3067   :  { %v4082_v46 = vpop.eup %4081 }
0x3068   :  { %v3404_v21 = vmul.f32 0.6931472, %v4082_v46 }
0x306a   :  { %v3407_v58 = vadd.f32 %v3404_v21, %v3387_v0 }
0x306b   :  { %v4084_v2 = vpop.eup %4083 }
0x306c   :  { %v3409_v34 = vsub.f32 %v3379_v1, %v3407_v58  ;;  %v3406_v62 = vmul.f32 0.6931472, %v4084_v2 }
0x306e   :  { %3411 = vst.msk [vmem:[#allocation16] sm:$0xff] %vm217_vm3, %v3409_v34  ;;  %v3408_v44 = vadd.f32 %v3406_v62, %v3390_v9 }
0x3070   :  { %v3410_v35 = vsub.f32 %v3382_v54, %v3408_v44 }
0x3072   :  { %3412 = vst.msk [vmem:[#allocation16 + $0x8] sm:$0xff] %vm217_vm3, %v3410_v35 }
0x3073   :  { %4278 = shalt.err (!%p4275_p7)
}
0x3074   :  { %s4319_s7 = smov 128   ;;  %s4320_s25 = smov 8  }
0x3075   :  { %3424 = dma.vmem_to_hbm [thread:$0]  %s3419_s3, 256, %s5341_s16, [#allocation4], %s4319_s7, %s4319_s7, %s4320_s25  }
0x3076   :  { %4297 = dma.done.wait [#allocation4], 256  }
0x3077   :  { %4298 = vsyncadd [#allocation4], 4294967040 }
0x3078   :  { %4299 = dma.done.wait [#allocation18], 32  }
0x3079   :  { %4300 = vsyncadd [#allocation18], 4294967264 }
0x307a   :  { %3441 = vsyncpa [#allocation3], 1 }
0x307b   :  { %3442 = vsyncpa [#allocation6], 1 }
0x307c   :  { %3443 = vsyncpa [#allocation9], 1 }
0x307d   :  { %3444 = vsyncpa [#allocation12], 1 }
0x307e   :  { %3445 = vsyncpa [#allocation15], 1 }
0x307f   :  { %3446 = vsyncpa [#allocation4], 1 }
0x3080   :  { %3447 = vsyncpa [#allocation18], 1 }

</bundles_post_ra>
